<compile_context>
chip_gen: v5e
topology: v5e:2x2
jax: 0.10.0
libtpu: 0.0.40
codegen_flags: <defaults>
</compile_context>

<pallas_src>
import functools

import jax
import jax.numpy as jnp
from jax import lax
from jax.experimental import pallas as pl
from jax.experimental.pallas import tpu as pltpu

EPS = 1e-5  # nn.InstanceNorm2d default


def _resnet_block_kernel(x_ref, w1_ref, w2_ref, out_ref, pad_ref, y_ref,
                         *, H, W, C, RS):
    """Fused ResnetBlock forward for one image (NHWC).

    x_ref  : (1, H, W, C)   f32 input image
    w1_ref : (9*C, C)       stage-1 conv weights, taps stacked along K (bf16)
    w2_ref : (9*C, C)       stage-2 conv weights (bf16)
    out_ref: (1, H, W, C)   f32 output
    pad_ref: (H+2, Wp, C)   bf16 scratch, reflect-padded activations (reused)
    y_ref  : (H*W, C)       f32 scratch, resident conv output of the stage
    """
    inv_hw = 1.0 / float(H * W)
    n_strips = H // RS

    def write_reflect_pad(t):
        # nn.ReflectionPad2d(1): mirror without repeating the edge.
        # Cast to bf16 BEFORE padding (halves copy traffic of the pad stores).
        t = t.astype(jnp.bfloat16)
        pad_ref[1:H + 1, 1:W + 1, :] = t
        pad_ref[1:H + 1, 0:1, :] = t[:, 1:2, :]                  # left halo
        pad_ref[1:H + 1, W + 1:W + 2, :] = t[:, W - 2:W - 1, :]  # right halo
        # Top/bottom halo rows (corners included) from already-written rows:
        # xp[0] == xp[2], xp[H+1] == xp[H-1].
        pad_ref[0:1, 0:W + 2, :] = pad_ref[2:3, 0:W + 2, :]
        pad_ref[H + 1:H + 2, 0:W + 2, :] = pad_ref[H - 1:H, 0:W + 2, :]

    def conv3x3_with_stats(w_ref):
        """Strip-mined im2col conv3x3 reading pad_ref, writing f32 into
        y_ref; returns per-channel (mean, rstd) for InstanceNorm."""

        def strip_body(s, carry):
            ssum, ssq = carry
            r0 = pl.multiple_of(s * RS, RS)
            # 3x3 taps for RS output rows -> (RS*W, 9C) bf16 slab, one MXU
            # contraction with K = 9*C (accumulates inside the MXU).
            taps = [pad_ref[pl.ds(r0 + dy, RS), pl.ds(dx, W), :]
                    for dy in range(3) for dx in range(3)]
            slab = jnp.concatenate(taps, axis=-1).reshape(RS * W, 9 * C)
            ystrip = jnp.dot(slab, w_ref[...],
                             preferred_element_type=jnp.float32)
            row = pl.multiple_of(r0 * W, RS * W)
            y_ref[pl.ds(row, RS * W), :] = ystrip
            # Fold the InstanceNorm reductions into the strip loop (hides
            # under the next strip's matmul).
            ssum = ssum + jnp.sum(ystrip, axis=0, keepdims=True)
            ssq = ssq + jnp.sum(ystrip * ystrip, axis=0, keepdims=True)
            return ssum, ssq

        zeros = jnp.zeros((1, C), jnp.float32)
        ssum, ssq = lax.fori_loop(0, n_strips, strip_body, (zeros, zeros))
        mean = ssum * inv_hw
        var = jnp.maximum(ssq * inv_hw - mean * mean, 0.0)  # clamp vs cancel.
        rstd = lax.rsqrt(var + EPS)
        return mean, rstd

    # Stage 1: reflect-pad -> conv3x3 -> InstanceNorm -> ReLU
    # (bias omitted: cancelled exactly by the InstanceNorm mean subtraction)
    write_reflect_pad(x_ref[0])
    mean1, rstd1 = conv3x3_with_stats(w1_ref)
    h = jnp.maximum((y_ref[...] - mean1) * rstd1, 0.0)   # (H*W, C) f32

    # Stage 2: reflect-pad(h) -> conv3x3 -> InstanceNorm -> residual add
    # (pad_ref and y_ref are reused; h never leaves VMEM)
    write_reflect_pad(h.reshape(H, W, C))
    mean2, rstd2 = conv3x3_with_stats(w2_ref)
    y2 = ((y_ref[...] - mean2) * rstd2).reshape(H, W, C)

    out_ref[0] = (x_ref[0] + y2).astype(out_ref.dtype)


def resnet_block_forward_nhwc(x_nhwc, w1_oihw, w2_oihw):
    """x_nhwc: (N, H, W, C) float32; weights in PyTorch OIHW layout."""
    N, H, W, C = x_nhwc.shape
    assert H >= 2 and W >= 2, "ReflectionPad2d(1) needs H, W >= 2"

    def stack_taps(w_oihw):
        # OIHW -> (kh, kw, C_in, C_out) -> (9*C_in, C_out); tap order (dy, dx)
        # row-major matches the im2col slab built inside the kernel.
        return jnp.transpose(w_oihw, (2, 3, 1, 0)).reshape(9 * C, C).astype(
            jnp.bfloat16)

    w1 = stack_taps(w1_oihw)
    w2 = stack_taps(w2_oihw)

    # Rows per strip: largest of {8, 4, 2, 1} dividing H (8 at realistic 64).
    RS = next(r for r in (8, 4, 2, 1) if H % r == 0)
    # Pad the padded-width up to a sublane multiple (extra cols never read).
    Wp = ((W + 2 + 7) // 8) * 8

    kernel = functools.partial(_resnet_block_kernel, H=H, W=W, C=C, RS=RS)
    return pl.pallas_call(
        kernel,
        out_shape=jax.ShapeDtypeStruct((N, H, W, C), jnp.float32),
        grid_spec=pltpu.PrefetchScalarGridSpec(
            num_scalar_prefetch=0,
            grid=(N,),
            in_specs=[
                pl.BlockSpec((1, H, W, C), lambda n: (n, 0, 0, 0)),
                # Weights are grid-constant; pl.Buffered(1) would drop their
                # double-buffering (~2.25 MiB at C=256) — kept default here.
                pl.BlockSpec((9 * C, C), lambda n: (0, 0)),
                pl.BlockSpec((9 * C, C), lambda n: (0, 0)),
            ],
            out_specs=pl.BlockSpec((1, H, W, C), lambda n: (n, 0, 0, 0)),
            scratch_shapes=[
                pltpu.VMEM((H + 2, Wp, C), jnp.bfloat16),   # padded acts
                pltpu.VMEM((H * W, C), jnp.float32),        # resident conv y
            ],
        ),
        compiler_params=pltpu.CompilerParams(
            dimension_semantics=("parallel",),
            vmem_limit_bytes=48 * 1024 * 1024,
        ),
    )(x_nhwc.astype(jnp.float32), w1, w2)


def resnet_block_forward(x_nchw, w1_oihw, b1, w2_oihw, b2):
    """PyTorch-style entry: x (N, C, H, W), conv weights OIHW, biases (C,).

    b1/b2 are accepted for API parity with nn.Conv2d(bias=True) but unused:
    with InstanceNorm2d(affine=False) a per-channel constant bias is
    mathematically cancelled by the per-(n, c) mean subtraction.
    """
    del b1, b2
    x = jnp.transpose(x_nchw, (0, 2, 3, 1))          # NCHW -> NHWC
    out = resnet_block_forward_nhwc(x, w1_oihw, w2_oihw)
    return jnp.transpose(out, (0, 3, 1, 2))          # NHWC -> NCHW


# ---------------------------------------------------------------------------
# Pure-JAX references for correctness checks.
# ---------------------------------------------------------------------------
def _reference(x, w1, b1, w2, b2, cast_bf16=False):
    """Mirrors the PyTorch ResnetBlock (use_dropout=False).

    cast_bf16=True quantizes the conv inputs/weights to bf16 (f32 accumulate)
    to mirror the kernel's MXU precision for a tight structural comparison.
    """
    def conv(z, w, b):
        zp = jnp.pad(z, ((0, 0), (0, 0), (1, 1), (1, 1)), mode="reflect")
        if cast_bf16:
            zp = zp.astype(jnp.bfloat16).astype(jnp.float32)
            w = w.astype(jnp.bfloat16).astype(jnp.float32)
        y = jax.lax.conv_general_dilated(
            zp, w, window_strides=(1, 1), padding="VALID",
            dimension_numbers=("NCHW", "OIHW", "NCHW"))
        return y + b[None, :, None, None]

    def inorm(y):
        m = jnp.mean(y, axis=(2, 3), keepdims=True)
        v = jnp.mean((y - m) ** 2, axis=(2, 3), keepdims=True)
        return (y - m) * jax.lax.rsqrt(v + EPS)

    h = jnp.maximum(inorm(conv(x, w1, b1)), 0.0)
    return x + inorm(conv(h, w2, b2))


if __name__ == "__main__":
    key = jax.random.PRNGKey(0)
    N, C, H, W = 2, 4, 16, 16

    k_x, k_w1, k_b1, k_w2, k_b2 = jax.random.split(key, 5)
    x = jax.random.normal(k_x, (N, C, H, W), jnp.float32)
    # Synthetic parameters (shapes match nn.Conv2d(dim, dim, kernel_size=3)).
    w1 = 0.1 * jax.random.normal(k_w1, (C, C, 3, 3), jnp.float32)
    b1 = 0.1 * jax.random.normal(k_b1, (C,), jnp.float32)
    w2 = 0.1 * jax.random.normal(k_w2, (C, C, 3, 3), jnp.float32)
    b2 = 0.1 * jax.random.normal(k_b2, (C,), jnp.float32)

    out = resnet_block_forward(x, w1, b1, w2, b2)
    out = jax.block_until_ready(out)
    assert out.shape == (N, C, H, W), out.shape

    # Tight check against a reference that mirrors the kernel's bf16 matmul
    # precision (validates structure: padding, conv, IN, ReLU, residual,
    # bias cancellation).
    ref_bf16 = _reference(x, w1, b1, w2, b2, cast_bf16=True)
    err_tight = float(jnp.max(jnp.abs(out - ref_bf16)))
    assert jnp.allclose(out, ref_bf16, atol=2e-3, rtol=2e-3), err_tight

    # Loose sanity check against the exact-f32 PyTorch-equivalent reference
    # (difference is only bf16 matmul quantization).
    ref_f32 = _reference(x, w1, b1, w2, b2, cast_bf16=False)
    err_loose = float(jnp.max(jnp.abs(out - ref_f32)))
    assert jnp.allclose(out, ref_f32, atol=1e-1, rtol=1e-1), err_loose

    print("KERNEL_OK")
</pallas_src>

<mosaic_0001>
module attributes {stable_mosaic.version = 11 : i64} {
  func.func @_resnet_block_kernel(%arg0: i32, %arg1: memref<1x16x16x4xf32, #tpu.memory_space<vmem>>, %arg2: memref<36x4xbf16, #tpu.memory_space<vmem>>, %arg3: memref<36x4xbf16, #tpu.memory_space<vmem>>, %arg4: memref<1x16x16x4xf32, #tpu.memory_space<vmem>>, %arg5: memref<18x24x4xbf16, #tpu.memory_space<vmem>>, %arg6: memref<256x4xf32, #tpu.memory_space<vmem>>) attributes {dimension_semantics = [#tpu.dimension_semantics<parallel>], iteration_bounds = array<i64: 2>, scalar_prefetch = 0 : i64, scratch_operands = 2 : i64, tpu.core_type = #tpu.core_type<tc>, window_params = [{transform_indices = @transform_0, window_bounds = array<i64: 1, 16, 16, 4>}, {pipeline_mode = #tpu.pipeline_mode<synchronous>, transform_indices = @transform_1, window_bounds = array<i64: 36, 4>}, {pipeline_mode = #tpu.pipeline_mode<synchronous>, transform_indices = @transform_2, window_bounds = array<i64: 36, 4>}, {transform_indices = @transform_3, window_bounds = array<i64: 1, 16, 16, 4>}]} {
    %c0 = arith.constant 0 : index
    %c0_0 = arith.constant 0 : index
    %c0_1 = arith.constant 0 : index
    %c0_2 = arith.constant 0 : index
    %0 = vector.load %arg1[%c0, %c0_0, %c0_1, %c0_2] : memref<1x16x16x4xf32, #tpu.memory_space<vmem>>, vector<1x16x16x4xf32>
    %1 = vector.shape_cast %0 : vector<1x16x16x4xf32> to vector<16x16x4xf32>
    %2 = arith.truncf %1 : vector<16x16x4xf32> to vector<16x16x4xbf16>
    %c1 = arith.constant 1 : index
    %c1_3 = arith.constant 1 : index
    %c0_4 = arith.constant 0 : index
    %3 = vector.load %arg5[%c1, %c1_3, %c0_4] : memref<18x24x4xbf16, #tpu.memory_space<vmem>>, vector<16x16x4xbf16>
    tpu.vector_store %arg5[%c1, %c1_3, %c0_4], %2 {strides = array<i32>} : memref<18x24x4xbf16, #tpu.memory_space<vmem>>, vector<16x16x4xbf16>,
    %4 = vector.extract_strided_slice %2 {offsets = [0, 1, 0], sizes = [16, 1, 4], strides = [1, 1, 1]} : vector<16x16x4xbf16> to vector<16x1x4xbf16>
    %c1_5 = arith.constant 1 : index
    %c0_6 = arith.constant 0 : index
    %c0_7 = arith.constant 0 : index
    %5 = vector.load %arg5[%c1_5, %c0_6, %c0_7] : memref<18x24x4xbf16, #tpu.memory_space<vmem>>, vector<16x1x4xbf16>
    tpu.vector_store %arg5[%c1_5, %c0_6, %c0_7], %4 {strides = array<i32>} : memref<18x24x4xbf16, #tpu.memory_space<vmem>>, vector<16x1x4xbf16>,
    %6 = vector.extract_strided_slice %2 {offsets = [0, 14, 0], sizes = [16, 1, 4], strides = [1, 1, 1]} : vector<16x16x4xbf16> to vector<16x1x4xbf16>
    %c1_8 = arith.constant 1 : index
    %c17 = arith.constant 17 : index
    %c0_9 = arith.constant 0 : index
    %7 = vector.load %arg5[%c1_8, %c17, %c0_9] : memref<18x24x4xbf16, #tpu.memory_space<vmem>>, vector<16x1x4xbf16>
    tpu.vector_store %arg5[%c1_8, %c17, %c0_9], %6 {strides = array<i32>} : memref<18x24x4xbf16, #tpu.memory_space<vmem>>, vector<16x1x4xbf16>,
    %c2 = arith.constant 2 : index
    %c0_10 = arith.constant 0 : index
    %c0_11 = arith.constant 0 : index
    %8 = vector.load %arg5[%c2, %c0_10, %c0_11] : memref<18x24x4xbf16, #tpu.memory_space<vmem>>, vector<1x18x4xbf16>
    %c0_12 = arith.constant 0 : index
    %c0_13 = arith.constant 0 : index
    %c0_14 = arith.constant 0 : index
    %9 = vector.load %arg5[%c0_12, %c0_13, %c0_14] : memref<18x24x4xbf16, #tpu.memory_space<vmem>>, vector<1x18x4xbf16>
    tpu.vector_store %arg5[%c0_12, %c0_13, %c0_14], %8 {strides = array<i32>} : memref<18x24x4xbf16, #tpu.memory_space<vmem>>, vector<1x18x4xbf16>,
    %c15 = arith.constant 15 : index
    %c0_15 = arith.constant 0 : index
    %c0_16 = arith.constant 0 : index
    %10 = vector.load %arg5[%c15, %c0_15, %c0_16] : memref<18x24x4xbf16, #tpu.memory_space<vmem>>, vector<1x18x4xbf16>
    %c17_17 = arith.constant 17 : index
    %c0_18 = arith.constant 0 : index
    %c0_19 = arith.constant 0 : index
    %11 = vector.load %arg5[%c17_17, %c0_18, %c0_19] : memref<18x24x4xbf16, #tpu.memory_space<vmem>>, vector<1x18x4xbf16>
    tpu.vector_store %arg5[%c17_17, %c0_18, %c0_19], %10 {strides = array<i32>} : memref<18x24x4xbf16, #tpu.memory_space<vmem>>, vector<1x18x4xbf16>,
    %cst = arith.constant 0.000000e+00 : f32
    %12 = vector.broadcast %cst : f32 to vector<1x4xf32>
    %c0_i32 = arith.constant 0 : i32
    %c2_i32 = arith.constant 2 : i32
    %13 = arith.addi %c0_i32, %c2_i32 : i32
    %c1_i32 = arith.constant 1 : i32
    %14:2 = scf.for %arg7 = %c0_i32 to %13 step %c1_i32 iter_args(%arg8 = %12, %arg9 = %12) -> (vector<1x4xf32>, vector<1x4xf32>)  : i32 {
      %c8_i32 = arith.constant 8 : i32
      %70 = arith.muli %arg7, %c8_i32 : i32
      %71 = tpu.assume_multiple %70, 8 : i32
      %c0_i32_68 = arith.constant 0 : i32
      %72 = arith.addi %71, %c0_i32_68 : i32
      %73 = arith.index_cast %72 : i32 to index
      %c0_69 = arith.constant 0 : index
      %c0_70 = arith.constant 0 : index
      %74 = vector.load %arg5[%73, %c0_69, %c0_70] : memref<18x24x4xbf16, #tpu.memory_space<vmem>>, vector<8x16x4xbf16>
      %c0_i32_71 = arith.constant 0 : i32
      %75 = arith.addi %71, %c0_i32_71 : i32
      %76 = arith.index_cast %75 : i32 to index
      %c1_72 = arith.constant 1 : index
      %c0_73 = arith.constant 0 : index
      %77 = vector.load %arg5[%76, %c1_72, %c0_73] : memref<18x24x4xbf16, #tpu.memory_space<vmem>>, vector<8x16x4xbf16>
      %c0_i32_74 = arith.constant 0 : i32
      %78 = arith.addi %71, %c0_i32_74 : i32
      %79 = arith.index_cast %78 : i32 to index
      %c2_75 = arith.constant 2 : index
      %c0_76 = arith.constant 0 : index
      %80 = vector.load %arg5[%79, %c2_75, %c0_76] : memref<18x24x4xbf16, #tpu.memory_space<vmem>>, vector<8x16x4xbf16>
      %c1_i32_77 = arith.constant 1 : i32
      %81 = arith.addi %71, %c1_i32_77 : i32
      %82 = arith.index_cast %81 : i32 to index
      %c0_78 = arith.constant 0 : index
      %c0_79 = arith.constant 0 : index
      %83 = vector.load %arg5[%82, %c0_78, %c0_79] : memref<18x24x4xbf16, #tpu.memory_space<vmem>>, vector<8x16x4xbf16>
      %c1_i32_80 = arith.constant 1 : i32
      %84 = arith.addi %71, %c1_i32_80 : i32
      %85 = arith.index_cast %84 : i32 to index
      %c1_81 = arith.constant 1 : index
      %c0_82 = arith.constant 0 : index
      %86 = vector.load %arg5[%85, %c1_81, %c0_82] : memref<18x24x4xbf16, #tpu.memory_space<vmem>>, vector<8x16x4xbf16>
      %c1_i32_83 = arith.constant 1 : i32
      %87 = arith.addi %71, %c1_i32_83 : i32
      %88 = arith.index_cast %87 : i32 to index
      %c2_84 = arith.constant 2 : index
      %c0_85 = arith.constant 0 : index
      %89 = vector.load %arg5[%88, %c2_84, %c0_85] : memref<18x24x4xbf16, #tpu.memory_space<vmem>>, vector<8x16x4xbf16>
      %c2_i32_86 = arith.constant 2 : i32
      %90 = arith.addi %71, %c2_i32_86 : i32
      %91 = arith.index_cast %90 : i32 to index
      %c0_87 = arith.constant 0 : index
      %c0_88 = arith.constant 0 : index
      %92 = vector.load %arg5[%91, %c0_87, %c0_88] : memref<18x24x4xbf16, #tpu.memory_space<vmem>>, vector<8x16x4xbf16>
      %c2_i32_89 = arith.constant 2 : i32
      %93 = arith.addi %71, %c2_i32_89 : i32
      %94 = arith.index_cast %93 : i32 to index
      %c1_90 = arith.constant 1 : index
      %c0_91 = arith.constant 0 : index
      %95 = vector.load %arg5[%94, %c1_90, %c0_91] : memref<18x24x4xbf16, #tpu.memory_space<vmem>>, vector<8x16x4xbf16>
      %c2_i32_92 = arith.constant 2 : i32
      %96 = arith.addi %71, %c2_i32_92 : i32
      %97 = arith.index_cast %96 : i32 to index
      %c2_93 = arith.constant 2 : index
      %c0_94 = arith.constant 0 : index
      %98 = vector.load %arg5[%97, %c2_93, %c0_94] : memref<18x24x4xbf16, #tpu.memory_space<vmem>>, vector<8x16x4xbf16>
      %99 = tpu.concatenate %74, %77, %80, %83, %86, %89, %92, %95, %98 in 2 : vector<8x16x4xbf16>, vector<8x16x4xbf16>, vector<8x16x4xbf16>, vector<8x16x4xbf16>, vector<8x16x4xbf16>, vector<8x16x4xbf16>, vector<8x16x4xbf16>, vector<8x16x4xbf16>, vector<8x16x4xbf16> -> vector<8x16x36xbf16>
      %100 = vector.shape_cast %99 : vector<8x16x36xbf16> to vector<128x36xbf16>
      %c0_95 = arith.constant 0 : index
      %c0_96 = arith.constant 0 : index
      %101 = vector.load %arg2[%c0_95, %c0_96] : memref<36x4xbf16, #tpu.memory_space<vmem>>, vector<36x4xbf16>
      %cst_97 = arith.constant dense<0.000000e+00> : vector<128x4xf32>
      %102 = tpu.matmul %100, %101, %cst_97 {dimension_numbers = #tpu.dot_dimension_numbers<[1], [0], [0], [1], [0, 0, 1, 1], [], []>} : vector<128x36xbf16>, vector<36x4xbf16>, vector<128x4xf32> -> vector<128x4xf32>
      %c16_i32 = arith.constant 16 : i32
      %103 = arith.muli %71, %c16_i32 : i32
      %104 = tpu.assume_multiple %103, 128 : i32
      %105 = arith.index_cast %104 : i32 to index
      %c0_98 = arith.constant 0 : index
      %106 = vector.load %arg6[%105, %c0_98] : memref<256x4xf32, #tpu.memory_space<vmem>>, vector<128x4xf32>
      tpu.vector_store %arg6[%105, %c0_98], %102 {strides = array<i32>} : memref<256x4xf32, #tpu.memory_space<vmem>>, vector<128x4xf32>,
      %cst_99 = arith.constant dense<0.000000e+00> : vector<4xf32>
      %107 = vector.multi_reduction <add>, %102, %cst_99 [0] : vector<128x4xf32> to vector<4xf32>
      %108 = vector.shape_cast %107 : vector<4xf32> to vector<1x4xf32>
      %109 = arith.addf %arg8, %108 : vector<1x4xf32>
      %110 = arith.mulf %102, %102 : vector<128x4xf32>
      %cst_100 = arith.constant dense<0.000000e+00> : vector<4xf32>
      %111 = vector.multi_reduction <add>, %110, %cst_100 [0] : vector<128x4xf32> to vector<4xf32>
      %112 = vector.shape_cast %111 : vector<4xf32> to vector<1x4xf32>
      %113 = arith.addf %arg9, %112 : vector<1x4xf32>
      scf.yield %109, %113 : vector<1x4xf32>, vector<1x4xf32>
    }
    %c2_i32_20 = arith.constant 2 : i32
    %cst_21 = arith.constant 3.906250e-03 : f32
    %15 = vector.broadcast %cst_21 : f32 to vector<1x4xf32>
    %16 = arith.mulf %14#0, %15 : vector<1x4xf32>
    %cst_22 = arith.constant 3.906250e-03 : f32
    %17 = vector.broadcast %cst_22 : f32 to vector<1x4xf32>
    %18 = arith.mulf %14#1, %17 : vector<1x4xf32>
    %19 = arith.mulf %16, %16 : vector<1x4xf32>
    %20 = arith.subf %18, %19 : vector<1x4xf32>
    %cst_23 = arith.constant 0.000000e+00 : f32
    %21 = vector.broadcast %cst_23 : f32 to vector<1x4xf32>
    %22 = arith.maximumf %20, %21 : vector<1x4xf32>
    %cst_24 = arith.constant 9.99999974E-6 : f32
    %23 = vector.broadcast %cst_24 : f32 to vector<1x4xf32>
    %24 = arith.addf %22, %23 : vector<1x4xf32>
    %25 = math.rsqrt %24 : vector<1x4xf32>
    %c0_25 = arith.constant 0 : index
    %c0_26 = arith.constant 0 : index
    %26 = vector.load %arg6[%c0_25, %c0_26] : memref<256x4xf32, #tpu.memory_space<vmem>>, vector<256x4xf32>
    %27 = vector.broadcast %16 : vector<1x4xf32> to vector<256x4xf32>
    %28 = arith.subf %26, %27 : vector<256x4xf32>
    %29 = vector.broadcast %25 : vector<1x4xf32> to vector<256x4xf32>
    %30 = arith.mulf %28, %29 : vector<256x4xf32>
    %cst_27 = arith.constant 0.000000e+00 : f32
    %31 = vector.broadcast %cst_27 : f32 to vector<256x4xf32>
    %32 = arith.maximumf %30, %31 : vector<256x4xf32>
    %33 = vector.shape_cast %32 : vector<256x4xf32> to vector<16x16x4xf32>
    %34 = arith.truncf %33 : vector<16x16x4xf32> to vector<16x16x4xbf16>
    %c1_28 = arith.constant 1 : index
    %c1_29 = arith.constant 1 : index
    %c0_30 = arith.constant 0 : index
    %35 = vector.load %arg5[%c1_28, %c1_29, %c0_30] : memref<18x24x4xbf16, #tpu.memory_space<vmem>>, vector<16x16x4xbf16>
    tpu.vector_store %arg5[%c1_28, %c1_29, %c0_30], %34 {strides = array<i32>} : memref<18x24x4xbf16, #tpu.memory_space<vmem>>, vector<16x16x4xbf16>,
    %36 = vector.extract_strided_slice %34 {offsets = [0, 1, 0], sizes = [16, 1, 4], strides = [1, 1, 1]} : vector<16x16x4xbf16> to vector<16x1x4xbf16>
    %c1_31 = arith.constant 1 : index
    %c0_32 = arith.constant 0 : index
    %c0_33 = arith.constant 0 : index
    %37 = vector.load %arg5[%c1_31, %c0_32, %c0_33] : memref<18x24x4xbf16, #tpu.memory_space<vmem>>, vector<16x1x4xbf16>
    tpu.vector_store %arg5[%c1_31, %c0_32, %c0_33], %36 {strides = array<i32>} : memref<18x24x4xbf16, #tpu.memory_space<vmem>>, vector<16x1x4xbf16>,
    %38 = vector.extract_strided_slice %34 {offsets = [0, 14, 0], sizes = [16, 1, 4], strides = [1, 1, 1]} : vector<16x16x4xbf16> to vector<16x1x4xbf16>
    %c1_34 = arith.constant 1 : index
    %c17_35 = arith.constant 17 : index
    %c0_36 = arith.constant 0 : index
    %39 = vector.load %arg5[%c1_34, %c17_35, %c0_36] : memref<18x24x4xbf16, #tpu.memory_space<vmem>>, vector<16x1x4xbf16>
    tpu.vector_store %arg5[%c1_34, %c17_35, %c0_36], %38 {strides = array<i32>} : memref<18x24x4xbf16, #tpu.memory_space<vmem>>, vector<16x1x4xbf16>,
    %c2_37 = arith.constant 2 : index
    %c0_38 = arith.constant 0 : index
    %c0_39 = arith.constant 0 : index
    %40 = vector.load %arg5[%c2_37, %c0_38, %c0_39] : memref<18x24x4xbf16, #tpu.memory_space<vmem>>, vector<1x18x4xbf16>
    %c0_40 = arith.constant 0 : index
    %c0_41 = arith.constant 0 : index
    %c0_42 = arith.constant 0 : index
    %41 = vector.load %arg5[%c0_40, %c0_41, %c0_42] : memref<18x24x4xbf16, #tpu.memory_space<vmem>>, vector<1x18x4xbf16>
    tpu.vector_store %arg5[%c0_40, %c0_41, %c0_42], %40 {strides = array<i32>} : memref<18x24x4xbf16, #tpu.memory_space<vmem>>, vector<1x18x4xbf16>,
    %c15_43 = arith.constant 15 : index
    %c0_44 = arith.constant 0 : index
    %c0_45 = arith.constant 0 : index
    %42 = vector.load %arg5[%c15_43, %c0_44, %c0_45] : memref<18x24x4xbf16, #tpu.memory_space<vmem>>, vector<1x18x4xbf16>
    %c17_46 = arith.constant 17 : index
    %c0_47 = arith.constant 0 : index
    %c0_48 = arith.constant 0 : index
    %43 = vector.load %arg5[%c17_46, %c0_47, %c0_48] : memref<18x24x4xbf16, #tpu.memory_space<vmem>>, vector<1x18x4xbf16>
    tpu.vector_store %arg5[%c17_46, %c0_47, %c0_48], %42 {strides = array<i32>} : memref<18x24x4xbf16, #tpu.memory_space<vmem>>, vector<1x18x4xbf16>,
    %cst_49 = arith.constant 0.000000e+00 : f32
    %44 = vector.broadcast %cst_49 : f32 to vector<1x4xf32>
    %c0_i32_50 = arith.constant 0 : i32
    %c2_i32_51 = arith.constant 2 : i32
    %45 = arith.addi %c0_i32_50, %c2_i32_51 : i32
    %c1_i32_52 = arith.constant 1 : i32
    %46:2 = scf.for %arg7 = %c0_i32_50 to %45 step %c1_i32_52 iter_args(%arg8 = %44, %arg9 = %44) -> (vector<1x4xf32>, vector<1x4xf32>)  : i32 {
      %c8_i32 = arith.constant 8 : i32
      %70 = arith.muli %arg7, %c8_i32 : i32
      %71 = tpu.assume_multiple %70, 8 : i32
      %c0_i32_68 = arith.constant 0 : i32
      %72 = arith.addi %71, %c0_i32_68 : i32
      %73 = arith.index_cast %72 : i32 to index
      %c0_69 = arith.constant 0 : index
      %c0_70 = arith.constant 0 : index
      %74 = vector.load %arg5[%73, %c0_69, %c0_70] : memref<18x24x4xbf16, #tpu.memory_space<vmem>>, vector<8x16x4xbf16>
      %c0_i32_71 = arith.constant 0 : i32
      %75 = arith.addi %71, %c0_i32_71 : i32
      %76 = arith.index_cast %75 : i32 to index
      %c1_72 = arith.constant 1 : index
      %c0_73 = arith.constant 0 : index
      %77 = vector.load %arg5[%76, %c1_72, %c0_73] : memref<18x24x4xbf16, #tpu.memory_space<vmem>>, vector<8x16x4xbf16>
      %c0_i32_74 = arith.constant 0 : i32
      %78 = arith.addi %71, %c0_i32_74 : i32
      %79 = arith.index_cast %78 : i32 to index
      %c2_75 = arith.constant 2 : index
      %c0_76 = arith.constant 0 : index
      %80 = vector.load %arg5[%79, %c2_75, %c0_76] : memref<18x24x4xbf16, #tpu.memory_space<vmem>>, vector<8x16x4xbf16>
      %c1_i32_77 = arith.constant 1 : i32
      %81 = arith.addi %71, %c1_i32_77 : i32
      %82 = arith.index_cast %81 : i32 to index
      %c0_78 = arith.constant 0 : index
      %c0_79 = arith.constant 0 : index
      %83 = vector.load %arg5[%82, %c0_78, %c0_79] : memref<18x24x4xbf16, #tpu.memory_space<vmem>>, vector<8x16x4xbf16>
      %c1_i32_80 = arith.constant 1 : i32
      %84 = arith.addi %71, %c1_i32_80 : i32
      %85 = arith.index_cast %84 : i32 to index
      %c1_81 = arith.constant 1 : index
      %c0_82 = arith.constant 0 : index
      %86 = vector.load %arg5[%85, %c1_81, %c0_82] : memref<18x24x4xbf16, #tpu.memory_space<vmem>>, vector<8x16x4xbf16>
      %c1_i32_83 = arith.constant 1 : i32
      %87 = arith.addi %71, %c1_i32_83 : i32
      %88 = arith.index_cast %87 : i32 to index
      %c2_84 = arith.constant 2 : index
      %c0_85 = arith.constant 0 : index
      %89 = vector.load %arg5[%88, %c2_84, %c0_85] : memref<18x24x4xbf16, #tpu.memory_space<vmem>>, vector<8x16x4xbf16>
      %c2_i32_86 = arith.constant 2 : i32
      %90 = arith.addi %71, %c2_i32_86 : i32
      %91 = arith.index_cast %90 : i32 to index
      %c0_87 = arith.constant 0 : index
      %c0_88 = arith.constant 0 : index
      %92 = vector.load %arg5[%91, %c0_87, %c0_88] : memref<18x24x4xbf16, #tpu.memory_space<vmem>>, vector<8x16x4xbf16>
      %c2_i32_89 = arith.constant 2 : i32
      %93 = arith.addi %71, %c2_i32_89 : i32
      %94 = arith.index_cast %93 : i32 to index
      %c1_90 = arith.constant 1 : index
      %c0_91 = arith.constant 0 : index
      %95 = vector.load %arg5[%94, %c1_90, %c0_91] : memref<18x24x4xbf16, #tpu.memory_space<vmem>>, vector<8x16x4xbf16>
      %c2_i32_92 = arith.constant 2 : i32
      %96 = arith.addi %71, %c2_i32_92 : i32
      %97 = arith.index_cast %96 : i32 to index
      %c2_93 = arith.constant 2 : index
      %c0_94 = arith.constant 0 : index
      %98 = vector.load %arg5[%97, %c2_93, %c0_94] : memref<18x24x4xbf16, #tpu.memory_space<vmem>>, vector<8x16x4xbf16>
      %99 = tpu.concatenate %74, %77, %80, %83, %86, %89, %92, %95, %98 in 2 : vector<8x16x4xbf16>, vector<8x16x4xbf16>, vector<8x16x4xbf16>, vector<8x16x4xbf16>, vector<8x16x4xbf16>, vector<8x16x4xbf16>, vector<8x16x4xbf16>, vector<8x16x4xbf16>, vector<8x16x4xbf16> -> vector<8x16x36xbf16>
      %100 = vector.shape_cast %99 : vector<8x16x36xbf16> to vector<128x36xbf16>
      %c0_95 = arith.constant 0 : index
      %c0_96 = arith.constant 0 : index
      %101 = vector.load %arg3[%c0_95, %c0_96] : memref<36x4xbf16, #tpu.memory_space<vmem>>, vector<36x4xbf16>
      %cst_97 = arith.constant dense<0.000000e+00> : vector<128x4xf32>
      %102 = tpu.matmul %100, %101, %cst_97 {dimension_numbers = #tpu.dot_dimension_numbers<[1], [0], [0], [1], [0, 0, 1, 1], [], []>} : vector<128x36xbf16>, vector<36x4xbf16>, vector<128x4xf32> -> vector<128x4xf32>
      %c16_i32 = arith.constant 16 : i32
      %103 = arith.muli %71, %c16_i32 : i32
      %104 = tpu.assume_multiple %103, 128 : i32
      %105 = arith.index_cast %104 : i32 to index
      %c0_98 = arith.constant 0 : index
      %106 = vector.load %arg6[%105, %c0_98] : memref<256x4xf32, #tpu.memory_space<vmem>>, vector<128x4xf32>
      tpu.vector_store %arg6[%105, %c0_98], %102 {strides = array<i32>} : memref<256x4xf32, #tpu.memory_space<vmem>>, vector<128x4xf32>,
      %cst_99 = arith.constant dense<0.000000e+00> : vector<4xf32>
      %107 = vector.multi_reduction <add>, %102, %cst_99 [0] : vector<128x4xf32> to vector<4xf32>
      %108 = vector.shape_cast %107 : vector<4xf32> to vector<1x4xf32>
      %109 = arith.addf %arg8, %108 : vector<1x4xf32>
      %110 = arith.mulf %102, %102 : vector<128x4xf32>
      %cst_100 = arith.constant dense<0.000000e+00> : vector<4xf32>
      %111 = vector.multi_reduction <add>, %110, %cst_100 [0] : vector<128x4xf32> to vector<4xf32>
      %112 = vector.shape_cast %111 : vector<4xf32> to vector<1x4xf32>
      %113 = arith.addf %arg9, %112 : vector<1x4xf32>
      scf.yield %109, %113 : vector<1x4xf32>, vector<1x4xf32>
    }
    %c2_i32_53 = arith.constant 2 : i32
    %cst_54 = arith.constant 3.906250e-03 : f32
    %47 = vector.broadcast %cst_54 : f32 to vector<1x4xf32>
    %48 = arith.mulf %46#0, %47 : vector<1x4xf32>
    %cst_55 = arith.constant 3.906250e-03 : f32
    %49 = vector.broadcast %cst_55 : f32 to vector<1x4xf32>
    %50 = arith.mulf %46#1, %49 : vector<1x4xf32>
    %51 = arith.mulf %48, %48 : vector<1x4xf32>
    %52 = arith.subf %50, %51 : vector<1x4xf32>
    %cst_56 = arith.constant 0.000000e+00 : f32
    %53 = vector.broadcast %cst_56 : f32 to vector<1x4xf32>
    %54 = arith.maximumf %52, %53 : vector<1x4xf32>
    %cst_57 = arith.constant 9.99999974E-6 : f32
    %55 = vector.broadcast %cst_57 : f32 to vector<1x4xf32>
    %56 = arith.addf %54, %55 : vector<1x4xf32>
    %57 = math.rsqrt %56 : vector<1x4xf32>
    %c0_58 = arith.constant 0 : index
    %c0_59 = arith.constant 0 : index
    %58 = vector.load %arg6[%c0_58, %c0_59] : memref<256x4xf32, #tpu.memory_space<vmem>>, vector<256x4xf32>
    %59 = vector.broadcast %48 : vector<1x4xf32> to vector<256x4xf32>
    %60 = arith.subf %58, %59 : vector<256x4xf32>
    %61 = vector.broadcast %57 : vector<1x4xf32> to vector<256x4xf32>
    %62 = arith.mulf %60, %61 : vector<256x4xf32>
    %63 = vector.shape_cast %62 : vector<256x4xf32> to vector<16x16x4xf32>
    %c0_60 = arith.constant 0 : index
    %c0_61 = arith.constant 0 : index
    %c0_62 = arith.constant 0 : index
    %c0_63 = arith.constant 0 : index
    %64 = vector.load %arg1[%c0_60, %c0_61, %c0_62, %c0_63] : memref<1x16x16x4xf32, #tpu.memory_space<vmem>>, vector<1x16x16x4xf32>
    %65 = vector.shape_cast %64 : vector<1x16x16x4xf32> to vector<16x16x4xf32>
    %66 = arith.addf %65, %63 : vector<16x16x4xf32>
    %c0_64 = arith.constant 0 : index
    %c0_65 = arith.constant 0 : index
    %c0_66 = arith.constant 0 : index
    %c0_67 = arith.constant 0 : index
    %67 = vector.load %arg4[%c0_64, %c0_65, %c0_66, %c0_67] : memref<1x16x16x4xf32, #tpu.memory_space<vmem>>, vector<1x16x16x4xf32>
    %68 = vector.shape_cast %67 : vector<1x16x16x4xf32> to vector<16x16x4xf32>
    %69 = vector.shape_cast %66 : vector<16x16x4xf32> to vector<1x16x16x4xf32>
    tpu.vector_store %arg4[%c0_64, %c0_65, %c0_66, %c0_67], %69 {strides = array<i32>} : memref<1x16x16x4xf32, #tpu.memory_space<vmem>>, vector<1x16x16x4xf32>,
    return
  }
  func.func @transform_0(%arg0: i32) -> (i32, i32, i32, i32) {
    %c0_i32 = arith.constant 0 : i32
    %c0_i32_0 = arith.constant 0 : i32
    %c0_i32_1 = arith.constant 0 : i32
    %c0_i32_2 = arith.constant 0 : i32
    return %arg0, %c0_i32, %c0_i32_0, %c0_i32_1 : i32, i32, i32, i32
  }
  func.func @transform_1(%arg0: i32) -> (i32, i32) {
    %c0_i32 = arith.constant 0 : i32
    %c0_i32_0 = arith.constant 0 : i32
    %c0_i32_1 = arith.constant 0 : i32
    return %c0_i32, %c0_i32_0 : i32, i32
  }
  func.func @transform_2(%arg0: i32) -> (i32, i32) {
    %c0_i32 = arith.constant 0 : i32
    %c0_i32_0 = arith.constant 0 : i32
    %c0_i32_1 = arith.constant 0 : i32
    return %c0_i32, %c0_i32_0 : i32, i32
  }
  func.func @transform_3(%arg0: i32) -> (i32, i32, i32, i32) {
    %c0_i32 = arith.constant 0 : i32
    %c0_i32_0 = arith.constant 0 : i32
    %c0_i32_1 = arith.constant 0 : i32
    %c0_i32_2 = arith.constant 0 : i32
    return %arg0, %c0_i32, %c0_i32_0, %c0_i32_1 : i32, i32, i32, i32
  }
}

</mosaic_0001>

<bundles_post_ra>
// kernel: tpu_custom_call.1
= control target key start
LH: loop header
LB: loop body
LE: loop exit
PB: predicated region body
PF: predicated region fallthrough
CT: control target
= control target key end

     0   :  { %s5131_s12 = smov 0   ;;  %s7685_s0 = inlined_call_operand.vmem [shape: f32[2,16,16,4], index: 0, kind: input, shape index: {}]   ;;  %s7686_s1 = inlined_call_operand.vmem [shape: bf16[36,4], index: 1, kind: input, shape index: {}]   ;;  %s7687_s2 = inlined_call_operand.vmem [shape: bf16[36,4], index: 2, kind: input, shape index: {}]   ;;  %s7688_s3 = inlined_call_operand.vmem [shape: f32[2,16,16,4], index: 3, kind: output, shape index: {}]  }
   0x1 LB: > { %s4421_s13 = sadd.s32 4294967295, %s5069_s12   ;;  %p4425_p0 = scmp.ge.s32.totalorder %s5069_s12, 1  ;;  %s5069_s12 = sphi %s5131_s12, %s13_s12  }
   0x2   : > { %p137_p1 = scmp.lt.s32.totalorder %s5069_s12, 3 }
   0x4   : > { %p138_p2 = pnand %p4425_p0, %p137_p1 }
   0x6   : > { %141 = sbr.rel (%p138_p2) target bundleno = 1254 (0x4e6), region = 32 }
   0xb   : > { %p161_p3 = scmp.lt.s32.totalorder %s4421_s13, 1  ;;  %vm236_vm0 = vsmask.f32 256  ;;  %vm560_vm1 = vcmask 27648   ;;  %vm561_vm2 = vsmask.f32 7938 }
   0xc   : > { %vm7726_vm3 = vcmask 24576   ;;  %v573_v18 = vld [vmem:[#allocation2 + $0x18] sm:$0xf]  ;;  %vm5183_vm4 = vmand %vm560_vm1, %vm561_vm2  ;;  %v577_v26 = vld [vmem:[#allocation2 + $0x20] sm:$0x1]  ;;  %s5767_s21 = smov 0  }
   0xd   : > { %s7929_s13 = smov (!%p161_p3, %s4421_s13), 1  ;;  %vm5196_vm5 = vmand %vm7726_vm3, %vm236_vm0  ;;  %v664_v30 = vld [vmem:[#allocation2 + $0xb4] sm:$0xf]  ;;  %v668_v32 = vld [vmem:[#allocation2 + $0xbc] sm:$0x1] }
   0xe   : > { %s4672_s14 = sshll.u32 %s7929_s13, 8  ;;  %v563_v39 = vld [vmem:[#allocation2 + $0xc] sm:$0xf]  ;;  %v570_v41 = vld [vmem:[#allocation2 + $0x14] sm:$0x1]  ;;  %vm5504_vm8 = vmand %vm7726_vm3, %vm561_vm2 }
   0xf   : > { %s5142_s17 = scalar_lea.vmem %s7685_s0, %s4672_s14  ;;  %s5147_s20 = scalar_lea.vmem %s7688_s3, %s4672_s14  ;;  %v580_v60 = vld [vmem:[#allocation2 + $0x24] sm:$0xf]  ;;  %vm237_vm6 = vsmask.f32 4368 }
  0x10   : > { %v174_v0 = vld [vmem:[%s5142_s17 + $0x10] sm:$0xff]  ;;  %v175_v1 = vld [vmem:[%s5142_s17 + $0x18] sm:$0xff]  ;;  %v200_v2 = vld [vmem:[%s5142_s17 + $0xe0] sm:$0xff] }
  0x11   : > { %v5152_v3 = vpack.c.bf16 %v174_v0, %v174_v0  ;;  %v5154_v4 = vpack.c.bf16 %v175_v1, %v175_v1  ;;  %v5156_v5 = vpack.c.bf16 %v200_v2, %v200_v2  ;;  %v201_v6 = vld [vmem:[%s5142_s17 + $0xe8] sm:$0xff]  ;;  %v172_v7 = vld [vmem:[%s5142_s17] sm:$0xff]  ;;  %v178_v46 = vld [vmem:[%s5142_s17 + $0x30] sm:$0xff] }
  0x12   : > { %v173_v8 = vld [vmem:[%s5142_s17 + $0x8] sm:$0xff]  ;;  %v5161_v9 = vpack.c.bf16 %v201_v6, %v201_v6  ;;  %v5163_v10 = vpack.c.bf16 %v172_v7, %v172_v7  ;;  %v176_v16 = vld [vmem:[%s5142_s17 + $0x20] sm:$0xff]  ;;  %v179_v47 = vld [vmem:[%s5142_s17 + $0x38] sm:$0xff]  ;;  %v5242_v61 = vpack.c.bf16 %v178_v46, %v178_v46 }
  0x13   : > { %v5165_v11 = vpack.c.bf16 %v173_v8, %v173_v8  ;;  %v7698_v12 = vshrl.u32 %v5152_v3, 16  ;;  %v260_v13 = vshll.u32 %v5152_v3, 16  ;;  %v265_v14 = vshrl.u32 %v5154_v4, 16  ;;  %v177_v17 = vld [vmem:[%s5142_s17 + $0x28] sm:$0xff]  ;;  %v180_v48 = vld [vmem:[%s5142_s17 + $0x40] sm:$0xff]  ;;  %v182_v54 = vld [vmem:[%s5142_s17 + $0x50] sm:$0xff] }
  0x14   : > { %7767 = vst [vmem:[#allocation4_spill] sm:$0xff] %v5163_v10  ;;  %v7697_v15 = vshrl.u32 %v5156_v5, 16  ;;  %v481_v19 = vshll.u32 %v5156_v5, 16  ;;  %v486_v20 = vshrl.u32 %v5161_v9, 16  ;;  %v7696_v21 = vshrl.u32 %v5163_v10, 16  ;;  %v181_v53 = vld [vmem:[%s5142_s17 + $0x48] sm:$0xff]  ;;  %vm5491_vm7 = vmor %vm236_vm0, %vm237_vm6 }
  0x15   : > { %v243_v22 = vshll.u32 %v5163_v10, 16  ;;  %v5179_v23 = vrot.slane %v7698_v12, 7  ;;  %v5187_v25 = vrot.slane %v265_v14, 7  ;;  %v248_v28 = vshrl.u32 %v5165_v11, 16  ;;  %7773 = vst [vmem:[#allocation6_spill] sm:$0xff] %v5242_v61  ;;  %v183_v8 = vld [vmem:[%s5142_s17 + $0x58] sm:$0xff] }
  0x16   : > { %v5191_v27 = vrot.slane %v7697_v15, 7  ;;  %v5200_v31 = vrot.slane %v486_v20, 7  ;;  %v5204_v33 = vrot.slane %v7696_v21, 7  ;;  %v5206_v34 = vpack.c.bf16 %v176_v16, %v176_v16  ;;  %v584_v2 = vld [vmem:[#allocation2 + $0x2c] sm:$0x1]  ;;  %v194_v15 = vld [vmem:[%s5142_s17 + $0xb0] sm:$0xff] }
  0x17   : > { %v5208_v35 = vpack.c.bf16 %v177_v17, %v177_v17  ;;  %v262_v36 = vor.u32 %v260_v13, %v5179_v23  ;;  %v272_v37 = vrot.slane %v5187_v25, 4  ;;  %v5213_v40 = vrot.slane %v248_v28, 7 }
  0x18   : > { %7772 = vst [vmem:[#allocation5_spill] sm:$0xff] %v5206_v34  ;;  %v483_v38 = vor.u32 %v481_v19, %v5191_v27  ;;  %v493_v42 = vrot.slane %v5200_v31, 4  ;;  %v245_v43 = vor.u32 %v243_v22, %v5204_v33  ;;  %v7694_v44 = vshrl.u32 %v5206_v34, 16  ;;  %v587_v22 = vld [vmem:[#allocation2 + $0x30] sm:$0xf] }
  0x19   : > { %v277_v45 = vshll.u32 %v5206_v34, 16  ;;  %v574_v49 = vsel %vm5183_vm4, %v262_v36, %v573_v18  ;;  %v578_v50 = vsel %vm5196_vm5, %v272_v37, %v577_v26  ;;  %v255_v52 = vrot.slane %v5213_v40, 4  ;;  %v184_v18 = vld [vmem:[%s5142_s17 + $0x60] sm:$0xff]  ;;  %v591_v26 = vld [vmem:[#allocation2 + $0x38] sm:$0x1] }
  0x1a   : > { %v665_v51 = vsel %vm5183_vm4, %v483_v38, %v664_v30  ;;  %575 = vst [vmem:[#allocation2 + $0x18] sm:$0xf] %v574_v49  ;;  %v669_v55 = vsel %vm5196_vm5, %v493_v42, %v668_v32  ;;  %v564_v56 = vsel %vm5183_vm4, %v245_v43, %v563_v39  ;;  %v5237_v57 = vrot.slane %v7694_v44, 7  ;;  %v185_v32 = vld [vmem:[%s5142_s17 + $0x68] sm:$0xff]  ;;  %v594_v42 = vld [vmem:[#allocation2 + $0x3c] sm:$0xf] }
  0x1b   : > { %v282_v58 = vshrl.u32 %v5208_v35, 16  ;;  %579 = vst [vmem:[#allocation2 + $0x20] sm:$0x1] %v578_v50  ;;  %v571_v59 = vsel %vm5196_vm5, %v255_v52, %v570_v41  ;;  %v5244_v62 = vpack.c.bf16 %v179_v47, %v179_v47  ;;  %v5246_v63 = vpack.c.bf16 %v180_v48, %v180_v48  ;;  %v598_v50 = vld [vmem:[#allocation2 + $0x44] sm:$0x1] }
  0x1c   : > { %666 = vst [vmem:[#allocation2 + $0xb4] sm:$0xf] %v665_v51  ;;  %v279_v0 = vor.u32 %v277_v45, %v5237_v57  ;;  %v5251_v6 = vpack.c.bf16 %v181_v53, %v181_v53  ;;  %v5253_v7 = vpack.c.bf16 %v182_v54, %v182_v54  ;;  %v7692_v13 = vshrl.u32 %v5242_v61, 16  ;;  %v601_v53 = vld [vmem:[#allocation2 + $0x48] sm:$0xf] }
  0x1d   : > { %7774 = vst [vmem:[#allocation7_spill] sm:$0xff] %v5246_v63  ;;  %v5249_v1 = vrot.slane %v282_v58, 7  ;;  %v294_v14 = vshll.u32 %v5242_v61, 16  ;;  %v299_v16 = vshrl.u32 %v5244_v62, 16  ;;  %v7691_v17 = vshrl.u32 %v5246_v63, 16  ;;  %v186_v58 = vld [vmem:[%s5142_s17 + $0x70] sm:$0xff] }
  0x1e   : > { %7775 = vst [vmem:[#allocation8_spill] sm:$0xff] %v5253_v7  ;;  %v581_v19 = vsel %vm5183_vm4, %v279_v0, %v580_v60  ;;  %v311_v28 = vshll.u32 %v5246_v63, 16  ;;  %v316_v30 = vshrl.u32 %v5251_v6, 16  ;;  %v5269_v36 = vrot.slane %v7692_v13, 7 }
  0x1f   : > { %670 = vst [vmem:[#allocation2 + $0xbc] sm:$0x1] %v669_v55  ;;  %v289_v20 = vrot.slane %v5249_v1, 4  ;;  %v5271_v37 = vrot.slane %v299_v16, 7  ;;  %v5275_v38 = vrot.slane %v7691_v17, 7  ;;  %v7690_v39 = vshrl.u32 %v5253_v7, 16 }
  0x20   : > { %565 = vst [vmem:[#allocation2 + $0xc] sm:$0xf] %v564_v56  ;;  %v5280_v43 = vrot.slane %v316_v30, 7  ;;  %v328_v45 = vshll.u32 %v5253_v7, 16  ;;  %v5283_v46 = vpack.c.bf16 %v183_v8, %v183_v8  ;;  %v296_v47 = vor.u32 %v294_v14, %v5269_v36  ;;  %v605_v14 = vld [vmem:[#allocation2 + $0x50] sm:$0x1] }
  0x21   : > { %572 = vst [vmem:[#allocation2 + $0x14] sm:$0x1] %v571_v59  ;;  %v585_v41 = vsel %vm5196_vm5, %v289_v20, %v584_v2  ;;  %v306_v48 = vrot.slane %v5271_v37, 4  ;;  %v313_v49 = vor.u32 %v311_v28, %v5275_v38  ;;  %v5290_v51 = vrot.slane %v7690_v39, 7  ;;  %v187_v59 = vld [vmem:[%s5142_s17 + $0x78] sm:$0xff]  ;;  %v188_v16 = vld [vmem:[%s5142_s17 + $0x80] sm:$0xff] }
  0x22   : > { %582 = vst [vmem:[#allocation2 + $0x24] sm:$0xf] %v581_v19  ;;  %v323_v52 = vrot.slane %v5280_v43, 4  ;;  %v333_v54 = vshrl.u32 %v5283_v46, 16  ;;  %v5294_v55 = vpack.c.bf16 %v184_v18, %v184_v18  ;;  %v5296_v56 = vpack.c.bf16 %v185_v32, %v185_v32  ;;  %v189_v19 = vld [vmem:[%s5142_s17 + $0x88] sm:$0xff] }
  0x23   : > { %586 = vst [vmem:[#allocation2 + $0x2c] sm:$0x1] %v585_v41  ;;  %v588_v60 = vsel %vm5183_vm4, %v296_v47, %v587_v22  ;;  %v592_v0 = vsel %vm5196_vm5, %v306_v48, %v591_v26  ;;  %v595_v2 = vsel %vm5183_vm4, %v313_v49, %v594_v42  ;;  %v330_v8 = vor.u32 %v328_v45, %v5290_v51  ;;  %v608_v30 = vld [vmem:[#allocation2 + $0x54] sm:$0xf]  ;;  %v612_v48 = vld [vmem:[#allocation2 + $0x5c] sm:$0x1] }
  0x24   : > { %7776 = vst [vmem:[#allocation9_spill] sm:$0xff] %v5294_v55  ;;  %v599_v18 = vsel %vm5196_vm5, %v323_v52, %v598_v50  ;;  %v5311_v20 = vrot.slane %v333_v54, 7  ;;  %v7689_v22 = vshrl.u32 %v5294_v55, 16  ;;  %v345_v26 = vshll.u32 %v5294_v55, 16  ;;  %v190_v52 = vld [vmem:[%s5142_s17 + $0x90] sm:$0xff] }
  0x25   : > { %589 = vst [vmem:[#allocation2 + $0x30] sm:$0xf] %v588_v60  ;;  %v602_v28 = vsel %vm5183_vm4, %v330_v8, %v601_v53  ;;  %v350_v32 = vshrl.u32 %v5296_v56, 16  ;;  %v5318_v41 = vpack.c.bf16 %v186_v58, %v186_v58  ;;  %v5320_v42 = vpack.c.bf16 %v187_v59, %v187_v59  ;;  %v191_v53 = vld [vmem:[%s5142_s17 + $0x98] sm:$0xff]  ;;  %v615_v8 = vld [vmem:[#allocation2 + $0x60] sm:$0xf] }
  0x26   : > { %593 = vst [vmem:[#allocation2 + $0x38] sm:$0x1] %v592_v0  ;;  %v340_v45 = vrot.slane %v5311_v20, 4  ;;  %v5325_v47 = vrot.slane %v7689_v22, 7  ;;  %v5327_v49 = vpack.c.bf16 %v188_v16, %v188_v16  ;;  %v5329_v50 = vpack.c.bf16 %v189_v19, %v189_v19  ;;  %v619_v16 = vld [vmem:[#allocation2 + $0x68] sm:$0x1] }
  0x27   : > { %7777 = vst [vmem:[#allocation10_spill] sm:$0xff] %v5318_v41  ;;  %v5333_v54 = vrot.slane %v350_v32, 7  ;;  %v7693_v58 = vshrl.u32 %v5318_v41, 16  ;;  %v362_v59 = vshll.u32 %v5318_v41, 16  ;;  %v367_v60 = vshrl.u32 %v5320_v42, 16 }
  0x28   : > { %596 = vst [vmem:[#allocation2 + $0x3c] sm:$0xf] %v595_v2  ;;  %v606_v0 = vsel %vm5196_vm5, %v340_v45, %v605_v14  ;;  %v347_v2 = vor.u32 %v345_v26, %v5325_v47  ;;  %v7695_v19 = vshrl.u32 %v5327_v49, 16  ;;  %v384_v14 = vshrl.u32 %v5329_v50, 16  ;;  %v622_v39 = vld [vmem:[#allocation2 + $0x6c] sm:$0xf] }
  0x29   : > { %7778 = vst [vmem:[#allocation11_spill] sm:$0xff] %v5327_v49  ;;  %v357_v32 = vrot.slane %v5333_v54, 4  ;;  %v5346_v22 = vrot.slane %v7693_v58, 7  ;;  %v5357_v17 = vpack.c.bf16 %v190_v52, %v190_v52  ;;  %v5359_v13 = vpack.c.bf16 %v191_v53, %v191_v53  ;;  %v192_v58 = vld [vmem:[%s5142_s17 + $0xa0] sm:$0xff] }
  0x2a   : > { %600 = vst [vmem:[#allocation2 + $0x44] sm:$0x1] %v599_v18  ;;  %v379_v18 = vshll.u32 %v5327_v49, 16  ;;  %v609_v26 = vsel %vm5183_vm4, %v347_v2, %v608_v30  ;;  %v5355_v45 = vrot.slane %v7695_v19, 7  ;;  %v5366_v2 = vrot.slane %v384_v14, 7  ;;  %v193_v19 = vld [vmem:[%s5142_s17 + $0xa8] sm:$0xff] }
  0x2b   : > { %603 = vst [vmem:[#allocation2 + $0x48] sm:$0xf] %v602_v28  ;;  %v5348_v28 = vrot.slane %v367_v60, 7  ;;  %v613_v60 = vsel %vm5196_vm5, %v357_v32, %v612_v48  ;;  %v364_v44 = vor.u32 %v362_v59, %v5346_v22  ;;  %v7701_v52 = vshrl.u32 %v5357_v17, 16  ;;  %v629_v14 = vld [vmem:[#allocation2 + $0x78] sm:$0xf] }
  0x2c   : > { %607 = vst [vmem:[#allocation2 + $0x50] sm:$0x1] %v606_v0  ;;  %v626_v0 = vld [vmem:[#allocation2 + $0x74] sm:$0x1]  ;;  %v381_v21 = vor.u32 %v379_v18, %v5355_v45  ;;  %v396_v53 = vshll.u32 %v5357_v17, 16  ;;  %v391_v32 = vrot.slane %v5366_v2, 4 }
  0x2d   : > { %7779 = vst [vmem:[#allocation12_spill] sm:$0xff] %v5357_v17  ;;  %v374_v30 = vrot.slane %v5348_v28, 4  ;;  %v616_v48 = vsel %vm5183_vm4, %v364_v44, %v615_v8  ;;  %v195_v18 = vld [vmem:[%s5142_s17 + $0xb8] sm:$0xff]  ;;  %v5386_v49 = vrot.slane %v7701_v52, 7  ;;  %v5390_v44 = vpack.c.bf16 %v193_v19, %v193_v19  ;;  %v196_v8 = vld [vmem:[%s5142_s17 + $0xc0] sm:$0xff] }
  0x2e   : > { %610 = vst [vmem:[#allocation2 + $0x54] sm:$0xf] %v609_v26  ;;  %v401_v26 = vshrl.u32 %v5359_v13, 16  ;;  %v623_v12 = vsel %vm5183_vm4, %v381_v21, %v622_v39  ;;  %v5397_v39 = vpack.c.bf16 %v194_v15, %v194_v15  ;;  %v636_v19 = vld [vmem:[#allocation2 + $0x84] sm:$0xf]  ;;  %v5402_v52 = vpack.c.bf16 %v195_v18, %v195_v18 }
  0x2f   : > { %614 = vst [vmem:[#allocation2 + $0x5c] sm:$0x1] %v613_v60  ;;  %v620_v59 = vsel %vm5196_vm5, %v374_v30, %v619_v16  ;;  %v5379_v60 = vpack.c.bf16 %v192_v58, %v192_v58  ;;  %v627_v58 = vsel %vm5196_vm5, %v391_v32, %v626_v0  ;;  %v633_v16 = vld [vmem:[#allocation2 + $0x80] sm:$0x1]  ;;  %v197_v0 = vld [vmem:[%s5142_s17 + $0xc8] sm:$0xff]  ;;  %v5411_v17 = vpack.c.bf16 %v196_v8, %v196_v8 }
  0x30   : > { %617 = vst [vmem:[#allocation2 + $0x60] sm:$0xf] %v616_v48  ;;  %v5388_v41 = vrot.slane %v401_v26, 7  ;;  %v398_v48 = vor.u32 %v396_v53, %v5386_v49  ;;  %v198_v53 = vld [vmem:[%s5142_s17 + $0xd0] sm:$0xff]  ;;  %v7784_v63 = vshrl.u32 %v5397_v39, 16 }
  0x31   : > { %7780 = vst [vmem:[#allocation13_spill] sm:$0xff] %v5379_v60  ;;  %v7706_v30 = vshrl.u32 %v5379_v60, 16  ;;  %v413_v21 = vshll.u32 %v5379_v60, 16  ;;  %v435_v60 = vshrl.u32 %v5402_v52, 16  ;;  %v7713_v61 = vshrl.u32 %v5411_v17, 16 }
  0x32   : > { %621 = vst [vmem:[#allocation2 + $0x68] sm:$0x1] %v620_v59  ;;  %v408_v26 = vrot.slane %v5388_v41, 4  ;;  %v418_v59 = vshrl.u32 %v5390_v44, 16  ;;  %v630_v55 = vsel %vm5183_vm4, %v398_v48, %v629_v14  ;;  %v5425_v8 = vrot.slane %v7784_v63, 7 }
  0x33   : > { %7781 = vst [vmem:[#allocation14_spill] sm:$0xff] %v5397_v39  ;;  %v5407_v32 = vrot.slane %v7706_v30, 7  ;;  %v199_v30 = vld [vmem:[%s5142_s17 + $0xd8] sm:$0xff]  ;;  %v447_v14 = vshll.u32 %v5411_v17, 16  ;;  %v643_v48 = vld [vmem:[#allocation2 + $0x90] sm:$0xf] }
  0x34   : > { %624 = vst [vmem:[#allocation2 + $0x6c] sm:$0xf] %v623_v12  ;;  %v430_v12 = vshll.u32 %v5397_v39, 16  ;;  %v634_v18 = vsel %vm5196_vm5, %v408_v26, %v633_v16  ;;  %v5418_v7 = vrot.slane %v418_v59, 7  ;;  %v5430_v26 = vrot.slane %v435_v60, 7 }
  0x35   : > { %628 = vst [vmem:[#allocation2 + $0x74] sm:$0x1] %v627_v58  ;;  %v640_v58 = vld [vmem:[#allocation2 + $0x8c] sm:$0x1]  ;;  %v415_v15 = vor.u32 %v413_v21, %v5407_v32  ;;  %v5432_v59 = vpack.c.bf16 %v197_v0, %v197_v0  ;;  %v647_v39 = vld [vmem:[#allocation2 + $0x98] sm:$0x1]  ;;  %v5443_v10 = vpack.c.bf16 %v199_v30, %v199_v30 }
  0x36   : > { %7782 = vst [vmem:[#allocation15_spill] sm:$0xff] %v5411_v17  ;;  %v425_v16 = vrot.slane %v5418_v7, 4  ;;  %v432_v63 = vor.u32 %v430_v12, %v5425_v8  ;;  %v5441_v34 = vrot.slane %v7713_v61, 7  ;;  %v442_v0 = vrot.slane %v5430_v26, 4  ;;  %v654_v30 = vld [vmem:[#allocation2 + $0xa4] sm:$0x1] }
  0x37   : > { %7783 = vst [vmem:[#allocation16_spill] sm:$0xff] %v5418_v7  ;;  %v637_v21 = vsel %vm5183_vm4, %v415_v15, %v636_v19  ;;  %v202_v7 = vld [vmem:[%s5142_s17 + $0xf0] sm:$0xff]  ;;  %v203_v15 = vld [vmem:[%s5142_s17 + $0xf8] sm:$0xff] }
  0x38   : > { %631 = vst [vmem:[#allocation2 + $0x78] sm:$0xf] %v630_v55  ;;  %v5434_v55 = vpack.c.bf16 %v198_v53, %v198_v53  ;;  %v641_v60 = vsel %vm5196_vm5, %v425_v16, %v640_v58  ;;  %v452_v53 = vshrl.u32 %v5432_v59, 16  ;;  %v644_v12 = vsel %vm5183_vm4, %v432_v63, %v643_v48 }
  0x39   : > { %7785 = vst [vmem:[#allocation17_spill] sm:$0xff] %v5425_v8  ;;  %v449_v61 = vor.u32 %v447_v14, %v5441_v34  ;;  %v469_v8 = vshrl.u32 %v5443_v10, 16  ;;  %v648_v58 = vsel %vm5196_vm5, %v442_v0, %v647_v39  ;;  %v5465_v48 = vpack.c.bf16 %v202_v7, %v202_v7 }
  0x3a   : > { %635 = vst [vmem:[#allocation2 + $0x80] sm:$0x1] %v634_v18  ;;  %v650_v18 = vld [vmem:[#allocation2 + $0x9c] sm:$0xf]  ;;  %v7719_v19 = vshrl.u32 %v5434_v55, 16  ;;  %v464_v17 = vshll.u32 %v5434_v55, 16 }
  0x3b   : > { %7786 = vst [vmem:[#allocation18_spill] sm:$0xff] %v5430_v26  ;;  %v5459_v16 = vrot.slane %v452_v53, 7  ;;  %v661_v26 = vld [vmem:[#allocation2 + $0xb0] sm:$0x1]  ;;  %v651_v14 = vsel %vm5183_vm4, %v449_v61, %v650_v18  ;;  %v5469_v63 = vrot.slane %v469_v8, 7  ;;  %v7721_v53 = vshrl.u32 %v5465_v48, 16 }
  0x3c   : > { %7787 = vst [vmem:[#allocation19_spill] sm:$0xff] %v5434_v55  ;;  %v263_v61 = vrot.slane %v5179_v23, 4  ;;  %v268_v8 = vshll.u32 %v5154_v4, 16  ;;  %v484_v23 = vrot.slane %v5191_v27, 4  ;;  %v729_v4 = vld [vmem:[#allocation2 + $0x18] sm:$0x1] }
  0x3d   : > { %7788 = vst [vmem:[#allocation20_spill] sm:$0xff] %v5443_v10  ;;  %v5471_v10 = vpack.c.bf16 %v203_v15, %v203_v15  ;;  %v459_v39 = vrot.slane %v5459_v16, 4  ;;  %v476_v7 = vrot.slane %v5469_v63, 4 }
  0x3e   : > { %638 = vst [vmem:[#allocation2 + $0x84] sm:$0xf] %v637_v21  ;;  %v657_v21 = vld [vmem:[#allocation2 + $0xa8] sm:$0xf] }
  0x3f   : > { %642 = vst [vmem:[#allocation2 + $0x8c] sm:$0x1] %v641_v60  ;;  %v5463_v60 = vrot.slane %v7719_v19, 7  ;;  %v503_v19 = vshrl.u32 %v5471_v10, 16  ;;  %v655_v18 = vsel %vm5196_vm5, %v459_v39, %v654_v30  ;;  %v662_v30 = vsel %vm5196_vm5, %v476_v7, %v661_v26 }
  0x40   : > { %645 = vst [vmem:[#allocation2 + $0x90] sm:$0xf] %v644_v12  ;;  %v498_v12 = vshll.u32 %v5465_v48, 16 }
  0x41   : > { %7789 = vst [vmem:[#allocation21_spill] sm:$0xff] %v5465_v48  ;;  %v466_v0 = vor.u32 %v464_v17, %v5463_v60  ;;  %v5487_v17 = vrot.slane %v7721_v53, 7  ;;  %v5498_v39 = vrot.slane %v503_v19, 7  ;;  %v768_v53 = vld [vmem:[#allocation2 + $0xb4] sm:$0x1] }
  0x42   : > { %649 = vst [vmem:[#allocation2 + $0x98] sm:$0x1] %v648_v58  ;;  %v671_v58 = vld [vmem:[#allocation2 + $0xc0] sm:$0xf] }
  0x43   : > { %7790 = vst [vmem:[#allocation22_spill] sm:$0xff] %v5469_v63  ;;  %v658_v15 = vsel %vm5183_vm4, %v466_v0, %v657_v21  ;;  %v270_v21 = vor.u32 %v268_v8, %v5187_v25  ;;  %v489_v0 = vshll.u32 %v5161_v9, 16  ;;  %v500_v27 = vor.u32 %v498_v12, %v5487_v17  ;;  %v826_v63 = vld [vmem:[#allocation2 + $0x20] sm:$0x1] }
  0x44   : > { %652 = vst [vmem:[#allocation2 + $0x9c] sm:$0xf] %v651_v14  ;;  %v675_v14 = vld [vmem:[#allocation2 + $0xc8] sm:$0x1]  ;;  %v510_v26 = vrot.slane %v5498_v39, 4 }
  0x45   : > { %656 = vst [vmem:[#allocation2 + $0xa4] sm:$0x1] %v655_v18  ;;  %v4447_v18 = vrot.slane %v268_v8, 11  ;;  %v271_v25 = vsel %vm5491_vm7, %v263_v61, %v270_v21  ;;  %v491_v9 = vor.u32 %v489_v0, %v5200_v31  ;;  %v4460_v19 = vrot.slane %v489_v0, 11 }
  0x46   : > { %7793 = vst [vmem:[#allocation23_spill] sm:$0xff] %v5498_v39  ;;  %v672_v7 = vsel %vm5183_vm4, %v500_v27, %v671_v58  ;;  %v7797_v8 = vshrl.u32 %v5156_v5, 16  ;;  %v865_v39 = vld [vmem:[#allocation2 + $0xbc] sm:$0x1]  ;;  %v251_v61 = vshll.u32 %v5165_v11, 16  ;;  %v676_v31 = vsel %vm5196_vm5, %v510_v26, %v675_v14 }
  0x47   : > { %659 = vst [vmem:[#allocation2 + $0xa8] sm:$0xf] %v658_v15  ;;  %v7796_v15 = vshrl.u32 %v5152_v3, 16  ;;  %v492_v58 = vsel %vm5491_vm7, %v484_v23, %v491_v9  ;;  %v827_v3 = vsel %vm5504_vm8, %v4447_v18, %v826_v63  ;;  %v285_v21 = vshll.u32 %v5208_v35, 16 }
  0x48   : > { %663 = vst [vmem:[#allocation2 + $0xb0] sm:$0x1] %v662_v30  ;;  %v769_v30 = vsel %vm5196_vm5, %v7797_v8, %v768_v53  ;;  %v253_v5 = vor.u32 %v251_v61, %v5213_v40  ;;  %v280_v53 = vrot.slane %v5237_v57, 4  ;;  %v302_v0 = vshll.u32 %v5244_v62, 16 }
  0x49   : > { %576 = vst.msk [vmem:[#allocation2 + $0x1c] sm:$0xf] %vm560_vm1, %v271_v25  ;;  %v730_v12 = vsel %vm5196_vm5, %v7796_v15, %v729_v4  ;;  %v246_v4 = vrot.slane %v5204_v33, 4  ;;  %v866_v14 = vsel %vm5504_vm8, %v4460_v19, %v865_v39  ;;  %v297_v63 = vrot.slane %v5269_v36, 4 }
  0x4a   : > { %673 = vst [vmem:[#allocation2 + $0xc0] sm:$0xf] %v672_v7  ;;  %v319_v33 = vshll.u32 %v5251_v6, 16  ;;  %v336_v23 = vshll.u32 %v5283_v46, 16  ;;  %v287_v40 = vor.u32 %v285_v21, %v5249_v1  ;;  %v304_v57 = vor.u32 %v302_v0, %v5271_v37 }
  0x4b   : > { %677 = vst [vmem:[#allocation2 + $0xc8] sm:$0x1] %v676_v31  ;;  %v314_v27 = vrot.slane %v5275_v38, 4  ;;  %v331_v18 = vrot.slane %v5290_v51, 4  ;;  %v254_v36 = vsel %vm5491_vm7, %v246_v4, %v253_v5  ;;  %v353_v26 = vshll.u32 %v5296_v56, 16 }
  0x4c   : > { %667 = vst.msk [vmem:[#allocation2 + $0xb8] sm:$0xf] %vm560_vm1, %v492_v58  ;;  %v321_v39 = vor.u32 %v319_v33, %v5280_v43  ;;  %v338_v1 = vor.u32 %v336_v23, %v5311_v20  ;;  %v288_v37 = vsel %vm5491_vm7, %v280_v53, %v287_v40  ;;  %v348_v38 = vrot.slane %v5325_v47, 4 }
  0x4d   : > { %731 = vst [vmem:[#allocation2 + $0x18] sm:$0x1] %v730_v12  ;;  %v370_v51 = vshll.u32 %v5320_v42, 16  ;;  %v305_v25 = vsel %vm5491_vm7, %v297_v63, %v304_v57  ;;  %v355_v43 = vor.u32 %v353_v26, %v5333_v54  ;;  %v365_v20 = vrot.slane %v5346_v22, 4  ;;  %v7801_v63 = vld [vmem:[#allocation20_spill] sm:$0xff] }
  0x4e   : > { %770 = vst [vmem:[#allocation2 + $0xb4] sm:$0x1] %v769_v30  ;;  %v387_v9 = vshll.u32 %v5329_v50, 16  ;;  %v322_v19 = vsel %vm5491_vm7, %v314_v27, %v321_v39  ;;  %v382_v7 = vrot.slane %v5355_v45, 4  ;;  %v404_v15 = vshll.u32 %v5359_v13, 16  ;;  %v7802_v39 = vld [vmem:[#allocation22_spill] sm:$0xff] }
  0x4f   : > { %828 = vst [vmem:[#allocation2 + $0x20] sm:$0x1] %v827_v3  ;;  %v372_v47 = vor.u32 %v370_v51, %v5348_v28  ;;  %v339_v22 = vsel %vm5491_vm7, %v331_v18, %v338_v1  ;;  %v399_v12 = vrot.slane %v5386_v49, 4  ;;  %v421_v8 = vshll.u32 %v5390_v44, 16  ;;  %v7799_v3 = vld [vmem:[#allocation17_spill] sm:$0xff] }
  0x50   : > { %867 = vst [vmem:[#allocation2 + $0xbc] sm:$0x1] %v866_v14  ;;  %v389_v54 = vor.u32 %v387_v9, %v5366_v2  ;;  %v356_v28 = vsel %vm5491_vm7, %v348_v38, %v355_v43  ;;  %v406_v45 = vor.u32 %v404_v15, %v5388_v41  ;;  %v416_v30 = vrot.slane %v5407_v32, 4  ;;  %v7798_v2 = vld [vmem:[#allocation16_spill] sm:$0xff]  ;;  %v7800_v32 = vld [vmem:[#allocation18_spill] sm:$0xff]  ;;  %v7803_v38 = vld [vmem:[#allocation23_spill] sm:$0xff] }
  0x51   : > { %567 = vst.msk [vmem:[#allocation2 + $0x10] sm:$0xf] %vm560_vm1, %v254_v36  ;;  %v438_v31 = vshll.u32 %v5402_v52, 16  ;;  %v373_v49 = vsel %vm5491_vm7, %v365_v20, %v372_v47  ;;  %v423_v58 = vor.u32 %v421_v8, %v7798_v2  ;;  %v433_v4 = vrot.slane %v7799_v3, 4  ;;  %v726_v43 = vld [vmem:[#allocation2 + $0xc] sm:$0x1] }
  0x52   : > { %583 = vst.msk [vmem:[#allocation2 + $0x28] sm:$0xf] %vm560_vm1, %v288_v37  ;;  %v455_v5 = vshll.u32 %v5432_v59, 16  ;;  %v390_v41 = vsel %vm5491_vm7, %v382_v7, %v389_v54  ;;  %v450_v14 = vrot.slane %v5441_v34, 4  ;;  %v472_v40 = vshll.u32 %v7801_v63, 16  ;;  %v7804_v7 = vld [vmem:[#allocation4_spill] sm:$0xff] }
  0x53   : > { %590 = vst.msk [vmem:[#allocation2 + $0x34] sm:$0xf] %vm560_vm1, %v305_v25  ;;  %v440_v53 = vor.u32 %v438_v31, %v7800_v32  ;;  %v407_v57 = vsel %vm5491_vm7, %v399_v12, %v406_v45  ;;  %v467_v18 = vrot.slane %v5463_v60, 4  ;;  %v506_v36 = vshll.u32 %v5471_v10, 16  ;;  %v732_v20 = vld [vmem:[#allocation2 + $0x24] sm:$0x1] }
  0x54   : > { %597 = vst.msk [vmem:[#allocation2 + $0x40] sm:$0xf] %vm560_vm1, %v322_v19  ;;  %v457_v27 = vor.u32 %v455_v5, %v5459_v16  ;;  %v424_v34 = vsel %vm5491_vm7, %v416_v30, %v423_v58  ;;  %v474_v1 = vor.u32 %v472_v40, %v7802_v39  ;;  %v501_v37 = vrot.slane %v5487_v17, 4  ;;  %v735_v47 = vld [vmem:[#allocation2 + $0x30] sm:$0x1]  ;;  %v7808_v2 = vld [vmem:[#allocation6_spill] sm:$0xff] }
  0x55   : > { %604 = vst.msk [vmem:[#allocation2 + $0x4c] sm:$0xf] %vm560_vm1, %v339_v22  ;;  %v441_v16 = vsel %vm5491_vm7, %v433_v4, %v440_v53  ;;  %v508_v60 = vor.u32 %v506_v36, %v7803_v38  ;;  %v7805_v22 = vshrl.u32 %v7804_v7, 16  ;;  %v738_v12 = vld [vmem:[#allocation2 + $0x3c] sm:$0x1]  ;;  %v7809_v58 = vshrl.u32 %v7808_v2, 16 }
  0x56   : > { %611 = vst.msk [vmem:[#allocation2 + $0x58] sm:$0xf] %vm560_vm1, %v356_v28  ;;  %v458_v25 = vsel %vm5491_vm7, %v450_v14, %v457_v27  ;;  %v475_v17 = vsel %vm5491_vm7, %v467_v18, %v474_v1  ;;  %v7806_v28 = vld [vmem:[#allocation5_spill] sm:$0xff]  ;;  %v744_v4 = vld [vmem:[#allocation2 + $0x54] sm:$0x1]  ;;  %v7816_v38 = vld [vmem:[#allocation10_spill] sm:$0xff] }
  0x57   : > { %618 = vst.msk [vmem:[#allocation2 + $0x64] sm:$0xf] %vm560_vm1, %v373_v49  ;;  %v509_v19 = vsel %vm5491_vm7, %v501_v37, %v508_v60  ;;  %v727_v54 = vsel %vm5196_vm5, %v7805_v22, %v726_v43  ;;  %v7807_v45 = vshrl.u32 %v7806_v28, 16  ;;  %v741_v49 = vld [vmem:[#allocation2 + $0x48] sm:$0x1]  ;;  %v736_v3 = vsel %vm5196_vm5, %v7809_v58, %v735_v47  ;;  %v7814_v39 = vld [vmem:[#allocation9_spill] sm:$0xff] }
  0x58   : > { %625 = vst.msk [vmem:[#allocation2 + $0x70] sm:$0xf] %vm560_vm1, %v390_v41  ;;  %v7810_v41 = vld [vmem:[#allocation7_spill] sm:$0xff]  ;;  %v747_v14 = vld [vmem:[#allocation2 + $0x60] sm:$0x1]  ;;  %v7815_v1 = vshrl.u32 %v7814_v39, 16 }
  0x59   : > { %632 = vst.msk [vmem:[#allocation2 + $0x7c] sm:$0xf] %vm560_vm1, %v407_v57  ;;  %v733_v30 = vsel %vm5196_vm5, %v7807_v45, %v732_v20  ;;  %v7811_v32 = vshrl.u32 %v7810_v41, 16  ;;  %v7812_v57 = vld [vmem:[#allocation8_spill] sm:$0xff]  ;;  %v7817_v60 = vshrl.u32 %v7816_v38, 16  ;;  %v7822_v28 = vld [vmem:[#allocation13_spill] sm:$0xff] }
  0x5a   : > { %639 = vst.msk [vmem:[#allocation2 + $0x88] sm:$0xf] %vm560_vm1, %v424_v34  ;;  %v7813_v27 = vshrl.u32 %v7812_v57, 16  ;;  %v750_v34 = vld [vmem:[#allocation2 + $0x6c] sm:$0x1]  ;;  %v745_v37 = vsel %vm5196_vm5, %v7815_v1, %v744_v4  ;;  %v7820_v7 = vld [vmem:[#allocation12_spill] sm:$0xff] }
  0x5b   : > { %646 = vst.msk [vmem:[#allocation2 + $0x94] sm:$0xf] %vm560_vm1, %v441_v16  ;;  %v739_v53 = vsel %vm5196_vm5, %v7811_v32, %v738_v12  ;;  %v753_v16 = vld [vmem:[#allocation2 + $0x78] sm:$0x1]  ;;  %v756_v43 = vld [vmem:[#allocation2 + $0x84] sm:$0x1] }
  0x5c   : > { %653 = vst.msk [vmem:[#allocation2 + $0xa0] sm:$0xf] %vm560_vm1, %v458_v25  ;;  %v742_v18 = vsel %vm5196_vm5, %v7813_v27, %v741_v49  ;;  %v748_v25 = vsel %vm5196_vm5, %v7817_v60, %v747_v14  ;;  %v759_v47 = vld [vmem:[#allocation2 + $0x90] sm:$0x1]  ;;  %v7821_v22 = vshrl.u32 %v7820_v7, 16  ;;  %v7823_v45 = vshrl.u32 %v7822_v28, 16 }
  0x5d   : > { %660 = vst.msk [vmem:[#allocation2 + $0xac] sm:$0xf] %vm560_vm1, %v475_v17  ;;  %v7818_v17 = vld [vmem:[#allocation11_spill] sm:$0xff]  ;;  %v762_v12 = vld [vmem:[#allocation2 + $0x9c] sm:$0x1]  ;;  %v7824_v2 = vld [vmem:[#allocation14_spill] sm:$0xff] }
  0x5e   : > { %674 = vst.msk [vmem:[#allocation2 + $0xc4] sm:$0xf] %vm560_vm1, %v509_v19  ;;  %v7819_v20 = vshrl.u32 %v7818_v17, 16  ;;  %v765_v49 = vld [vmem:[#allocation2 + $0xa8] sm:$0x1]  ;;  %v7825_v58 = vshrl.u32 %v7824_v2, 16 }
  0x5f   : > { %728 = vst [vmem:[#allocation2 + $0xc] sm:$0x1] %v727_v54  ;;  %v754_v54 = vsel %vm5196_vm5, %v7821_v22, %v753_v16  ;;  %v771_v4 = vld [vmem:[#allocation2 + $0xc0] sm:$0x1]  ;;  %v4446_v41 = vrot.slane %v251_v61, 11  ;;  %v7826_v32 = vld [vmem:[#allocation15_spill] sm:$0xff] }
  0x60   : > { %734 = vst [vmem:[#allocation2 + $0x24] sm:$0x1] %v733_v30  ;;  %v751_v19 = vsel %vm5196_vm5, %v7819_v20, %v750_v34  ;;  %v757_v30 = vsel %vm5196_vm5, %v7823_v45, %v756_v43  ;;  %v823_v57 = vld [vmem:[#allocation2 + $0x14] sm:$0x1]  ;;  %v4448_v27 = vrot.slane %v285_v21, 11  ;;  %v4449_v11 = vrot.slane %v302_v0, 11 }
  0x61   : > { %737 = vst [vmem:[#allocation2 + $0x30] sm:$0x1] %v736_v3  ;;  %v760_v3 = vsel %vm5196_vm5, %v7825_v58, %v759_v47  ;;  %v829_v1 = vld [vmem:[#allocation2 + $0x2c] sm:$0x1]  ;;  %v7830_v61 = vld [vmem:[#allocation21_spill] sm:$0xff]  ;;  %v4450_v35 = vrot.slane %v319_v33, 11  ;;  %v824_v21 = vsel %vm5504_vm8, %v4446_v41, %v823_v57 }
  0x62   : > { %740 = vst [vmem:[#allocation2 + $0x3c] sm:$0x1] %v739_v53  ;;  %v7827_v53 = vshrl.u32 %v7826_v32, 16  ;;  %v832_v38 = vld [vmem:[#allocation2 + $0x38] sm:$0x1]  ;;  %v830_v62 = vsel %vm5504_vm8, %v4448_v27, %v829_v1  ;;  %v4452_v43 = vrot.slane %v353_v26, 11 }
  0x63   : > { %743 = vst [vmem:[#allocation2 + $0x48] sm:$0x1] %v742_v18  ;;  %v7828_v18 = vld [vmem:[#allocation19_spill] sm:$0xff]  ;;  %v835_v60 = vld [vmem:[#allocation2 + $0x44] sm:$0x1]  ;;  %v833_v6 = vsel %vm5504_vm8, %v4449_v11, %v832_v38  ;;  %v4453_v17 = vrot.slane %v370_v51, 11 }
  0x64   : > { %746 = vst [vmem:[#allocation2 + $0x54] sm:$0x1] %v745_v37  ;;  %v763_v14 = vsel %vm5196_vm5, %v7827_v53, %v762_v12  ;;  %v7829_v34 = vshrl.u32 %v7828_v18, 16  ;;  %v7831_v37 = vshrl.u32 %v7830_v61, 16  ;;  %v838_v0 = vld [vmem:[#allocation2 + $0x50] sm:$0x1]  ;;  %v836_v46 = vsel %vm5504_vm8, %v4450_v35, %v835_v60 }
  0x65   : > { %749 = vst [vmem:[#allocation2 + $0x60] sm:$0x1] %v748_v25  ;;  %v4451_v25 = vrot.slane %v336_v23, 11  ;;  %v841_v33 = vld [vmem:[#allocation2 + $0x5c] sm:$0x1]  ;;  %v4454_v20 = vrot.slane %v387_v9, 11 }
  0x66   : > { %752 = vst [vmem:[#allocation2 + $0x6c] sm:$0x1] %v751_v19  ;;  %v766_v39 = vsel %vm5196_vm5, %v7829_v34, %v765_v49  ;;  %v772_v16 = vsel %vm5196_vm5, %v7831_v37, %v771_v4  ;;  %v844_v23 = vld [vmem:[#allocation2 + $0x68] sm:$0x1]  ;;  %v847_v26 = vld [vmem:[#allocation2 + $0x74] sm:$0x1]  ;;  %v842_v42 = vsel %vm5504_vm8, %v4452_v43, %v841_v33 }
  0x67   : > { %755 = vst [vmem:[#allocation2 + $0x78] sm:$0x1] %v754_v54  ;;  %v839_v56 = vsel %vm5504_vm8, %v4451_v25, %v838_v0  ;;  %v4455_v19 = vrot.slane %v404_v15, 11  ;;  %v850_v51 = vld [vmem:[#allocation2 + $0x80] sm:$0x1]  ;;  %v4456_v47 = vrot.slane %v421_v8, 11  ;;  %v845_v50 = vsel %vm5504_vm8, %v4453_v17, %v844_v23 }
  0x68   : > { %758 = vst [vmem:[#allocation2 + $0x84] sm:$0x1] %v757_v30  ;;  %v853_v9 = vld [vmem:[#allocation2 + $0x8c] sm:$0x1]  ;;  %v4457_v7 = vrot.slane %v438_v31, 11  ;;  %v848_v13 = vsel %vm5504_vm8, %v4454_v20, %v847_v26  ;;  %v4458_v22 = vrot.slane %v455_v5, 11 }
  0x69   : > { %761 = vst [vmem:[#allocation2 + $0x90] sm:$0x1] %v760_v3  ;;  %v856_v15 = vld [vmem:[#allocation2 + $0x98] sm:$0x1]  ;;  %v851_v44 = vsel %vm5504_vm8, %v4455_v19, %v850_v51  ;;  %v859_v8 = vld [vmem:[#allocation2 + $0xa4] sm:$0x1]  ;;  %v854_v52 = vsel %vm5504_vm8, %v4456_v47, %v853_v9 }
  0x6a   : > { %764 = vst [vmem:[#allocation2 + $0x9c] sm:$0x1] %v763_v14  ;;  %v4459_v54 = vrot.slane %v472_v40, 11  ;;  %v862_v31 = vld [vmem:[#allocation2 + $0xb0] sm:$0x1]  ;;  %v4461_v12 = vrot.slane %v506_v36, 11  ;;  %v857_v59 = vsel %vm5504_vm8, %v4457_v7, %v856_v15  ;;  %v860_v28 = vsel %vm5504_vm8, %v4458_v22, %v859_v8 }
  0x6b   : > { %767 = vst [vmem:[#allocation2 + $0xa8] sm:$0x1] %v766_v39  ;;  %v868_v5 = vld [vmem:[#allocation2 + $0xc8] sm:$0x1]  ;;  %v872_v10 = vld [vmem:[#allocation2 + $0x18] sm:$0xf] }
  0x6c   : > { %773 = vst [vmem:[#allocation2 + $0xc0] sm:$0x1] %v772_v16  ;;  %v863_v63 = vsel %vm5504_vm8, %v4459_v54, %v862_v31  ;;  %v869_v40 = vsel %vm5504_vm8, %v4461_v12, %v868_v5  ;;  %v873_v36 = vld [vmem:[#allocation2 + $0x1c] sm:$0xf]  ;;  %v874_v45 = vld [vmem:[#allocation2 + $0x20] sm:$0x1] }
  0x6d   : > { %825 = vst [vmem:[#allocation2 + $0x14] sm:$0x1] %v824_v21  ;;  %v880_v30 = vld [vmem:[#allocation2 + $0xb4] sm:$0xf]  ;;  %v881_v49 = vld [vmem:[#allocation2 + $0xb8] sm:$0xf] }
  0x6e   : > { %831 = vst [vmem:[#allocation2 + $0x2c] sm:$0x1] %v830_v62  ;;  %v882_v2 = vld [vmem:[#allocation2 + $0xbc] sm:$0x1]  ;;  %v5763_v58 = vmov 0.0   ;;  %v5765_v3 = vmov 0.0  }
  0x6f   : > { %834 = vst [vmem:[#allocation2 + $0x38] sm:$0x1] %v833_v6 }
  0x70   : > { %837 = vst [vmem:[#allocation2 + $0x44] sm:$0x1] %v836_v46 }
  0x71   : > { %840 = vst [vmem:[#allocation2 + $0x50] sm:$0x1] %v839_v56 }
  0x72   : > { %843 = vst [vmem:[#allocation2 + $0x5c] sm:$0x1] %v842_v42 }
  0x73   : > { %846 = vst [vmem:[#allocation2 + $0x68] sm:$0x1] %v845_v50 }
  0x74   : > { %849 = vst [vmem:[#allocation2 + $0x74] sm:$0x1] %v848_v13 }
  0x75   : > { %852 = vst [vmem:[#allocation2 + $0x80] sm:$0x1] %v851_v44 }
  0x76   : > { %855 = vst [vmem:[#allocation2 + $0x8c] sm:$0x1] %v854_v52 }
  0x77   : > { %858 = vst [vmem:[#allocation2 + $0x98] sm:$0x1] %v857_v59 }
  0x78   : > { %861 = vst [vmem:[#allocation2 + $0xa4] sm:$0x1] %v860_v28 }
  0x79   : > { %864 = vst [vmem:[#allocation2 + $0xb0] sm:$0x1] %v863_v63 }
  0x7a   : > { %870 = vst [vmem:[#allocation2 + $0xc8] sm:$0x1] %v869_v40 }
  0x7b   : > { %875 = vst.msk [vmem:[#allocation2] sm:$0xf] %vm560_vm1, %v872_v10 }
  0x7c   : > { %876 = vst.msk [vmem:[#allocation2 + $0x4] sm:$0xf] %vm560_vm1, %v873_v36 }
  0x7d   : > { %878 = vst.msk [vmem:[#allocation2 + $0x8] sm:$0x1] %vm7726_vm3, %v874_v45 }
  0x7e   : > { %884 = vst.msk [vmem:[#allocation2 + $0xcc] sm:$0xf] %vm560_vm1, %v880_v30 }
  0x7f   : > { %885 = vst.msk [vmem:[#allocation2 + $0xd0] sm:$0xf] %vm560_vm1, %v881_v49 }
  0x80   : > { %886 = vst.msk [vmem:[#allocation2 + $0xd4] sm:$0x1] %vm7726_vm3, %v882_v2 }
  0x81 LB: >> { %s4674_s22 = smul.u32 96, %s5081_s21  ;;  %vm1204_vm9 = vcmask 1046528   ;;  %s5095_s24 = smov 24   ;;  %vm1067_vm10 = vsmask.f32 7424  ;;  %vm7725_vm11 = vcmask 1041408   ;;  %s5081_s21 = sphi %s5767_s21, %s892_s21   ;;  %v5077_v3 = vphi %v5765_v3, %v7833_v3   ;;  %v5073_v58 = vphi %v5763_v58, %v7832_v58  }
  0x82   : >> { %s5096_s25 = smov 12   ;;  %s5097_s26 = smov 8   ;;  %vm1757_vm12 = vcmask 31744   ;;  %vm1774_vm13 = vcmask 64512   ;;  %vm1791_vm14 = vcmask 97280   ;;  %vm1808_vm15 = vcmask 130048  }
  0x83   : >> { %s5779_s23 = scalar_lea.vmem [#allocation2], %s4674_s22  ;;  %s5098_s27 = smov 32   ;;  %vm1825_vm0 = vcmask 162816   ;;  %vm1842_vm2 = vcmask 195584   ;;  %vm7729_vm6 = vcmask 228352   ;;  %vm7727_vm3 = vcmask 293888  }
  0x84   : >> { %s5099_s28 = smov 4   ;;  %s5100_s29 = smov 20  }
  0x85   : >> { %s5101_s30 = smov 16   ;;  %s5102_s4 = smov 28  }
  0x86   : >> { %s4677_s11 = sshll.u32 %s5081_s21, 7  ;;  %s892_s21 = sadd.s32 1, %s5081_s21  }
  0x87   : >> { %v4467_v4 = vld [vmem:[%s5779_s23 + $0xc] sm:$0xff]   ;;  %v4789_v32 = vld [vmem:[%s5779_s23] sm:$0xf0]  ;;  %v915_v53 = vld [vmem:[%s5779_s23 + $0x8] sm:$0x1]  ;;  %s6198_s13 = scalar_lea.vmem [#allocation3], %s4677_s11 }
  0x88   : >> { %v5783_v41 = vld [vmem:[%s5779_s23 + $0xc] sm:$0xf0]  ;;  %v4790_v14 = vld [vmem:[%s5779_s23] sm:$0xe]  ;;  %v1051_v57 = vunpack.c.l.b16 %v915_v53  ;;  %v4813_v27 = vld [vmem:[%s5779_s23 + $0x18] sm:$0xf0]  ;;  %1285 = vrot.lane.b32.xlu1 %v4467_v4, %s5096_s25 }
  0x89   : >> { %v4517_v18 = vld [vmem:[%s5779_s23 + $0x20] sm:$0x1]  ;;  %v4791_v34 = vor.u32 %v4790_v14, %v4789_v32  ;;  %v4814_v39 = vld [vmem:[%s5779_s23 + $0x18] sm:$0xe]  ;;  %v4483_v61 = vld [vmem:[%s5779_s23 + $0x14] sm:$0x1] }
  0x8a   : >> { %v1565_v1 = vunpack.c.l.b16 %v4517_v18  ;;  %v5792_v11 = vld [vmem:[%s5779_s23] sm:$0xff]   ;;  %v1059_v37 = vpack.c.b16 %v1051_v57, %v1051_v57  ;;  %v4815_v16 = vor.u32 %v4814_v39, %v4813_v27  ;;  %v5797_v35 = vld [vmem:[%s5779_s23 + $0x18] sm:$0xff]   ;;  %v1309_v62 = vunpack.c.l.b16 %v4483_v61  ;;  %v4968_v13 = vld [vmem:[%s5779_s23 + $0xc] sm:$0xe]  ;;  %p889_p4 = scmp.ge.s32.totalorder %s892_s21, 2  }
  0x8b   : >> { %v1069_v38 = vshrl.u32 %v5792_v11, 16  ;;  %v1205_v21 = vrot.slane %v4791_v34, 1  ;;  %v1071_v25 = vshll.u32 %v5792_v11, 16  ;;  %1541 = vrot.lane.b32.xlu2 %v5797_v35, %s5095_s24  ;;  %v1328_v0 = vshll.u32 %v4467_v4, 16  ;;  %v919_v20 = vld [vmem:[%s5779_s23 + $0x38] sm:$0x1] }
  0x8c   : >> { %v1573_v60 = vpack.c.b16 %v1565_v1, %v1565_v1  ;;  %v1206_v43 = vrot.slane %v1059_v37, 1  ;;  %v1076_v6 = vshll.u32 %v1059_v37, 16  ;;  %v1717_v33 = vrot.slane %v4815_v16, 1  ;;  %v917_v47 = vld [vmem:[%s5779_s23 + $0x20] sm:$0x1]  ;;  %v5811_v22 = vld [vmem:[%s5779_s23 + $0x30] sm:$0xff]  }
  0x8d   : >> { %v1073_v46 = vrot.slane %v1071_v25, 1  ;;  %v1317_v23 = vpack.c.b16 %v1309_v62, %v1309_v62  ;;  %v1326_v42 = vshrl.u32 %v4467_v4, 16  ;;  %v1330_v51 = vrot.slane %v1328_v0, 1  ;;  %v5815_v54 = vld [vmem:[%s5779_s23 + $0x24] sm:$0xff]   ;;  %v4485_v30 = vld [vmem:[%s5779_s23 + $0x2c] sm:$0x1] }
  0x8e   : >> { %v1718_v17 = vrot.slane %v1573_v60, 1  ;;  %v1207_v56 = vsel %vm1204_vm9, %v1205_v21, %v1206_v43  ;;  %v1078_v19 = vrot.slane %v1076_v6, 1  ;;  %v1584_v9 = vshll.u32 %v5797_v35, 16  ;;  %v5818_v52 = vld [vmem:[%s5779_s23 + $0x24] sm:$0xf0]  ;;  %v4475_v1 = vld [vmem:[%s5779_s23 + $0x3c] sm:$0xff]  }
  0x8f   : >> { %1229 = vrot.lane.b32.xlu0 %v1207_v56, %s5097_s26  ;;  %v1074_v26 = vor.u32 %v1073_v46, %v1069_v38  ;;  %v1333_v50 = vshll.u32 %v1317_v23, 16  ;;  %v1055_v7 = vunpack.c.l.b16 %v919_v20  ;;  %v1582_v44 = vshrl.u32 %v5797_v35, 16  ;;  %v4793_v18 = vld [vmem:[%s5779_s23 + $0x18] sm:$0xe]  ;;  %v5839_v61 = vld [vmem:[%s5779_s23 + $0x3c] sm:$0xf0] }
  0x90   : >> { %v1719_v15 = vsel %vm1204_vm9, %v1717_v33, %v1718_v17  ;;  %v1053_v8 = vunpack.c.l.b16 %v917_v47  ;;  %v1331_v12 = vor.u32 %v1330_v51, %v1326_v42  ;;  %v1589_v59 = vshll.u32 %v1573_v60, 16  ;;  %v4487_v0 = vld [vmem:[%s5779_s23 + $0x44] sm:$0x1]  ;;  %v4795_v56 = vld [vmem:[%s5779_s23 + $0x30] sm:$0xf0]  ;;  %s7010_s14 = smov (%p889_p4), 0  }
  0x91   : >> { %v1079_v31 = vsel %vm1067_vm10, %v1074_v26, %v1078_v19  ;;  %1741 = vrot.lane.b32.xlu1 %v1719_v15, %s5098_s27  ;;  %v1335_v5 = vrot.slane %v1333_v50, 1  ;;  %v1586_v28 = vrot.slane %v1584_v9, 1  ;;  %v5822_v63 = vpack.c.b16 %v1055_v7, %v1055_v7  ;;  %v4796_v26 = vld [vmem:[%s5779_s23 + $0x30] sm:$0xe]  ;;  %v4519_v15 = vld [vmem:[%s5779_s23 + $0x38] sm:$0x1] }
  0x92   : >> { %v1119_v40 = vshll.u32 %v5811_v22, 16  ;;  %v1061_v10 = vpack.c.b16 %v1053_v8, %v1053_v8  ;;  %v4969_v36 = vor.u32 %v4968_v13, %v5783_v41  ;;  %v1462_v45 = vrot.slane %v1317_v23, 1  ;;  %v4792_v41 = vld [vmem:[%s5779_s23 + $0x18] sm:$0xf0]  ;;  %v4971_v13 = vld [vmem:[%s5779_s23 + $0x24] sm:$0xe] }
  0x93   : >> { %v1117_v49 = vshrl.u32 %v5811_v22, 16  ;;  %v5829_v32 = vor.u32 %v1586_v28, %v1582_v44  ;;  %v1591_v53 = vrot.slane %v1589_v59, 1  ;;  %v1124_v57 = vshll.u32 %v5822_v63, 16 }
  0x94   : >> { %v1461_v2 = vrot.slane %v4969_v36, 1  ;;  %v1100_v4 = vshll.u32 %v1061_v10, 16  ;;  %v1121_v14 = vrot.slane %v1119_v40, 1  ;;  %v1336_v27 = vsel %vm1067_vm10, %v1331_v12, %v1335_v5  ;;  %v5865_v40 = vld [vmem:[%s5779_s23 + $0xc] sm:$0xff]  }
  0x95   : >> { %v1311_v39 = vunpack.c.l.b16 %v4485_v30  ;;  %v1592_v16 = vsel %vm1067_vm10, %v5829_v32, %v1591_v53  ;;  %v1126_v21 = vrot.slane %v1124_v57, 1  ;;  %v4794_v60 = vor.u32 %v4793_v18, %v4792_v41 }
  0x96   : >> { %v1463_v34 = vsel %vm1204_vm9, %v1461_v2, %v1462_v45  ;;  %v1102_v37 = vrot.slane %v1100_v4, 1  ;;  %v5844_v38 = vor.u32 %v1121_v14, %v1117_v49  ;;  %v1352_v62 = vshll.u32 %v5815_v54, 16  ;;  %v4974_v2 = vld [vmem:[%s5779_s23 + $0x3c] sm:$0xe]  ;;  %v916_v4 = vld [vmem:[%s5779_s23 + $0x14] sm:$0x1] }
  0x97   : >> { %1164 = vrot.lane.b32.xlu0 %v1079_v31, %s5099_s28  ;;  %1485 = vrot.lane.b32.xlu2 %v1463_v34, %s5100_s29  ;;  %v1319_v25 = vpack.c.b16 %v1311_v39, %v1311_v39  ;;  %v1211_v33 = vrot.slane %v4794_v60, 1  ;;  %v1212_v17 = vrot.slane %v1061_v10, 1  ;;  %v1350_v46 = vshrl.u32 %v5815_v54, 16  ;;  %v5868_v10 = vld [vmem:[%s5779_s23 + $0xc] sm:$0xf0] }
  0x98   : >> { %v1103_v43 = vsel %vm1067_vm10, %v5829_v32, %v1102_v37  ;;  %v1127_v6 = vsel %vm1067_vm10, %v5844_v38, %v1126_v21  ;;  %v1354_v23 = vrot.slane %v1352_v62, 1  ;;  %v1313_v19 = vunpack.c.l.b16 %v4487_v0  ;;  %v4521_v37 = vld [vmem:[%s5779_s23 + $0x50] sm:$0x1]  ;;  %v4816_v0 = vld [vmem:[%s5779_s23 + $0x30] sm:$0xf0] }
  0x99   : >> { %1421 = vrot.lane.b32.xlu1 %v1336_v27, %s5101_s30  ;;  %v1357_v20 = vshll.u32 %v1319_v25, 16  ;;  %v1213_v42 = vsel %vm1204_vm9, %v1211_v33, %v1212_v17  ;;  %v4797_v51 = vor.u32 %v4796_v26, %v4795_v56  ;;  %v1376_v7 = vshll.u32 %v4475_v1, 16  ;;  %v4977_v26 = vld [vmem:[%s5779_s23 + $0xc] sm:$0xe] }
  0x9a   : >> { %v1355_v47 = vor.u32 %v1354_v23, %v1350_v46  ;;  %v1321_v9 = vpack.c.b16 %v1313_v19, %v1313_v19  ;;  %v1218_v8 = vrot.slane %v5822_v63, 1  ;;  %v1567_v31 = vunpack.c.l.b16 %v4519_v15  ;;  %v4819_v19 = vld [vmem:[%s5779_s23 + $0x48] sm:$0xf0] }
  0x9b   : >> { %v1359_v50 = vrot.slane %v1357_v20, 1  ;;  %v1217_v44 = vrot.slane %v4797_v51, 1  ;;  %v1374_v59 = vshrl.u32 %v4475_v1, 16  ;;  %v1378_v5 = vrot.slane %v1376_v7, 1  ;;  %v921_v51 = vld [vmem:[%s5779_s23 + $0x50] sm:$0x1] }
  0x9c   : >> { %v1381_v28 = vshll.u32 %v1321_v9, 16  ;;  %v4972_v63 = vor.u32 %v4971_v13, %v5818_v52  ;;  %v1575_v49 = vpack.c.b16 %v1567_v31, %v1567_v31  ;;  %v1468_v14 = vrot.slane %v1319_v25, 1 }
  0x9d   : >> { %v1360_v12 = vsel %vm1067_vm10, %v1355_v47, %v1359_v50  ;;  %v1219_v36 = vsel %vm1204_vm9, %v1217_v44, %v1218_v8  ;;  %v1379_v45 = vor.u32 %v1378_v5, %v1374_v59  ;;  %v1052_v27 = vunpack.c.l.b16 %v916_v4 }
  0x9e   : >> { %v1383_v30 = vrot.slane %v1381_v28, 1  ;;  %v1467_v53 = vrot.slane %v4972_v63, 1  ;;  %v4975_v41 = vor.u32 %v4974_v2, %v5839_v61  ;;  %v1083_v39 = vshll.u32 %v5865_v40, 16  ;;  %v4798_v63 = vld [vmem:[%s5779_s23 + $0x48] sm:$0xf0] }
  0x9f   : >> { %1677 = vrot.lane.b32.xlu0 %v1592_v16, %s5102_s4  ;;  %1168 = vrot.lane.b32.xlu2 %v1103_v43, %s5099_s28  ;;  %v1060_v34 = vpack.c.b16 %v1052_v27, %v1052_v27  ;;  %v1474_v21 = vrot.slane %v1321_v9, 1  ;;  %v1081_v60 = vshrl.u32 %v5865_v40, 16  ;;  %v4817_v43 = vld [vmem:[%s5779_s23 + $0x30] sm:$0xe]  ;;  %v1724_v13 = vrot.slane %v1575_v49, 1  ;;  %v4479_v27 = vld [vmem:[%s5779_s23 + $0x54] sm:$0xff]  }
  0xa0   : >> { %v1384_v57 = vsel %vm1067_vm10, %v1379_v45, %v1383_v30  ;;  %v1469_v52 = vsel %vm1204_vm9, %v1467_v53, %v1468_v14  ;;  %v1473_v16 = vrot.slane %v4975_v41, 1  ;;  %v1085_v61 = vrot.slane %v1083_v39, 1  ;;  %v4799_v45 = vld [vmem:[%s5779_s23 + $0x48] sm:$0xe] }
  0xa1   : >> { %1172 = vrot.lane.b32.xlu1 %v1127_v6, %s5099_s28  ;;  %v1088_v62 = vshll.u32 %v1060_v34, 16  ;;  %v1569_v6 = vunpack.c.l.b16 %v4521_v37  ;;  %v4818_v46 = vor.u32 %v4817_v43, %v4816_v0  ;;  %v1057_v8 = vunpack.c.l.b16 %v921_v51 }
  0xa2   : >> { %v1475_v17 = vsel %vm1204_vm9, %v1473_v16, %v1474_v21  ;;  %v1086_v23 = vor.u32 %v1085_v61, %v1081_v60  ;;  %v4978_v5 = vor.u32 %v4977_v26, %v5868_v10  ;;  %v1209_v14 = vrot.slane %v1060_v34, 1  ;;  %v4801_v34 = vld [vmem:[%s5779_s23 + $0x18] sm:$0xf0]  ;;  %v4802_v21 = vld [vmem:[%s5779_s23 + $0x18] sm:$0xe] }
  0xa3   : >> { %v1090_v20 = vrot.slane %v1088_v62, 1  ;;  %v1577_v56 = vpack.c.b16 %v1569_v6, %v1569_v6  ;;  %v1723_v7 = vrot.slane %v4818_v46, 1  ;;  %v1065_v30 = vpack.c.b16 %v1057_v8, %v1057_v8  ;;  %v4489_v60 = vld [vmem:[%s5779_s23 + $0x5c] sm:$0x1]  ;;  %v4503_v6 = vld [vmem:[%s5779_s23 + $0x24] sm:$0xff]  }
  0xa4   : >> { %v1208_v53 = vrot.slane %v4978_v5, 1  ;;  %v4800_v10 = vor.u32 %v4799_v45, %v4798_v63  ;;  %v4803_v0 = vor.u32 %v4802_v21, %v4801_v34  ;;  %v1315_v43 = vunpack.c.l.b16 %v4489_v60  ;;  %v5946_v8 = vld [vmem:[%s5779_s23 + $0x24] sm:$0xff]   ;;  %v5966_v21 = vld [vmem:[%s5779_s23 + $0x3c] sm:$0xff]  }
  0xa5   : >> { %v1637_v9 = vshll.u32 %v1577_v56, 16  ;;  %v1091_v15 = vsel %vm1067_vm10, %v1086_v23, %v1090_v20  ;;  %v1725_v59 = vsel %vm1204_vm9, %v1723_v7, %v1724_v13  ;;  %v1148_v4 = vshll.u32 %v1065_v30, 16  ;;  %v5969_v60 = vld [vmem:[%s5779_s23 + $0x3c] sm:$0xf0] }
  0xa6   : >> { %v1223_v39 = vrot.slane %v4800_v10, 1  ;;  %v1224_v37 = vrot.slane %v1065_v30, 1  ;;  %v1400_v46 = vshll.u32 %v4479_v27, 16  ;;  %v1464_v20 = vrot.slane %v4803_v0, 1  ;;  %v4986_v10 = vld [vmem:[%s5779_s23 + $0x24] sm:$0xe] }
  0xa7   : >> { %1233 = vrot.lane.b32.xlu0 %v1213_v42, %s5097_s26  ;;  %1289 = vrot.lane.b32.xlu2 %v5815_v54, %s5096_s25  ;;  %v1613_v54 = vshll.u32 %v1575_v49, 16  ;;  %v4820_v42 = vld [vmem:[%s5779_s23 + $0x48] sm:$0xe]  ;;  %v4484_v49 = vld [vmem:[%s5779_s23 + $0x20] sm:$0x1]  ;;  %v1150_v41 = vrot.slane %v1148_v4, 1  ;;  %v1323_v26 = vpack.c.b16 %v1315_v43, %v1315_v43 }
  0xa8   : >> { %v4821_v44 = vor.u32 %v4820_v42, %v4819_v19  ;;  %v1225_v62 = vsel %vm1204_vm9, %v1223_v39, %v1224_v37  ;;  %v4518_v19 = vld [vmem:[%s5779_s23 + $0x2c] sm:$0x1]  ;;  %v1398_v51 = vshrl.u32 %v4479_v27, 16  ;;  %v1594_v63 = vshrl.u32 %v4503_v6, 16 }
  0xa9   : >> { %1425 = vrot.lane.b32.xlu1 %v1360_v12, %s5101_s30  ;;  %v1615_v18 = vrot.slane %v1613_v54, 1  ;;  %v1639_v12 = vrot.slane %v1637_v9, 1  ;;  %v1310_v54 = vunpack.c.l.b16 %v4484_v49  ;;  %v1566_v9 = vunpack.c.l.b16 %v4518_v19  ;;  %v4523_v49 = vld [vmem:[%s5779_s23 + $0x68] sm:$0x1] }
  0xaa   : >> { %v1729_v28 = vrot.slane %v4821_v44, 1  ;;  %v4983_v44 = vld [vmem:[%s5779_s23 + $0x24] sm:$0xe]  ;;  %v1105_v43 = vshrl.u32 %v5946_v8, 16  ;;  %v7006_v48 = vmov (%p889_p4), 0.0  }
  0xab   : >> { %v1616_v25 = vsel %vm1067_vm10, %v5844_v38, %v1615_v18  ;;  %v1210_v18 = vsel %vm1204_vm9, %v1208_v53, %v1209_v14  ;;  %v1318_v16 = vpack.c.b16 %v1310_v54, %v1310_v54 }
  0xad   : >> { %v1345_v61 = vshll.u32 %v1318_v16, 16 }
  0xaf   : >> { %1237 = vrot.lane.b32.xlu0 %v1219_v36, %s5097_s26  ;;  %1293 = vrot.lane.b32.xlu2 %v4475_v1, %s5096_s25  ;;  %v5888_v1 = vld [vmem:[%s5779_s23 + $0x48] sm:$0xff]   ;;  %v1730_v36 = vrot.slane %v1577_v56, 1  ;;  %v1347_v23 = vrot.slane %v1345_v61, 1  ;;  %v1465_v56 = vrot.slane %v1318_v16, 1 }
  0xb0   : >> { %v1632_v33 = vshll.u32 %v5888_v1, 16  ;;  %v1630_v47 = vshrl.u32 %v5888_v1, 16 }
  0xb1   : >> { %1429 = vrot.lane.b32.xlu1 %v1384_v57, %s5101_s30  ;;  %v1731_v57 = vsel %vm1204_vm9, %v1729_v28, %v1730_v36  ;;  %v1348_v42 = vsel %vm1067_vm10, %v5829_v32, %v1347_v23  ;;  %v1466_v7 = vsel %vm1204_vm9, %v1464_v20, %v1465_v56  ;;  %v1574_v32 = vpack.c.b16 %v1566_v9, %v1566_v9  ;;  %v918_v36 = vld [vmem:[%s5779_s23 + $0x2c] sm:$0x1]  ;;  %v920_v56 = vld [vmem:[%s5779_s23 + $0x44] sm:$0x1] }
  0xb2   : >> { %v1634_v50 = vrot.slane %v1632_v33, 1  ;;  %v4982_v33 = vld [vmem:[%s5779_s23 + $0x24] sm:$0xf0]  ;;  %v1480_v28 = vrot.slane %v1323_v26, 1  ;;  %v1054_v14 = vunpack.c.l.b16 %v918_v36  ;;  %v1056_v9 = vunpack.c.l.b16 %v920_v56 }
  0xb3   : >> { %v1601_v30 = vshll.u32 %v1574_v32, 16  ;;  %v4984_v53 = vor.u32 %v4983_v44, %v4982_v33  ;;  %v1721_v16 = vrot.slane %v1574_v32, 1  ;;  %v1131_v36 = vshll.u32 %v5966_v21, 16 }
  0xb4   : >> { %v5908_v31 = vor.u32 %v1634_v50, %v1630_v47  ;;  %v1402_v47 = vrot.slane %v1400_v46, 1  ;;  %v1405_v50 = vshll.u32 %v1323_v26, 16  ;;  %v1062_v34 = vpack.c.b16 %v1054_v14, %v1054_v14 }
  0xb5   : >> { %v1720_v37 = vrot.slane %v4984_v53, 1  ;;  %v1129_v53 = vshrl.u32 %v5966_v21, 16  ;;  %v1133_v14 = vrot.slane %v1131_v36, 1 }
  0xb6   : >> { %v1640_v2 = vsel %vm1067_vm10, %v5908_v31, %v1639_v12  ;;  %v4985_v12 = vld [vmem:[%s5779_s23 + $0x24] sm:$0xf0]  ;;  %v1215_v44 = vrot.slane %v1062_v34, 1 }
  0xb7   : >> { %1489 = vrot.lane.b32.xlu0 %v1469_v52, %s5100_s29  ;;  %1545 = vrot.lane.b32.xlu2 %v5811_v22, %s5095_s24  ;;  %v4979_v52 = vld [vmem:[%s5779_s23 + $0x54] sm:$0xf0]  ;;  %v1722_v23 = vsel %vm1204_vm9, %v1720_v37, %v1721_v16  ;;  %v4987_v20 = vor.u32 %v4986_v10, %v4985_v12 }
  0xb9   : >> { %1681 = vrot.lane.b32.xlu1 %v1616_v25, %s5102_s4  ;;  %v1151_v25 = vsel %vm1067_vm10, %v5908_v31, %v1150_v41  ;;  %v5958_v41 = vld [vmem:[%s5779_s23 + $0x60] sm:$0xff]  }
  0xba   : >> { %v1654_v26 = vshrl.u32 %v5958_v41, 16 }
  0xbf   : >> { %1493 = vrot.lane.b32.xlu0 %v1475_v17, %s5100_s29  ;;  %1549 = vrot.lane.b32.xlu2 %v5888_v1, %s5095_s24  ;;  %v4980_v17 = vld [vmem:[%s5779_s23 + $0x54] sm:$0xe] }
  0xc0   : >> { %v4981_v13 = vor.u32 %v4980_v17, %v4979_v52  ;;  %v1603_v52 = vrot.slane %v1601_v30, 1  ;;  %v1112_v17 = vshll.u32 %v1062_v34, 16  ;;  %v4486_v30 = vld [vmem:[%s5779_s23 + $0x38] sm:$0x1] }
  0xc1   : >> { %1166 = vrot.lane.b32.xlu1 %v1091_v15, %s5099_s28  ;;  %v1596_v15 = vshll.u32 %v4503_v6, 16 }
  0xc2   : >> { %v1479_v5 = vrot.slane %v4981_v13, 1  ;;  %v4823_v13 = vld [vmem:[%s5779_s23 + $0x60] sm:$0xe] }
  0xc3   : >> { %v1598_v45 = vrot.slane %v1596_v15, 1  ;;  %v1214_v15 = vrot.slane %v4987_v20, 1 }
  0xc4   : >> { %v1481_v4 = vsel %vm1204_vm9, %v1479_v5, %v1480_v28  ;;  %v4675_v5 = vld [vmem:[%s7686_s1] sm:$0xff]  ;;  %v1064_v28 = vpack.c.b16 %v1056_v9, %v1056_v9  ;;  %v6036_v9 = vld [vmem:[%s5779_s23 + $0x54] sm:$0xf0] }
  0xc5   : >> { %v1599_v54 = vor.u32 %v1598_v45, %v1594_v63  ;;  %v4989_v63 = vld [vmem:[%s5779_s23 + $0x3c] sm:$0xe]  ;;  %v1216_v45 = vsel %vm1204_vm9, %v1214_v15, %v1215_v44  ;;  %v4807_v15 = vld [vmem:[%s5779_s23 + $0x48] sm:$0xf0]  ;;  %v4808_v44 = vld [vmem:[%s5779_s23 + $0x48] sm:$0xe] }
  0xc6   : >> { %v1136_v10 = vshll.u32 %v1064_v28, 16  ;;  %v4809_v36 = vor.u32 %v4808_v44, %v4807_v15 }
  0xc7   : >> { %1745 = vrot.lane.b32.xlu0 %v1725_v59, %s5098_s27  ;;  %1685 = vrot.lane.b32.xlu2 %v1640_v2, %s5102_s4  ;;  %v1407_v59 = vrot.slane %v1405_v50, 1  ;;  %v4676_v50 = vld [vmem:[%s7686_s1 + $0x8] sm:$0xff] }
  0xc8   : >> { %v1138_v37 = vrot.slane %v1136_v10, 1  ;;  %v6061_v10 = vld [vmem:[%s5779_s23 + $0x54] sm:$0xff]  }
  0xc9   : >> { %1749 = vrot.lane.b32.xlu1 %v1731_v57, %s5098_s27  ;;  %v1571_v57 = vunpack.c.l.b16 %v4523_v49 }
  0xcb   : >> { %v5972_v61 = vpack.c.b16 %v1571_v57, %v1571_v57 }
  0xcf   : >> { %1231 = vrot.lane.b32.xlu0 %v1210_v18, %s5097_s26  ;;  %1176 = vrot.lane.b32.xlu2 %v1151_v25, %s5099_s28  ;;  %v1107_v18 = vshll.u32 %v5946_v8, 16  ;;  %v1656_v25 = vshll.u32 %v5958_v41, 16 }
  0xd1   : >> { %1241 = vrot.lane.b32.xlu1 %v1225_v62, %s5097_s26  ;;  %v1604_v62 = vsel %vm1067_vm10, %v1599_v54, %v1603_v52  ;;  %v1109_v33 = vrot.slane %v1107_v18, 1  ;;  %v1312_v54 = vunpack.c.l.b16 %v4486_v30  ;;  %v4488_v52 = vld [vmem:[%s5779_s23 + $0x50] sm:$0x1] }
  0xd2   : >> { %v1314_v34 = vunpack.c.l.b16 %v4488_v52  ;;  %v1476_v52 = vrot.slane %v4809_v36, 1 }
  0xd3   : >> { %v1320_v16 = vpack.c.b16 %v1312_v54, %v1312_v54  ;;  %v6064_v54 = vld [vmem:[%s5779_s23 + $0x54] sm:$0xf0] }
  0xd4   : >> { %v1322_v20 = vpack.c.b16 %v1314_v34, %v1314_v34 }
  0xd7   : >> { %1287 = vrot.lane.b32.xlu0 %v5797_v35, %s5096_s25  ;;  %1423 = vrot.lane.b32.xlu2 %v1348_v42, %s5101_s30  ;;  %v1403_v35 = vor.u32 %v1402_v47, %v1398_v51  ;;  %v1661_v42 = vshll.u32 %v5972_v61, 16  ;;  %v1110_v51 = vor.u32 %v1109_v33, %v1105_v43  ;;  %v1114_v47 = vrot.slane %v1112_v17, 1  ;;  %v4805_v33 = vld [vmem:[%s5779_s23 + $0x30] sm:$0xe] }
  0xd9   : >> { %1487 = vrot.lane.b32.xlu1 %v1466_v7, %s5100_s29  ;;  %v1408_v2 = vsel %vm1067_vm10, %v1403_v35, %v1407_v59  ;;  %v4822_v7 = vld [vmem:[%s5779_s23 + $0x60] sm:$0xf0]  ;;  %v1663_v35 = vrot.slane %v1661_v42, 1  ;;  %v1115_v59 = vsel %vm1067_vm10, %v1110_v51, %v1114_v47  ;;  %v1393_v47 = vshll.u32 %v1322_v20, 16 }
  0xda   : >> { %v4824_v32 = vor.u32 %v4823_v13, %v4822_v7  ;;  %v4520_v51 = vld [vmem:[%s5779_s23 + $0x44] sm:$0x1]  ;;  %v1471_v13 = vrot.slane %v1320_v16, 1 }
  0xdf   : >> { %1297 = vrot.lane.b32.xlu0 %v4479_v27, %s5096_s25  ;;  %1433 = vrot.lane.b32.xlu2 %v1408_v2, %s5101_s30  ;;  %v1897_v27 = vld [vmem:[%s7686_s1 + $0x10] sm:$0x3]  ;;  %v1735_v2 = vrot.slane %v4824_v32, 1  ;;  %v1568_v32 = vunpack.c.l.b16 %v4520_v51 }
  0xe0   : >> { %v1907_v39 = vunpack.c.l.b16 %v1897_v27  ;;  %v4990_v27 = vor.u32 %v4989_v63, %v5969_v60  ;;  %v4804_v60 = vld [vmem:[%s5779_s23 + $0x30] sm:$0xf0] }
  0xe1   : >> { %1497 = vrot.lane.b32.xlu1 %v1481_v4, %s5100_s29  ;;  %v1736_v4 = vrot.slane %v5972_v61, 1  ;;  %v1221_v61 = vrot.slane %v1064_v28, 1  ;;  %v1395_v28 = vrot.slane %v1393_v47, 1  ;;  %v6050_v30 = vpack.c.b16 %v1568_v32, %v1568_v32 }
  0xe2   : >> { %v1910_v0 = vpack.c.b16 %v1907_v39, %v1907_v39  ;;  %v1134_v39 = vor.u32 %v1133_v14, %v1129_v53  ;;  %v4995_v14 = vld [vmem:[%s5779_s23 + $0x54] sm:$0xe] }
  0xe3   : >> { %v1737_v18 = vsel %vm1204_vm9, %v1735_v2, %v1736_v4  ;;  %v4522_v2 = vld [vmem:[%s5779_s23 + $0x5c] sm:$0x1]  ;;  %v1396_v53 = vsel %vm1067_vm10, %v5908_v31, %v1395_v28  ;;  %v1625_v31 = vshll.u32 %v6050_v30, 16  ;;  %v4998_v28 = vld [vmem:[%s5779_s23 + $0x54] sm:$0xe] }
  0xe4   : >> { %v1932_v46 = vsel %vm7725_vm11, %v1910_v0, 0  ;;  %v1369_v0 = vshll.u32 %v1320_v16, 16  ;;  %v1570_v16 = vunpack.c.l.b16 %v4522_v2  ;;  %vm7728_vm11 = vcmask 261120  }
  0xe5   : >> { %1939 = vmatpush.bf16.msra.mxu0 %v1932_v46  ;;  %4872 = vmatpush.bf16.msra.mxu1 %v1932_v46  ;;  %v5981_v19 = vpop.permute.xlu2 %1541 }
  0xe6   : >> { %4873 = vmatpush.bf16.msra.mxu2 %v1932_v46  ;;  %4874 = vmatpush.bf16.msra.mxu3 %v1932_v46  ;;  %v6024_v46 = vld [vmem:[%s5779_s23 + $0x3c] sm:$0xff]  }
  0xe7   : >> { %1543 = vrot.lane.b32.xlu0 %v4503_v6, %s5095_s24  ;;  %1679 = vrot.lane.b32.xlu2 %v1604_v62, %s5102_s4  ;;  %v1658_v6 = vrot.slane %v1656_v25, 1  ;;  %v1220_v25 = vrot.slane %v4990_v27, 1  ;;  %v1139_v62 = vsel %vm1067_vm10, %v1134_v39, %v1138_v37  ;;  %v1477_v27 = vrot.slane %v1322_v20, 1 }
  0xe9   : >> { %1743 = vrot.lane.b32.xlu1 %v1722_v23, %s5098_s27  ;;  %1940 = vmatpush.bf16.msra.mxu0 %v4676_v50  ;;  %v5991_v12 = vor.u32 %v1658_v6, %v1654_v26  ;;  %v6027_v23 = vld [vmem:[%s5779_s23 + $0x3c] sm:$0xf0]  ;;  %v1222_v56 = vsel %vm1204_vm9, %v1220_v25, %v1221_v61  ;;  %v4806_v26 = vor.u32 %v4805_v33, %v4804_v60  ;;  %v1371_v6 = vrot.slane %v1369_v0, 1 }
  0xea   : >> { %4875 = vmatpush.bf16.msra.mxu1 %v4676_v50  ;;  %4876 = vmatpush.bf16.msra.mxu2 %v4676_v50  ;;  %v1478_v60 = vsel %vm1204_vm9, %v1476_v52, %v1477_v27  ;;  %v5000_v27 = vld [vmem:[%s5779_s23 + $0x6c] sm:$0xf0] }
  0xeb   : >> { %4877 = vmatpush.bf16.msra.mxu3 %v4676_v50  ;;  %v1664_v49 = vsel %vm1067_vm10, %v5991_v12, %v1663_v35  ;;  %v6033_v50 = vld [vmem:[%s5779_s23 + $0x54] sm:$0xff]   ;;  %v1470_v7 = vrot.slane %v4806_v26, 1  ;;  %v1372_v35 = vsel %vm1067_vm10, %v5844_v38, %v1371_v6  ;;  %v4992_v38 = vld [vmem:[%s5779_s23 + $0x3c] sm:$0xe]  ;;  %v1578_v26 = vpack.c.b16 %v1570_v16, %v1570_v16 }
  0xec   : >> { %v1644_v61 = vshll.u32 %v6033_v50, 16  ;;  %v4993_v33 = vor.u32 %v4992_v38, %v6027_v23  ;;  %v1153_v38 = vshrl.u32 %v6061_v10, 16  ;;  %v4999_v16 = vor.u32 %v4998_v28, %v6064_v54 }
  0xed   : >> { %1941 = vmatpush.bf16.msra.mxu0 %v4675_v5  ;;  %v1472_v63 = vsel %vm1204_vm9, %v1470_v7, %v1471_v13  ;;  %v1727_v7 = vrot.slane %v6050_v30, 1  ;;  %v1155_v13 = vshll.u32 %v6061_v10, 16  ;;  %v1649_v44 = vshll.u32 %v1578_v26, 16 }
  0xee   : >> { %4878 = vmatpush.bf16.msra.mxu1 %v4675_v5  ;;  %4879 = vmatpush.bf16.msra.mxu2 %v4675_v5  ;;  %v1646_v15 = vrot.slane %v1644_v61, 1 }
  0xef   : >> { %1553 = vrot.lane.b32.xlu0 %v5958_v41, %s5095_s24  ;;  %1170 = vrot.lane.b32.xlu2 %v1115_v59, %s5099_s28 }
  0xf0   : >> { %4880 = vmatpush.bf16.msra.mxu3 %v4675_v5 }
  0xf1   : >> { %1235 = vrot.lane.b32.xlu1 %v1216_v45, %s5097_s26  ;;  %v6009_v57 = vpop.permute.xlu2 %1485  ;;  %v1620_v45 = vshll.u32 %v6024_v46, 16 }
  0xf3   : >> { %v1622_v39 = vrot.slane %v1620_v45, 1  ;;  %v4490_v45 = vld [vmem:[%s5779_s23 + $0x68] sm:$0x1] }
  0xf4   : >> { %v1316_v52 = vunpack.c.l.b16 %v4490_v45 }
  0xf7   : >> { %1689 = vrot.lane.b32.xlu0 %v1664_v49, %s5102_s4  ;;  %1753 = vrot.lane.b32.xlu2 %v1737_v18, %s5098_s27 }
  0xf9   : >> { %1291 = vrot.lane.b32.xlu1 %v5811_v22, %s5096_s25  ;;  %v6019_v43 = vpop.permute.xlu2 %1168 }
  0xfa   : >> { %v1286_v17 = vpop.permute.xlu1 %1285 }
  0xff   : >> { %1174 = vrot.lane.b32.xlu0 %v1139_v62, %s5099_s28  ;;  %1239 = vrot.lane.b32.xlu2 %v1222_v56, %s5097_s26  ;;  %v922_v62 = vld [vmem:[%s5779_s23 + $0x5c] sm:$0x1]  ;;  %v1627_v56 = vrot.slane %v1625_v31, 1 }
 0x100   : >> { %v1058_v51 = vunpack.c.l.b16 %v922_v62  ;;  %v4524_v62 = vld [vmem:[%s5779_s23 + $0x74] sm:$0x1] }
 0x101   : >> { %v1230_v42 = vpop.permute.xlu0 %1229  ;;  %1295 = vrot.lane.b32.xlu1 %v5888_v1, %s5096_s25  ;;  %v6045_v59 = vpop.permute.xlu2 %1289 }
 0x102   : >> { %v1066_v36 = vpack.c.b16 %v1058_v51, %v1058_v51 }
 0x103   : >> { %v1742_v5 = vpop.permute.xlu1 %1741 }
 0x107   : >> { %1427 = vrot.lane.b32.xlu0 %v1372_v35, %s5101_s30  ;;  %1491 = vrot.lane.b32.xlu2 %v1472_v63, %s5100_s29 }
 0x109   : >> { %v1165_v49 = vpop.permute.xlu0 %1164  ;;  %1547 = vrot.lane.b32.xlu1 %v6024_v46, %s5095_s24  ;;  %v6071_v37 = vpop.permute.xlu2 %1293 }
 0x10a   : >> { %v1759_v4 = vsel %vm1757_vm12, %v5792_v11, %v1165_v49  ;;  %v1618_v11 = vshrl.u32 %v6024_v46, 16  ;;  %v1160_v49 = vshll.u32 %v1066_v36, 16 }
 0x10b   : >> { %v1776_v18 = vsel %vm1774_vm13, %v1759_v4, %v1230_v42  ;;  %v1422_v34 = vpop.permute.xlu1 %1421  ;;  %v4996_v42 = vor.u32 %v4995_v14, %v6036_v9  ;;  %v1642_v9 = vshrl.u32 %v6033_v50, 16  ;;  %v1651_v4 = vrot.slane %v1649_v44, 1 }
 0x10c   : >> { %v1793_v25 = vsel %vm1791_vm14, %v1776_v18, %v1286_v17  ;;  %v1623_v20 = vor.u32 %v1622_v39, %v1618_v11  ;;  %v4515_v18 = vld [vmem:[%s5779_s23 + $0x6c] sm:$0xff]   ;;  %v1162_v39 = vrot.slane %v1160_v49, 1 }
 0x10d   : >> { %v1810_v0 = vsel %vm1808_vm15, %v1793_v25, %v1422_v34  ;;  %v1732_v32 = vrot.slane %v4996_v42, 1  ;;  %v1647_v2 = vor.u32 %v1646_v15, %v1642_v9  ;;  %v1324_v25 = vpack.c.b16 %v1316_v52, %v1316_v52 }
 0x10e   : >> { %v1827_v46 = vsel %vm1825_vm0, %v1810_v0, %v6009_v57  ;;  %v1726_v57 = vrot.slane %v4993_v33, 1  ;;  %v1226_v33 = vrot.slane %v4999_v16, 1  ;;  %v1668_v54 = vshll.u32 %v4515_v18, 16 }
 0x10f   : >> { %1431 = vrot.lane.b32.xlu0 %v1396_v53, %s5101_s30  ;;  %v1844_v17 = vsel %vm1842_vm2, %v1827_v46, %v5981_v19  ;;  %1495 = vrot.lane.b32.xlu2 %v1478_v60, %s5100_s29  ;;  %v1628_v19 = vsel %vm1067_vm10, %v1623_v20, %v1627_v56  ;;  %v1652_v31 = vsel %vm1067_vm10, %v1647_v2, %v1651_v4  ;;  %v1417_v60 = vshll.u32 %v1324_v25, 16  ;;  %v4810_v56 = vld [vmem:[%s5779_s23 + $0x60] sm:$0xf0] }
 0x110   : >> { %v1728_v30 = vsel %vm1204_vm9, %v1726_v57, %v1727_v7  ;;  %v1227_v46 = vrot.slane %v1066_v36, 1  ;;  %v1670_v9 = vrot.slane %v1668_v54, 1 }
 0x111   : >> { %v1678_v6 = vpop.permute.xlu0 %1677  ;;  %1551 = vrot.lane.b32.xlu1 %v6033_v50, %s5095_s24  ;;  %v6095_v35 = vpop.permute.xlu2 %1545  ;;  %v1157_v50 = vrot.slane %v1155_v13, 1 }
 0x112   : >> { %v1861_v47 = vsel %vm7729_vm6, %v1844_v17, %v1678_v6  ;;  %v1572_v17 = vunpack.c.l.b16 %v4524_v62  ;;  %v1419_v6 = vrot.slane %v1417_v60, 1  ;;  %v1228_v42 = vsel %vm1204_vm9, %v1226_v33, %v1227_v46 }
 0x113   : >> { %v1878_v23 = vsel %vm7728_vm11, %v1861_v47, %v1742_v5  ;;  %v1733_v5 = vrot.slane %v1578_v26, 1  ;;  %v6098_v63 = vpop.permute.xlu1 %1172  ;;  %v1158_v11 = vor.u32 %v1157_v50, %v1153_v38  ;;  %v4811_v26 = vld [vmem:[%s5779_s23 + $0x60] sm:$0xe]  ;;  %v5001_v47 = vld [vmem:[%s5779_s23 + $0x6c] sm:$0xe] }
 0x114   : >> { %4541 = vmatmul.msk.bf16.vlgmr.msra.gmra.mxu0 %vm7727_vm3, %v1878_v23  ;;  %v4812_v51 = vor.u32 %v4811_v26, %v4810_v56  ;;  %v1580_v23 = vpack.c.b16 %v1572_v17, %v1572_v17  ;;  %v1420_v13 = vsel %vm1067_vm10, %v5991_v12, %v1419_v6  ;;  %v5002_v45 = vor.u32 %v5001_v47, %v5000_v27 }
 0x115   : >> { %v1734_v14 = vsel %vm1204_vm9, %v1732_v32, %v1733_v5  ;;  %v1163_v0 = vsel %vm1067_vm10, %v1158_v11, %v1162_v39  ;;  %v1483_v32 = vrot.slane %v1324_v25, 1  ;;  %v1767_v2 = vsel %vm1757_vm12, %v5811_v22, %v6098_v63 }
 0x116   : >> { %v1673_v15 = vshll.u32 %v1580_v23, 16  ;;  %v1482_v44 = vrot.slane %v4812_v51, 1  ;;  %v1739_v52 = vrot.slane %v1580_v23, 1 }
 0x117   : >> { %1683 = vrot.lane.b32.xlu0 %v1628_v19, %s5102_s4  ;;  %1747 = vrot.lane.b32.xlu2 %v1728_v30, %s5098_s27  ;;  %v1666_v19 = vshrl.u32 %v4515_v18, 16  ;;  %v4962_v30 = vld [vmem:[%s5779_s23 + $0x18] sm:$0xff]  }
 0x118   : >> { %v1675_v28 = vrot.slane %v1673_v15, 1  ;;  %v1484_v36 = vsel %vm1204_vm9, %v1482_v44, %v1483_v32  ;;  %v1763_v38 = vsel %vm1757_vm12, %v4962_v30, %v6019_v43 }
 0x119   : >> { %v1234_v53 = vpop.permute.xlu0 %1233  ;;  %1751 = vrot.lane.b32.xlu1 %v1734_v14, %s5098_s27  ;;  %v6111_v34 = vpop.permute.xlu2 %1549  ;;  %v1738_v14 = vrot.slane %v5002_v45, 1 }
 0x11a   : >> { %v1780_v4 = vsel %vm1774_vm13, %v1763_v38, %v1234_v53 }
 0x11b   : >> { %v1426_v61 = vpop.permute.xlu1 %1425  ;;  %v1797_v43 = vsel %vm1791_vm14, %v1780_v4, %v6045_v59  ;;  %v1740_v39 = vsel %vm1204_vm9, %v1738_v14, %v1739_v52 }
 0x11c   : >> { %v1814_v11 = vsel %vm1808_vm15, %v1797_v43, %v1426_v61 }
 0x11f   : >> { %1687 = vrot.lane.b32.xlu0 %v1652_v31, %s5102_s4  ;;  %1178 = vrot.lane.b32.xlu2 %v1163_v0, %s5099_s28 }
 0x121   : >> { %v1238_v20 = vpop.permute.xlu0 %1237  ;;  %1299 = vrot.lane.b32.xlu1 %v5958_v41, %s5096_s25  ;;  %v1686_v7 = vpop.permute.xlu2 %1685  ;;  %v1671_v41 = vor.u32 %v1670_v9, %v1666_v19 }
 0x122   : >> { %v1784_v27 = vsel %vm1774_vm13, %v1767_v2, %v1238_v20 }
 0x123   : >> { %v1430_v57 = vpop.permute.xlu1 %1429  ;;  %v1676_v49 = vsel %vm1067_vm10, %v1671_v41, %v1675_v28  ;;  %v1801_v22 = vsel %vm1791_vm14, %v1784_v27, %v6071_v37 }
 0x124   : >> { %v1818_v53 = vsel %vm1808_vm15, %v1801_v22, %v1430_v57 }
 0x127   : >> { %1243 = vrot.lane.b32.xlu0 %v1228_v42, %s5097_s26  ;;  %1435 = vrot.lane.b32.xlu2 %v1420_v13, %s5101_s30 }
 0x129   : >> { %v1490_v5 = vpop.permute.xlu0 %1489  ;;  %1555 = vrot.lane.b32.xlu1 %v4515_v18, %s5095_s24  ;;  %v1177_v50 = vpop.permute.xlu2 %1176 }
 0x12a   : >> { %v1831_v31 = vsel %vm1825_vm0, %v1814_v11, %v1490_v5 }
 0x12b   : >> { %v1682_v12 = vpop.permute.xlu1 %1681  ;;  %v1848_v16 = vsel %vm1842_vm2, %v1831_v31, %v6095_v35 }
 0x12c   : >> { %v1865_v61 = vsel %vm7729_vm6, %v1848_v16, %v1682_v12 }
 0x12f   : >> { %1499 = vrot.lane.b32.xlu0 %v1484_v36, %s5100_s29  ;;  %1691 = vrot.lane.b32.xlu2 %v1676_v49, %s5102_s4 }
 0x131   : >> { %v1494_v18 = vpop.permute.xlu0 %1493  ;;  %v1424_v25 = vpop.permute.xlu2 %1423 }
 0x132   : >> { %v1835_v59 = vsel %vm1825_vm0, %v1818_v53, %v1494_v18 }
 0x133   : >> { %v1167_v63 = vpop.permute.xlu1 %1166  ;;  %v1852_v60 = vsel %vm1842_vm2, %v1835_v59, %v6111_v34 }
 0x134   : >> { %v1869_v37 = vsel %vm7729_vm6, %v1852_v60, %v1686_v7  ;;  %v1761_v42 = vsel %vm1757_vm12, %v5865_v40, %v1167_v63  ;;  %v1771_v40 = vsel %vm1757_vm12, %v5888_v1, %v1177_v50 }
 0x137   : >> { %1755 = vrot.lane.b32.xlu0 %v1740_v39, %s5098_s27 }
 0x139   : >> { %v1746_v62 = vpop.permute.xlu0 %1745  ;;  %v1434_v20 = vpop.permute.xlu2 %1433 }
 0x13a   : >> { %v1882_v0 = vsel %vm7728_vm11, %v1865_v61, %v1746_v62 }
 0x13b   : >> { %4543 = vmatmul.msk.bf16.vlgmr.msra.gmra.mxu1 %vm7727_vm3, %v1882_v0  ;;  %v1750_v33 = vpop.permute.xlu1 %1749 }
 0x13c   : >> { %v1886_v46 = vsel %vm7728_vm11, %v1869_v37, %v1750_v33 }
 0x13d   : >> { %4545 = vmatmul.msk.bf16.vlgmr.msra.gmra.mxu2 %vm7727_vm3, %v1886_v46 }
 0x141   : >> { %v1232_v35 = vpop.permute.xlu0 %1231  ;;  %v1680_v17 = vpop.permute.xlu2 %1679 }
 0x142   : >> { %v1778_v34 = vsel %vm1774_vm13, %v1761_v42, %v1232_v35 }
 0x143   : >> { %v1242_v56 = vpop.permute.xlu1 %1241 }
 0x144   : >> { %v1788_v41 = vsel %vm1774_vm13, %v1771_v40, %v1242_v56 }
 0x149   : >> { %v1288_v26 = vpop.permute.xlu0 %1287  ;;  %v1171_v23 = vpop.permute.xlu2 %1170 }
 0x14a   : >> { %v1795_v51 = vsel %vm1791_vm14, %v1778_v34, %v1288_v26  ;;  %v1765_v11 = vsel %vm1757_vm12, %v5946_v8, %v1171_v23 }
 0x14b   : >> { %v1488_v54 = vpop.permute.xlu1 %1487  ;;  %v1812_v57 = vsel %vm1808_vm15, %v1795_v51, %v1424_v25 }
 0x14c   : >> { %v1829_v13 = vsel %vm1825_vm0, %v1812_v57, %v1488_v54 }
 0x151   : >> { %v1298_v6 = vpop.permute.xlu0 %1297  ;;  %v1754_v32 = vpop.permute.xlu2 %1753 }
 0x152   : >> { %v1805_v28 = vsel %vm1791_vm14, %v1788_v41, %v1298_v6 }
 0x153   : >> { %v1498_v47 = vpop.permute.xlu1 %1497  ;;  %v1822_v45 = vsel %vm1808_vm15, %v1805_v28, %v1434_v20 }
 0x154   : >> { %v1839_v30 = vsel %vm1825_vm0, %v1822_v45, %v1498_v47 }
 0x159   : >> { %v1544_v7 = vpop.permute.xlu0 %1543  ;;  %v1240_v2 = vpop.permute.xlu2 %1239 }
 0x15a   : >> { %v1846_v19 = vsel %vm1842_vm2, %v1829_v13, %v1544_v7 }
 0x15b   : >> { %v1863_v9 = vsel %vm7729_vm6, %v1846_v19, %v1680_v17  ;;  %v1744_v15 = vpop.permute.xlu1 %1743 }
 0x15c   : >> { %v1880_v44 = vsel %vm7728_vm11, %v1863_v9, %v1744_v15 }
 0x15d   : >> { %4542 = vmatmul.msk.bf16.gmra.mxu0 %vm7727_vm3, %v1880_v44 }
 0x161   : >> { %v1554_v5 = vpop.permute.xlu0 %1553  ;;  %v1492_v14 = vpop.permute.xlu2 %1491 }
 0x162   : >> { %v1856_v38 = vsel %vm1842_vm2, %v1839_v30, %v1554_v5 }
 0x163   : >> { %v1236_v36 = vpop.permute.xlu1 %1235 }
 0x164   : >> { %v1782_v31 = vsel %vm1774_vm13, %v1765_v11, %v1236_v36 }
 0x169   : >> { %v1690_v12 = vpop.permute.xlu0 %1689  ;;  %v1496_v27 = vpop.permute.xlu2 %1495 }
 0x16a   : >> { %v1873_v49 = vsel %vm7729_vm6, %v1856_v38, %v1690_v12 }
 0x16b   : >> { %v1890_v1 = vsel %vm7728_vm11, %v1873_v49, %v1754_v32  ;;  %v1292_v50 = vpop.permute.xlu1 %1291 }
 0x16c   : >> { %4547 = vmatmul.msk.bf16.vlgmr.msra.gmra.mxu3 %vm7727_vm3, %v1890_v1  ;;  %v1799_v22 = vsel %vm1791_vm14, %v1782_v31, %v1292_v50 }
 0x171   : >> { %v1175_v4 = vpop.permute.xlu0 %1174  ;;  %v1748_v25 = vpop.permute.xlu2 %1747 }
 0x172   : >> { %v1769_v16 = vsel %vm1757_vm12, %v5966_v21, %v1175_v4 }
 0x173   : >> { %v1296_v52 = vpop.permute.xlu1 %1295  ;;  %v1786_v0 = vsel %vm1774_vm13, %v1769_v16, %v1240_v2 }
 0x174   : >> { %v1803_v37 = vsel %vm1791_vm14, %v1786_v0, %v1296_v52 }
 0x179   : >> { %v1428_v18 = vpop.permute.xlu0 %1427  ;;  %v1179_v17 = vpop.permute.xlu2 %1178 }
 0x17a   : >> { %v1816_v63 = vsel %vm1808_vm15, %v1799_v22, %v1428_v18  ;;  %v1773_v42 = vsel %vm1757_vm12, %v6061_v10, %v1179_v17 }
 0x17b   : >> { %v1548_v43 = vpop.permute.xlu1 %1547  ;;  %v1833_v59 = vsel %vm1825_vm0, %v1816_v63, %v1492_v14 }
 0x17c   : >> { %v1850_v61 = vsel %vm1842_vm2, %v1833_v59, %v1548_v43 }
 0x181   : >> { %v1432_v39 = vpop.permute.xlu0 %1431  ;;  %v1436_v23 = vpop.permute.xlu2 %1435 }
 0x182   : >> { %v1820_v33 = vsel %vm1808_vm15, %v1803_v37, %v1432_v39 }
 0x183   : >> { %v1552_v53 = vpop.permute.xlu1 %1551  ;;  %v1837_v46 = vsel %vm1825_vm0, %v1820_v33, %v1496_v27 }
 0x184   : >> { %v1854_v35 = vsel %vm1842_vm2, %v1837_v46, %v1552_v53 }
 0x189   : >> { %v1684_v62 = vpop.permute.xlu0 %1683  ;;  %v1692_v15 = vpop.permute.xlu2 %1691 }
 0x18a   : >> { %v1867_v8 = vsel %vm7729_vm6, %v1850_v61, %v1684_v62 }
 0x18b   : >> { %v1884_v60 = vsel %vm7728_vm11, %v1867_v8, %v1748_v25  ;;  %v1752_v21 = vpop.permute.xlu1 %1751 }
 0x18c   : >> { %4544 = vmatmul.msk.bf16.gmra.mxu1 %vm7727_vm3, %v1884_v60 }
 0x191   : >> { %v1943_v20 = vpop.f32.mrf.mxu0  ;;  %v1688_v56 = vpop.permute.xlu0 %1687 }
 0x192   : >> { %1985 = vst.msk [vmem:[%s6198_s13] sm:$0xff] %vm1757_vm12, %v1943_v20  ;;  %v1871_v26 = vsel %vm7729_vm6, %v1854_v35, %v1688_v56  ;;  %v2001_v30 = vsel %vm1757_vm12, %v1943_v20, 0.0  ;;  %v2039_v50 = vmul.f32 %v1943_v20, %v1943_v20 }
 0x193   : >> { %v1888_v54 = vsel %vm7728_vm11, %v1871_v26, %v1752_v21  ;;  %v1300_v6 = vpop.permute.xlu1 %1299 }
 0x194   : >> { %4546 = vmatmul.msk.bf16.gmra.mxu2 %vm7727_vm3, %v1888_v54  ;;  %v2055_v52 = vsel %vm1757_vm12, %v2039_v50, 0.0 }
 0x199   : >> { %v1945_v34 = vpop.f32.mrf.mxu0  ;;  %v1244_v51 = vpop.permute.xlu0 %1243 }
 0x19a   : >> { %1986 = vst.msk [vmem:[%s6198_s13 + $0x8] sm:$0xff] %vm1757_vm12, %v1945_v34  ;;  %v1790_v47 = vsel %vm1774_vm13, %v1773_v42, %v1244_v51  ;;  %v2002_v45 = vsel %vm1757_vm12, %v1945_v34, 0.0  ;;  %v2040_v49 = vmul.f32 %v1945_v34, %v1945_v34 }
 0x19b   : >> { %v1807_v57 = vsel %vm1791_vm14, %v1790_v47, %v1300_v6  ;;  %v1556_v9 = vpop.permute.xlu1 %1555  ;;  %v2003_v38 = vadd.f32 %v2002_v45, %v2001_v30 }
 0x19c   : >> { %v1824_v13 = vsel %vm1808_vm15, %v1807_v57, %v1436_v23  ;;  %v2056_v14 = vsel %vm1757_vm12, %v2040_v49, 0.0 }
 0x19d   : >> { %v2057_v43 = vadd.f32 %v2056_v14, %v2055_v52 }
 0x1a1   : >> { %v1500_v7 = vpop.permute.xlu0 %1499 }
 0x1a2   : >> { %v1841_v19 = vsel %vm1825_vm0, %v1824_v13, %v1500_v7 }
 0x1a3   : >> { %v1858_v10 = vsel %vm1842_vm2, %v1841_v19, %v1556_v9 }
 0x1a4   : >> { %v1875_v44 = vsel %vm7729_vm6, %v1858_v10, %v1692_v15 }
 0x1a9   : >> { %v1756_v40 = vpop.permute.xlu0 %1755 }
 0x1aa   : >> { %v1892_v32 = vsel %vm7728_vm11, %v1875_v44, %v1756_v40 }
 0x1ab   : >> { %4548 = vmatmul.msk.bf16.gmra.mxu3 %vm7727_vm3, %v1892_v32 }
 0x1b8   : >> { %v1953_v5 = vpop.f32.mrf.mxu1 }
 0x1b9   : >> { %1989 = vst.msk [vmem:[%s6198_s13 + $0x20] sm:$0xff] %vm1757_vm12, %v1953_v5  ;;  %v2043_v11 = vmul.f32 %v1953_v5, %v1953_v5  ;;  %v2008_v53 = vsel %vm1757_vm12, %v1953_v5, 0.0 }
 0x1bb   : >> { %v2062_v61 = vsel %vm1757_vm12, %v2043_v11, 0.0 }
 0x1c0   : >> { %v1955_v41 = vpop.f32.mrf.mxu1  ;;  %v1963_v28 = vpop.f32.mrf.mxu2 }
 0x1c1   : >> { %1990 = vst.msk [vmem:[%s6198_s13 + $0x28] sm:$0xff] %vm1757_vm12, %v1955_v41  ;;  %v2044_v37 = vmul.f32 %v1955_v41, %v1955_v41  ;;  %v2010_v21 = vsel %vm1757_vm12, %v1955_v41, 0.0  ;;  %v2047_v6 = vmul.f32 %v1963_v28, %v1963_v28  ;;  %v2016_v23 = vsel %vm1757_vm12, %v1963_v28, 0.0 }
 0x1c2   : >> { %1993 = vst.msk [vmem:[%s6198_s13 + $0x40] sm:$0xff] %vm1757_vm12, %v1963_v28 }
 0x1c3   : >> { %v2064_v20 = vsel %vm1757_vm12, %v2044_v37, 0.0  ;;  %v2070_v19 = vsel %vm1757_vm12, %v2047_v6, 0.0 }
 0x1c8   : >> { %v1965_v36 = vpop.f32.mrf.mxu2 }
 0x1c9   : >> { %1994 = vst.msk [vmem:[%s6198_s13 + $0x48] sm:$0xff] %vm1757_vm12, %v1965_v36  ;;  %v2048_v15 = vmul.f32 %v1965_v36, %v1965_v36  ;;  %v2018_v44 = vsel %vm1757_vm12, %v1965_v36, 0.0 }
 0x1cb   : >> { %v2072_v5 = vsel %vm1757_vm12, %v2048_v15, 0.0 }
 0x1da   : >> { %v1948_v12 = vpop.f32.mrf.mxu0 }
 0x1db   : >> { %1987 = vst.msk [vmem:[%s6198_s13 + $0x10] sm:$0xff] %vm1757_vm12, %v1948_v12  ;;  %v2004_v2 = vsel %vm1757_vm12, %v1948_v12, 0.0  ;;  %v2041_v4 = vmul.f32 %v1948_v12, %v1948_v12 }
 0x1dc   : >> { %v2005_v1 = vadd.f32 %v2004_v2, %v2003_v38 }
 0x1dd   : >> { %v2058_v18 = vsel %vm1757_vm12, %v2041_v4, 0.0 }
 0x1de   : >> { %v2059_v22 = vadd.f32 %v2058_v18, %v2057_v43 }
 0x1e2   : >> { %v1950_v27 = vpop.f32.mrf.mxu0 }
 0x1e3   : >> { %1988 = vst.msk [vmem:[%s6198_s13 + $0x18] sm:$0xff] %vm1757_vm12, %v1950_v27  ;;  %v2006_v39 = vsel %vm1757_vm12, %v1950_v27, 0.0  ;;  %v2042_v31 = vmul.f32 %v1950_v27, %v1950_v27 }
 0x1e4   : >> { %v2007_v63 = vadd.f32 %v2006_v39, %v2005_v1 }
 0x1e5   : >> { %v2060_v16 = vsel %vm1757_vm12, %v2042_v31, 0.0 }
 0x1e6   : >> { %v2009_v59 = vadd.f32 %v2008_v53, %v2007_v63  ;;  %v2061_v25 = vadd.f32 %v2060_v16, %v2059_v22 }
 0x1e8   : >> { %v2063_v62 = vadd.f32 %v2062_v61, %v2061_v25  ;;  %v2011_v35 = vadd.f32 %v2010_v21, %v2009_v59 }
 0x1ea   : >> { %v2065_v17 = vadd.f32 %v2064_v20, %v2063_v62 }
 0x1ef   : >> { %v1973_v8 = vpop.f32.mrf.mxu3 }
 0x1f0   : >> { %1997 = vst.msk [vmem:[%s6198_s13 + $0x60] sm:$0xff] %vm1757_vm12, %v1973_v8  ;;  %v2051_v12 = vmul.f32 %v1973_v8, %v1973_v8  ;;  %v2024_v50 = vsel %vm1757_vm12, %v1973_v8, 0.0 }
 0x1f2   : >> { %v2078_v18 = vsel %vm1757_vm12, %v2051_v12, 0.0 }
 0x1f7   : >> { %v1975_v0 = vpop.f32.mrf.mxu3 }
 0x1f8   : >> { %1998 = vst.msk [vmem:[%s6198_s13 + $0x68] sm:$0xff] %vm1757_vm12, %v1975_v0  ;;  %v2052_v11 = vmul.f32 %v1975_v0, %v1975_v0  ;;  %v2026_v31 = vsel %vm1757_vm12, %v1975_v0, 0.0 }
 0x1fa   : >> { %v2080_v53 = vsel %vm1757_vm12, %v2052_v11, 0.0 }
 0x209   : >> { %v1958_v60 = vpop.f32.mrf.mxu1 }
 0x20a   : >> { %1991 = vst.msk [vmem:[%s6198_s13 + $0x30] sm:$0xff] %vm1757_vm12, %v1958_v60  ;;  %v2045_v33 = vmul.f32 %v1958_v60, %v1958_v60  ;;  %v2012_v46 = vsel %vm1757_vm12, %v1958_v60, 0.0 }
 0x20b   : >> { %v2013_v26 = vadd.f32 %v2012_v46, %v2011_v35 }
 0x20c   : >> { %v2066_v56 = vsel %vm1757_vm12, %v2045_v33, 0.0 }
 0x20d   : >> { %v2067_v51 = vadd.f32 %v2066_v56, %v2065_v17 }
 0x211   : >> { %v1960_v54 = vpop.f32.mrf.mxu1 }
 0x212   : >> { %1992 = vst.msk [vmem:[%s6198_s13 + $0x38] sm:$0xff] %vm1757_vm12, %v1960_v54  ;;  %v2014_v42 = vsel %vm1757_vm12, %v1960_v54, 0.0  ;;  %v2046_v34 = vmul.f32 %v1960_v54, %v1960_v54 }
 0x213   : >> { %v2015_v47 = vadd.f32 %v2014_v42, %v2013_v26 }
 0x214   : >> { %v2068_v57 = vsel %vm1757_vm12, %v2046_v34, 0.0 }
 0x215   : >> { %v2017_v7 = vadd.f32 %v2016_v23, %v2015_v47  ;;  %v2069_v13 = vadd.f32 %v2068_v57, %v2067_v51 }
 0x217   : >> { %v2071_v9 = vadd.f32 %v2070_v19, %v2069_v13  ;;  %v1968_v10 = vpop.f32.mrf.mxu2  ;;  %v2019_v32 = vadd.f32 %v2018_v44, %v2017_v7 }
 0x218   : >> { %1995 = vst.msk [vmem:[%s6198_s13 + $0x50] sm:$0xff] %vm1757_vm12, %v1968_v10  ;;  %v2049_v40 = vmul.f32 %v1968_v10, %v1968_v10  ;;  %v2020_v41 = vsel %vm1757_vm12, %v1968_v10, 0.0 }
 0x219   : >> { %v2073_v28 = vadd.f32 %v2072_v5, %v2071_v9  ;;  %v2021_v30 = vadd.f32 %v2020_v41, %v2019_v32 }
 0x21a   : >> { %v2074_v45 = vsel %vm1757_vm12, %v2049_v40, 0.0 }
 0x21b   : >> { %v2075_v1 = vadd.f32 %v2074_v45, %v2073_v28 }
 0x21f   : >> { %v1970_v38 = vpop.f32.mrf.mxu2 }
 0x220   : >> { %1996 = vst.msk [vmem:[%s6198_s13 + $0x58] sm:$0xff] %vm1757_vm12, %v1970_v38  ;;  %v2022_v49 = vsel %vm1757_vm12, %v1970_v38, 0.0  ;;  %v2050_v2 = vmul.f32 %v1970_v38, %v1970_v38 }
 0x221   : >> { %v2023_v36 = vadd.f32 %v2022_v49, %v2021_v30 }
 0x222   : >> { %v2076_v4 = vsel %vm1757_vm12, %v2050_v2, 0.0 }
 0x223   : >> { %v2025_v14 = vadd.f32 %v2024_v50, %v2023_v36  ;;  %v2077_v52 = vadd.f32 %v2076_v4, %v2075_v1 }
 0x225   : >> { %v2079_v43 = vadd.f32 %v2078_v18, %v2077_v52  ;;  %v2027_v63 = vadd.f32 %v2026_v31, %v2025_v14 }
 0x227   : >> { %v2081_v25 = vadd.f32 %v2080_v53, %v2079_v43 }
 0x22e   : >> { %v1978_v27 = vpop.f32.mrf.mxu3 }
 0x22f   : >> { %1999 = vst.msk [vmem:[%s6198_s13 + $0x70] sm:$0xff] %vm1757_vm12, %v1978_v27  ;;  %v2053_v39 = vmul.f32 %v1978_v27, %v1978_v27  ;;  %v2028_v22 = vsel %vm1757_vm12, %v1978_v27, 0.0 }
 0x230   : >> { %v2029_v59 = vadd.f32 %v2028_v22, %v2027_v63 }
 0x231   : >> { %v2082_v16 = vsel %vm1757_vm12, %v2053_v39, 0.0 }
 0x232   : >> { %v2083_v60 = vadd.f32 %v2082_v16, %v2081_v25  ;;  %v2596_v25 = vld [vmem:[#allocation2 + $0x18] sm:$0xf] (%p889_p4) }
 0x236   : >> { %v1980_v61 = vpop.f32.mrf.mxu3 }
 0x237   : >> { %2000 = vst.msk [vmem:[%s6198_s13 + $0x78] sm:$0xff] %vm1757_vm12, %v1980_v61  ;;  %v2030_v62 = vsel %vm1757_vm12, %v1980_v61, 0.0  ;;  %v2054_v8 = vmul.f32 %v1980_v61, %v1980_v61 }
 0x238   : >> { %v2031_v37 = vadd.f32 %v2030_v62, %v2029_v59 }
 0x239   : >> { %v2084_v33 = vsel %vm1757_vm12, %v2054_v8, 0.0 }
 0x23a   : >> { %v2032_v0 = vrot.slane %v2031_v37, 4  ;;  %v2085_v21 = vadd.f32 %v2084_v33, %v2083_v60 }
 0x23c   : >> { %v2033_v46 = vadd.f32 %v2032_v0, %v2031_v37  ;;  %v2086_v35 = vrot.slane %v2085_v21, 4 }
 0x23e   : >> { %v2034_v20 = vrot.slane %v2033_v46, 2  ;;  %v2087_v56 = vadd.f32 %v2086_v35, %v2085_v21  ;;  %v2111_v44 = vld [vmem:[#allocation3 + $0x10] sm:$0xff] (%p889_p4)  ;;  %v2112_v40 = vld [vmem:[#allocation3 + $0x18] sm:$0xff] (%p889_p4)  ;;  %v2137_v32 = vld [vmem:[#allocation3 + $0xe0] sm:$0xff] (%p889_p4) }
 0x23f   : > { %v2138_v5 = vld [vmem:[#allocation3 + $0xe8] sm:$0xff] (%p889_p4)  ;;  %v2109_v28 = vld [vmem:[#allocation3] sm:$0xff] (%p889_p4)  ;;  %v6290_v38 = vld [vmem:[#allocation3 + $0x30] sm:$0xff] (%p889_p4) }
 0x240   : >> { %v2035_v26 = vadd.f32 %v2034_v20, %v2033_v46  ;;  %v2088_v17 = vrot.slane %v2087_v56, 2  ;;  %v2110_v45 = vld [vmem:[#allocation3 + $0x8] sm:$0xff] (%p889_p4)  ;;  %v2113_v30 = vld [vmem:[#allocation3 + $0x20] sm:$0xff] (%p889_p4)  ;;  %v6292_v12 = vld [vmem:[#allocation3 + $0x38] sm:$0xff] (%p889_p4) }
 0x241   : > { %v6295_v1 = vld [vmem:[#allocation3 + $0x40] sm:$0xff] (%p889_p4)  ;;  %v6297_v36 = vld [vmem:[#allocation3 + $0x48] sm:$0xff] (%p889_p4)  ;;  %v6299_v50 = vld [vmem:[#allocation3 + $0x50] sm:$0xff] (%p889_p4) }
 0x242   : >> { %v2036_v54 = vrot.slane %v2035_v26, 1  ;;  %v2089_v6 = vadd.f32 %v2088_v17, %v2087_v56  ;;  %v6305_v43 = vld [vmem:[#allocation3 + $0x58] sm:$0xff] (%p889_p4)  ;;  %v6307_v27 = vld [vmem:[#allocation3 + $0x60] sm:$0xff] (%p889_p4)  ;;  %v6309_v11 = vld [vmem:[#allocation3 + $0x68] sm:$0xff] (%p889_p4) }
 0x243   : > { %v6314_v53 = vld [vmem:[#allocation3 + $0x70] sm:$0xff] (%p889_p4)  ;;  %v6316_v16 = vld [vmem:[#allocation3 + $0x78] sm:$0xff] (%p889_p4)  ;;  %v6318_v59 = vld [vmem:[#allocation3 + $0x80] sm:$0xff] (%p889_p4) }
 0x244   : >> { %v2037_v42 = vadd.f32 %v2036_v54, %v2035_v26  ;;  %v2090_v34 = vrot.slane %v2089_v6, 1  ;;  %v6334_v37 = vld [vmem:[#allocation3 + $0x88] sm:$0xff] (%p889_p4)  ;;  %v6336_v33 = vld [vmem:[#allocation3 + $0x90] sm:$0xff] (%p889_p4)  ;;  %v6344_v20 = vld [vmem:[#allocation3 + $0x98] sm:$0xff] (%p889_p4) }
 0x245   : > { %v2603_v17 = vld [vmem:[#allocation2 + $0x24] sm:$0xf] (%p889_p4) }
 0x246   : >> { %v2038_v51 = vadd.f32 %v5077_v3, %v2037_v42   ;;  %v2091_v47 = vadd.f32 %v2090_v34, %v2089_v6  ;;  %891 = sbr.rel (!%p889_p4) target bundleno = 129 (0x81), region = 88 }
 0x248   : >> { %v2092_v23 = vadd.f32 %v5073_v58, %v2091_v47   ;;  %v7833_v3 = vmov %v2038_v51  ;;  %v6286_v57 = vmul.f32 (%p889_p4), 0.00390625, %v2038_v51 }
 0x24a   : >> { %v7832_v58 = vmov %v2092_v23  ;;  %v2094_v7 = vmul.f32 (%p889_p4), 0.00390625, %v2092_v23  ;;  %v2095_v13 = vmul.f32 (%p889_p4), %v6286_v57, %v6286_v57  ;;  %v2143_v2 = vsub.f32 (%p889_p4), %v2111_v44, %v6286_v57 }
 0x24b   : > { %v2114_v58 = vld [vmem:[#allocation3 + $0x28] sm:$0xff]  ;;  %v2144_v4 = vsub.f32 %v2112_v40, %v6286_v57  ;;  %v2169_v14 = vsub.f32 %v2137_v32, %v6286_v57  ;;  %v2170_v52 = vsub.f32 %v2138_v5, %v6286_v57  ;;  %v2141_v18 = vsub.f32 %v2109_v28, %v6286_v57 }
 0x24c   : > { %v2096_v3 = vsub.f32 %v2094_v7, %v2095_v13  ;;  %v2142_v31 = vsub.f32 %v2110_v45, %v6286_v57  ;;  %v2145_v22 = vsub.f32 %v2113_v30, %v6286_v57  ;;  %v2146_v63 = vsub.f32 %v2114_v58, %v6286_v57 }
 0x24d   : > { %v2147_v61 = vsub.f32 %v6290_v38, %v6286_v57  ;;  %v2148_v62 = vsub.f32 %v6292_v12, %v6286_v57  ;;  %v2149_v8 = vsub.f32 %v6295_v1, %v6286_v57  ;;  %v2150_v60 = vsub.f32 %v6297_v36, %v6286_v57 }
 0x24e   : > { %v2097_v19 = vmax.f32 %v2096_v3, 0.0  ;;  %v2151_v21 = vsub.f32 %v6299_v50, %v6286_v57  ;;  %v2152_v46 = vsub.f32 %v6305_v43, %v6286_v57  ;;  %v2153_v35 = vsub.f32 %v6307_v27, %v6286_v57 }
 0x250   : > { %v2098_v9 = vadd.f32 1e-05, %v2097_v19 }
 0x252   : > { %4963 = vrsqrt.f32 %v2098_v9  ;;  %vm2105_vm3 = vweird.f32 %v2098_v9 }
 0x258   : > { %v4964_v10 = vpop.eup %4963 }
 0x259   : > { %v2100_v15 = vmul.f32 %v4964_v10, %v2098_v9  ;;  %vm2106_vm11 = vweird.f32 %v4964_v10 }
 0x25a   : > { %vm6322_vm6 = vmor %vm2105_vm3, %vm2106_vm11  ;;  %vm7899_vm3 = vcmask 24576  }
 0x25b   : > { %v2101_v41 = vmul.f32 %v4964_v10, %v2100_v15 }
 0x25d   : > { %v2102_v49 = vmul.f32 0.5, %v2101_v41 }
 0x25f   : > { %v2103_v39 = vsub.f32 1.5, %v2102_v49 }
 0x261   : > { %v2104_v0 = vmul.f32 %v4964_v10, %v2103_v39 }
 0x263   : > { %v6356_v6 = vsel %vm6322_vm6, %v4964_v10, %v2104_v0 }
 0x264   : > { %v2175_v47 = vmul.f32 %v2143_v2, %v6356_v6  ;;  %v2176_v23 = vmul.f32 %v2144_v4, %v6356_v6  ;;  %v2201_v7 = vmul.f32 %v2169_v14, %v6356_v6  ;;  %v2202_v13 = vmul.f32 %v2170_v52, %v6356_v6 }
 0x265   : > { %v2173_v3 = vmul.f32 %v2141_v18, %v6356_v6  ;;  %v2174_v19 = vmul.f32 %v2142_v31, %v6356_v6  ;;  %v2177_v9 = vmul.f32 %v2145_v22, %v6356_v6  ;;  %v2178_v10 = vmul.f32 %v2146_v63, %v6356_v6 }
 0x266   : > { %v2207_v15 = vmax.f32 %v2175_v47, 0.0  ;;  %v2208_v44 = vmax.f32 %v2176_v23, 0.0  ;;  %v2233_v40 = vmax.f32 %v2201_v7, 0.0  ;;  %v2234_v32 = vmax.f32 %v2202_v13, 0.0 }
 0x267   : > { %v2205_v5 = vmax.f32 %v2173_v3, 0.0  ;;  %v2206_v41 = vmax.f32 %v2174_v19, 0.0  ;;  %v2209_v28 = vmax.f32 %v2177_v9, 0.0  ;;  %v2210_v45 = vmax.f32 %v2178_v10, 0.0  ;;  %v2600_v19 = vld [vmem:[#allocation2 + $0x20] sm:$0x1] }
 0x268   : > { %v6372_v30 = vpack.c.bf16 %v2207_v15, %v2207_v15  ;;  %v6374_v58 = vpack.c.bf16 %v2208_v44, %v2208_v44  ;;  %v6376_v49 = vpack.c.bf16 %v2233_v40, %v2233_v40  ;;  %v6378_v2 = vpack.c.bf16 %v2234_v32, %v2234_v32  ;;  %v2687_v15 = vld [vmem:[#allocation2 + $0xb4] sm:$0xf] }
 0x269   : > { %v6380_v4 = vpack.c.bf16 %v2205_v5, %v2205_v5  ;;  %v6382_v14 = vpack.c.bf16 %v2206_v41, %v2206_v41  ;;  %v6384_v52 = vpack.c.bf16 %v2209_v28, %v2209_v28  ;;  %v6386_v18 = vpack.c.bf16 %v2210_v45, %v2210_v45 }
 0x26a   : > { %v7731_v39 = vshrl.u32 %v6372_v30, 16  ;;  %v2290_v31 = vshll.u32 %v6372_v30, 16  ;;  %v2295_v22 = vshrl.u32 %v6374_v58, 16  ;;  %v7730_v63 = vshrl.u32 %v6376_v49, 16 }
 0x26b   : > { %7836 = vst [vmem:[#allocation16_spill] sm:$0xff] %v6380_v4  ;;  %v2511_v0 = vshll.u32 %v6376_v49, 16  ;;  %v2516_v47 = vshrl.u32 %v6378_v2, 16  ;;  %v7732_v23 = vshrl.u32 %v6380_v4, 16  ;;  %v2273_v7 = vshll.u32 %v6380_v4, 16 }
 0x26c   : > { %7837 = vst [vmem:[#allocation17_spill] sm:$0xff] %v6384_v52  ;;  %v6398_v13 = vrot.slane %v7731_v39, 7  ;;  %v6400_v3 = vrot.slane %v2295_v22, 7  ;;  %v6404_v9 = vrot.slane %v7730_v63, 7  ;;  %v2278_v10 = vshrl.u32 %v6382_v14, 16 }
 0x26d   : > { %v6407_v44 = vrot.slane %v2516_v47, 7  ;;  %v6411_v40 = vrot.slane %v7732_v23, 7  ;;  %v7733_v32 = vshrl.u32 %v6384_v52, 16  ;;  %v2307_v5 = vshll.u32 %v6384_v52, 16  ;;  %v2691_v22 = vld [vmem:[#allocation2 + $0xbc] sm:$0x1] }
 0x26e   : > { %v2292_v41 = vor.u32 %v2290_v31, %v6398_v13  ;;  %v2302_v28 = vrot.slane %v6400_v3, 4  ;;  %v2513_v45 = vor.u32 %v2511_v0, %v6404_v9  ;;  %v2589_v63 = vld [vmem:[#allocation2 + $0xc] sm:$0xf]  ;;  %v6418_v39 = vrot.slane %v2278_v10, 7  ;;  %v2593_v23 = vld [vmem:[#allocation2 + $0x14] sm:$0x1] }
 0x26f   : > { %v2523_v47 = vrot.slane %v6407_v44, 4  ;;  %v2275_v51 = vor.u32 %v2273_v7, %v6411_v40  ;;  %v6424_v34 = vrot.slane %v7733_v32, 7  ;;  %v2312_v42 = vshrl.u32 %v6386_v18, 16  ;;  %v2134_v52 = vld [vmem:[#allocation3 + $0xc8] sm:$0xff] }
 0x270   : > { %v2597_v31 = vsel %vm5183_vm4, %v2292_v41, %v2596_v25  ;;  %v2601_v0 = vsel %vm5196_vm5, %v2302_v28, %v2600_v19  ;;  %v2688_v10 = vsel %vm5183_vm4, %v2513_v45, %v2687_v15  ;;  %v2285_v54 = vrot.slane %v6418_v39, 4  ;;  %v2607_v19 = vld [vmem:[#allocation2 + $0x2c] sm:$0x1] }
 0x271   : > { %2598 = vst [vmem:[#allocation2 + $0x18] sm:$0xf] %v2597_v31  ;;  %v2692_v7 = vsel %vm5196_vm5, %v2523_v47, %v2691_v22  ;;  %v2590_v32 = vsel %vm5183_vm4, %v2275_v51, %v2589_v63  ;;  %v2309_v26 = vor.u32 %v2307_v5, %v6424_v34  ;;  %v6439_v56 = vrot.slane %v2312_v42, 7  ;;  %v2610_v47 = vld [vmem:[#allocation2 + $0x30] sm:$0xf] }
 0x272   : > { %2602 = vst [vmem:[#allocation2 + $0x20] sm:$0x1] %v2601_v0  ;;  %v2594_v25 = vsel %vm5196_vm5, %v2285_v54, %v2593_v23  ;;  %v2179_v15 = vmul.f32 %v2147_v61, %v6356_v6  ;;  %v2180_v41 = vmul.f32 %v2148_v62, %v6356_v6  ;;  %v2181_v42 = vmul.f32 %v2149_v8, %v6356_v6 }
 0x273   : > { %2689 = vst [vmem:[#allocation2 + $0xb4] sm:$0xf] %v2688_v10  ;;  %v2604_v54 = vsel %vm5183_vm4, %v2309_v26, %v2603_v17  ;;  %v2319_v51 = vrot.slane %v6439_v56, 4  ;;  %v2182_v38 = vmul.f32 %v2150_v60, %v6356_v6  ;;  %v2183_v12 = vmul.f32 %v2151_v21, %v6356_v6 }
 0x274   : > { %2693 = vst [vmem:[#allocation2 + $0xbc] sm:$0x1] %v2692_v7  ;;  %v2211_v61 = vmax.f32 %v2179_v15, 0.0  ;;  %v2212_v1 = vmax.f32 %v2180_v41, 0.0  ;;  %v2213_v62 = vmax.f32 %v2181_v42, 0.0  ;;  %v2184_v8 = vmul.f32 %v2152_v46, %v6356_v6 }
 0x275   : > { %2591 = vst [vmem:[#allocation2 + $0xc] sm:$0xf] %v2590_v32  ;;  %v2608_v26 = vsel %vm5196_vm5, %v2319_v51, %v2607_v19  ;;  %v2214_v36 = vmax.f32 %v2182_v38, 0.0  ;;  %v2215_v60 = vmax.f32 %v2183_v12, 0.0  ;;  %v2185_v50 = vmul.f32 %v2153_v35, %v6356_v6  ;;  %v2614_v19 = vld [vmem:[#allocation2 + $0x38] sm:$0x1] }
 0x276   : > { %2595 = vst [vmem:[#allocation2 + $0x14] sm:$0x1] %v2594_v25  ;;  %v6476_v21 = vpack.c.bf16 %v2211_v61, %v2211_v61  ;;  %v6478_v17 = vpack.c.bf16 %v2212_v1, %v2212_v1  ;;  %v6480_v63 = vpack.c.bf16 %v2213_v62, %v2213_v62  ;;  %v2216_v43 = vmax.f32 %v2184_v8, 0.0  ;;  %v2617_v42 = vld [vmem:[#allocation2 + $0x3c] sm:$0xf] }
 0x277   : > { %2605 = vst [vmem:[#allocation2 + $0x24] sm:$0xf] %v2604_v54  ;;  %v6482_v46 = vpack.c.bf16 %v2214_v36, %v2214_v36  ;;  %v6484_v23 = vpack.c.bf16 %v2215_v60, %v2215_v60  ;;  %v2217_v32 = vmax.f32 %v2185_v50, 0.0  ;;  %v7841_v5 = vsub.f32 %v6309_v11, %v6286_v57  ;;  %v2621_v8 = vld [vmem:[#allocation2 + $0x44] sm:$0x1] }
 0x278   : > { %7838 = vst [vmem:[#allocation18_spill] sm:$0xff] %v6476_v21  ;;  %v7737_v35 = vshrl.u32 %v6476_v21, 16  ;;  %v2324_v28 = vshll.u32 %v6476_v21, 16  ;;  %v2329_v45 = vshrl.u32 %v6478_v17, 16  ;;  %v7736_v22 = vshrl.u32 %v6480_v63, 16 }
 0x279   : > { %7839 = vst [vmem:[#allocation20_spill] sm:$0xff] %v6480_v63  ;;  %v2186_v27 = vmul.f32 %v7841_v5, %v6356_v6  ;;  %v2341_v31 = vshll.u32 %v6480_v63, 16  ;;  %v2346_v0 = vshrl.u32 %v6482_v46, 16  ;;  %v7734_v10 = vshrl.u32 %v6484_v23, 16  ;;  %v2132_v63 = vld [vmem:[#allocation3 + $0xb8] sm:$0xff] }
 0x27a   : > { %7840 = vst [vmem:[#allocation22_spill] sm:$0xff] %v6484_v23  ;;  %v2358_v7 = vshll.u32 %v6484_v23, 16  ;;  %v6500_v11 = vrot.slane %v7737_v35, 7  ;;  %v6502_v25 = vrot.slane %v2329_v45, 7  ;;  %v6506_v15 = vrot.slane %v7736_v22, 7 }
 0x27b   : > { %2609 = vst [vmem:[#allocation2 + $0x2c] sm:$0x1] %v2608_v26  ;;  %v6508_v41 = vpack.c.bf16 %v2216_v43, %v2216_v43  ;;  %v6510_v54 = vrot.slane %v2346_v0, 7  ;;  %v6514_v51 = vrot.slane %v7734_v10, 7  ;;  %v6516_v38 = vpack.c.bf16 %v2217_v32, %v2217_v32  ;;  %v2624_v26 = vld [vmem:[#allocation2 + $0x48] sm:$0xf] }
 0x27c   : > { %v2218_v12 = vmax.f32 %v2186_v27, 0.0  ;;  %v2326_v61 = vor.u32 %v2324_v28, %v6500_v11  ;;  %v2336_v1 = vrot.slane %v6502_v25, 4  ;;  %v2343_v62 = vor.u32 %v2341_v31, %v6506_v15 }
 0x27d   : > { %7842 = vst [vmem:[#allocation23_spill] sm:$0xff] %v6516_v38  ;;  %v2363_v36 = vshrl.u32 %v6508_v41, 16  ;;  %v2353_v60 = vrot.slane %v6510_v54, 4  ;;  %v2360_v50 = vor.u32 %v2358_v7, %v6514_v51  ;;  %v7735_v43 = vshrl.u32 %v6516_v38, 16  ;;  %v2628_v7 = vld [vmem:[#allocation2 + $0x50] sm:$0x1] }
 0x27e   : > { %v2375_v32 = vshll.u32 %v6516_v38, 16  ;;  %v2611_v5 = vsel %vm5183_vm4, %v2326_v61, %v2610_v47  ;;  %v2615_v27 = vsel %vm5196_vm5, %v2336_v1, %v2614_v19  ;;  %v2618_v28 = vsel %vm5183_vm4, %v2343_v62, %v2617_v42  ;;  %v2631_v42 = vld [vmem:[#allocation2 + $0x54] sm:$0xf] }
 0x27f   : > { %v6532_v45 = vrot.slane %v2363_v36, 7  ;;  %2612 = vst [vmem:[#allocation2 + $0x30] sm:$0xf] %v2611_v5  ;;  %v2622_v31 = vsel %vm5196_vm5, %v2353_v60, %v2621_v8  ;;  %v2625_v0 = vsel %vm5183_vm4, %v2360_v50, %v2624_v26  ;;  %v6540_v10 = vrot.slane %v7735_v43, 7  ;;  %v2635_v43 = vld [vmem:[#allocation2 + $0x5c] sm:$0x1] }
 0x280   : > { %v6542_v47 = vpack.c.bf16 %v2218_v12, %v2218_v12  ;;  %2616 = vst [vmem:[#allocation2 + $0x38] sm:$0x1] %v2615_v27  ;;  %v7843_v61 = vsub.f32 %v6314_v53, %v6286_v57  ;;  %v7844_v62 = vsub.f32 %v6316_v16, %v6286_v57  ;;  %v7845_v26 = vsub.f32 %v6318_v59, %v6286_v57 }
 0x281   : > { %v2370_v19 = vrot.slane %v6532_v45, 4  ;;  %2619 = vst [vmem:[#allocation2 + $0x3c] sm:$0xf] %v2618_v28  ;;  %v2377_v36 = vor.u32 %v2375_v32, %v6540_v10  ;;  %v7846_v53 = vsub.f32 %v6334_v37, %v6286_v57  ;;  %v7847_v16 = vsub.f32 %v6336_v33, %v6286_v57  ;;  %v2129_v32 = vld [vmem:[#allocation3 + $0xa0] sm:$0xff] }
 0x282   : > { %v2187_v1 = vmul.f32 %v7843_v61, %v6356_v6  ;;  %v2188_v8 = vmul.f32 %v7844_v62, %v6356_v6  ;;  %v2189_v12 = vmul.f32 %v7845_v26, %v6356_v6  ;;  %v2380_v60 = vshrl.u32 %v6542_v47, 16  ;;  %2623 = vst [vmem:[#allocation2 + $0x44] sm:$0x1] %v2622_v31 }
 0x283   : > { %v2190_v50 = vmul.f32 %v7846_v53, %v6356_v6  ;;  %v2191_v5 = vmul.f32 %v7847_v16, %v6356_v6  ;;  %v2629_v59 = vsel %vm5196_vm5, %v2370_v19, %v2628_v7  ;;  %2626 = vst [vmem:[#allocation2 + $0x48] sm:$0xf] %v2625_v0  ;;  %v2632_v62 = vsel %vm5183_vm4, %v2377_v36, %v2631_v42 }
 0x284   : > { %v2219_v27 = vmax.f32 %v2187_v1, 0.0  ;;  %v2220_v28 = vmax.f32 %v2188_v8, 0.0  ;;  %v2221_v61 = vmax.f32 %v2189_v12, 0.0  ;;  %v6571_v26 = vrot.slane %v2380_v60, 7  ;;  %2630 = vst [vmem:[#allocation2 + $0x50] sm:$0x1] %v2629_v59 }
 0x285   : > { %v2222_v37 = vmax.f32 %v2190_v50, 0.0  ;;  %v2223_v53 = vmax.f32 %v2191_v5, 0.0  ;;  %v7850_v7 = vsub.f32 %v6344_v20, %v6286_v57  ;;  %2633 = vst [vmem:[#allocation2 + $0x54] sm:$0xf] %v2632_v62  ;;  %v2161_v8 = vsub.f32 %v2129_v32, %v6286_v57  ;;  %v2638_v5 = vld [vmem:[#allocation2 + $0x60] sm:$0xf] }
 0x286   : > { %v6573_v33 = vpack.c.bf16 %v2219_v27, %v2219_v27  ;;  %v6575_v31 = vpack.c.bf16 %v2220_v28, %v2220_v28  ;;  %v6577_v16 = vpack.c.bf16 %v2221_v61, %v2221_v61  ;;  %v2387_v19 = vrot.slane %v6571_v26, 4  ;;  %v2642_v59 = vld [vmem:[#allocation2 + $0x68] sm:$0x1]  ;;  %v2130_v32 = vld [vmem:[#allocation3 + $0xa8] sm:$0xff] }
 0x287   : > { %v2192_v0 = vmul.f32 %v7850_v7, %v6356_v6  ;;  %v6584_v42 = vpack.c.bf16 %v2222_v37, %v2222_v37  ;;  %v6586_v1 = vpack.c.bf16 %v2223_v53, %v2223_v53  ;;  %v2645_v7 = vld [vmem:[#allocation2 + $0x6c] sm:$0xf]  ;;  %v2193_v35 = vmul.f32 %v2161_v8, %v6356_v6  ;;  %v2133_v8 = vld [vmem:[#allocation3 + $0xc0] sm:$0xff] }
 0x288   : > { %7848 = vst [vmem:[#allocation4_spill] sm:$0xff] %v6573_v33  ;;  %v7738_v12 = vshrl.u32 %v6573_v33, 16  ;;  %v2392_v36 = vshll.u32 %v6573_v33, 16  ;;  %v2397_v60 = vshrl.u32 %v6575_v31, 16  ;;  %v7740_v50 = vshrl.u32 %v6577_v16, 16 }
 0x289   : > { %7849 = vst [vmem:[#allocation5_spill] sm:$0xff] %v6577_v16  ;;  %v2636_v20 = vsel %vm5196_vm5, %v2387_v19, %v2635_v43  ;;  %v2409_v27 = vshll.u32 %v6577_v16, 16  ;;  %v2414_v28 = vshrl.u32 %v6584_v42, 16  ;;  %v7745_v61 = vshrl.u32 %v6586_v1, 16  ;;  %v2652_v33 = vld [vmem:[#allocation2 + $0x78] sm:$0xf] }
 0x28a   : > { %7851 = vst [vmem:[#allocation6_spill] sm:$0xff] %v6586_v1  ;;  %v6600_v62 = vrot.slane %v7738_v12, 7  ;;  %v6602_v37 = vrot.slane %v2397_v60, 7  ;;  %v6606_v53 = vrot.slane %v7740_v50, 7  ;;  %v2426_v43 = vshll.u32 %v6586_v1, 16 }
 0x28b   : > { %2637 = vst [vmem:[#allocation2 + $0x5c] sm:$0x1] %v2636_v20  ;;  %v6609_v19 = vrot.slane %v2414_v28, 7  ;;  %v6613_v22 = vrot.slane %v7745_v61, 7  ;;  %v2224_v20 = vmax.f32 %v2192_v0, 0.0  ;;  %v2162_v38 = vsub.f32 %v2130_v32, %v6286_v57  ;;  %v2131_v0 = vld [vmem:[#allocation3 + $0xb0] sm:$0xff] }
 0x28c   : > { %v2394_v12 = vor.u32 %v2392_v36, %v6600_v62  ;;  %v2404_v60 = vrot.slane %v6602_v37, 4  ;;  %v2411_v16 = vor.u32 %v2409_v27, %v6606_v53  ;;  %v2649_v50 = vld [vmem:[#allocation2 + $0x74] sm:$0x1]  ;;  %v2225_v61 = vmax.f32 %v2193_v35, 0.0 }
 0x28d   : > { %7852 = vst [vmem:[#allocation7_spill] sm:$0xff] %v6609_v19  ;;  %v2421_v28 = vrot.slane %v6609_v19, 4  ;;  %v2428_v23 = vor.u32 %v2426_v43, %v6613_v22  ;;  %v6622_v1 = vpack.c.bf16 %v2224_v20, %v2224_v20  ;;  %v2194_v32 = vmul.f32 %v2162_v38, %v6356_v6 }
 0x28e   : > { %v2639_v36 = vsel %vm5183_vm4, %v2394_v12, %v2638_v5  ;;  %v2643_v27 = vsel %vm5196_vm5, %v2404_v60, %v2642_v59  ;;  %v2646_v21 = vsel %vm5183_vm4, %v2411_v16, %v2645_v7  ;;  %v6636_v4 = vpack.c.bf16 %v2225_v61, %v2225_v61  ;;  %v2135_v59 = vld [vmem:[#allocation3 + $0xd0] sm:$0xff]  ;;  %v2656_v61 = vld [vmem:[#allocation2 + $0x80] sm:$0x1] }
 0x28f   : > { %2640 = vst [vmem:[#allocation2 + $0x60] sm:$0xf] %v2639_v36  ;;  %v2650_v43 = vsel %vm5196_vm5, %v2421_v28, %v2649_v50  ;;  %v2653_v35 = vsel %vm5183_vm4, %v2428_v23, %v2652_v33  ;;  %v2431_v20 = vshrl.u32 %v6622_v1, 16  ;;  %v2226_v12 = vmax.f32 %v2194_v32, 0.0  ;;  %v2659_v32 = vld [vmem:[#allocation2 + $0x84] sm:$0xf] }
 0x290   : > { %7853 = vst [vmem:[#allocation8_spill] sm:$0xff] %v6636_v4  ;;  %v2163_v5 = vsub.f32 %v2131_v0, %v6286_v57  ;;  %v2164_v16 = vsub.f32 %v2132_v63, %v6286_v57  ;;  %v2165_v38 = vsub.f32 %v2133_v8, %v6286_v57  ;;  %v7750_v50 = vshrl.u32 %v6636_v4, 16 }
 0x291   : > { %2644 = vst [vmem:[#allocation2 + $0x68] sm:$0x1] %v2643_v27  ;;  %v6641_v7 = vrot.slane %v2431_v20, 7  ;;  %v2443_v23 = vshll.u32 %v6636_v4, 16  ;;  %v2166_v33 = vsub.f32 %v2134_v52, %v6286_v57  ;;  %v6646_v60 = vpack.c.bf16 %v2226_v12, %v2226_v12  ;;  %v2136_v27 = vld [vmem:[#allocation3 + $0xd8] sm:$0xff] }
 0x292   : > { %2647 = vst [vmem:[#allocation2 + $0x6c] sm:$0xf] %v2646_v21  ;;  %v2195_v28 = vmul.f32 %v2163_v5, %v6356_v6  ;;  %v2196_v63 = vmul.f32 %v2164_v16, %v6356_v6  ;;  %v2197_v0 = vmul.f32 %v2165_v38, %v6356_v6  ;;  %v6654_v8 = vrot.slane %v7750_v50, 7 }
 0x293   : > { %7854 = vst [vmem:[#allocation9_spill] sm:$0xff] %v6641_v7  ;;  %v2438_v21 = vrot.slane %v6641_v7, 4  ;;  %v2198_v36 = vmul.f32 %v2166_v33, %v6356_v6  ;;  %v2167_v52 = vsub.f32 %v2135_v59, %v6286_v57 }
 0x294   : > { %2651 = vst [vmem:[#allocation2 + $0x74] sm:$0x1] %v2650_v43  ;;  %v2448_v43 = vshrl.u32 %v6646_v60, 16  ;;  %v2227_v20 = vmax.f32 %v2195_v28, 0.0  ;;  %v2228_v12 = vmax.f32 %v2196_v63, 0.0  ;;  %v2229_v5 = vmax.f32 %v2197_v0, 0.0 }
 0x295   : > { %7855 = vst [vmem:[#allocation10_spill] sm:$0xff] %v6646_v60  ;;  %v2445_v16 = vor.u32 %v2443_v23, %v6654_v8  ;;  %v2230_v38 = vmax.f32 %v2198_v36, 0.0  ;;  %v2199_v50 = vmul.f32 %v2167_v52, %v6356_v6  ;;  %v2663_v63 = vld [vmem:[#allocation2 + $0x8c] sm:$0x1]  ;;  %v2168_v23 = vsub.f32 %v2136_v27, %v6286_v57 }
 0x296   : > { %2654 = vst [vmem:[#allocation2 + $0x78] sm:$0xf] %v2653_v35  ;;  %v2657_v35 = vsel %vm5196_vm5, %v2438_v21, %v2656_v61  ;;  %v6663_v4 = vrot.slane %v2448_v43, 7  ;;  %v6665_v33 = vpack.c.bf16 %v2227_v20, %v2227_v20  ;;  %v6667_v59 = vpack.c.bf16 %v2228_v12, %v2228_v12 }
 0x297   : > { %2658 = vst [vmem:[#allocation2 + $0x80] sm:$0x1] %v2657_v35  ;;  %v6669_v7 = vpack.c.bf16 %v2229_v5, %v2229_v5  ;;  %v2660_v28 = vsel %vm5183_vm4, %v2445_v16, %v2659_v32  ;;  %v6673_v0 = vpack.c.bf16 %v2230_v38, %v2230_v38  ;;  %v2231_v61 = vmax.f32 %v2199_v50, 0.0  ;;  %v2139_v50 = vld [vmem:[#allocation3 + $0xf0] sm:$0xff]  ;;  %v2140_v35 = vld [vmem:[#allocation3 + $0xf8] sm:$0xff] }
 0x298   : > { %7856 = vst [vmem:[#allocation11_spill] sm:$0xff] %v6663_v4  ;;  %v2455_v21 = vrot.slane %v6663_v4, 4  ;;  %v7759_v36 = vshrl.u32 %v6665_v33, 16  ;;  %v2460_v52 = vshll.u32 %v6665_v33, 16  ;;  %v2465_v43 = vshrl.u32 %v6667_v59, 16 }
 0x299   : > { %7857 = vst [vmem:[#allocation12_spill] sm:$0xff] %v6665_v33  ;;  %v2477_v12 = vshll.u32 %v6669_v7, 16  ;;  %v2482_v32 = vshrl.u32 %v6673_v0, 16  ;;  %v6683_v5 = vpack.c.bf16 %v2231_v61, %v2231_v61  ;;  %v2666_v38 = vld [vmem:[#allocation2 + $0x90] sm:$0xf]  ;;  %v2200_v20 = vmul.f32 %v2168_v23, %v6356_v6 }
 0x29a   : > { %7858 = vst [vmem:[#allocation13_spill] sm:$0xff] %v6667_v59  ;;  %v2664_v27 = vsel %vm5196_vm5, %v2455_v21, %v2663_v63  ;;  %v6689_v16 = vrot.slane %v7759_v36, 7  ;;  %v2670_v59 = vld [vmem:[#allocation2 + $0x98] sm:$0x1]  ;;  %v2677_v33 = vld [vmem:[#allocation2 + $0xa4] sm:$0x1]  ;;  %v2171_v23 = vsub.f32 %v2139_v50, %v6286_v57 }
 0x29b   : > { %7859 = vst [vmem:[#allocation14_spill] sm:$0xff] %v6669_v7  ;;  %v6698_v4 = vrot.slane %v2482_v32, 7  ;;  %v7766_v19 = vshrl.u32 %v6683_v5, 16  ;;  %v2494_v63 = vshll.u32 %v6683_v5, 16  ;;  %v2232_v60 = vmax.f32 %v2200_v20, 0.0 }
 0x29c   : > { %7860 = vst [vmem:[#allocation15_spill] sm:$0xff] %v6673_v0  ;;  %v7863_v0 = vshrl.u32 %v6669_v7, 16  ;;  %v2462_v21 = vor.u32 %v2460_v52, %v6689_v16  ;;  %v2172_v7 = vsub.f32 %v2140_v35, %v6286_v57  ;;  %v2203_v50 = vmul.f32 %v2171_v23, %v6356_v6 }
 0x29d   : > { %2661 = vst [vmem:[#allocation2 + $0x84] sm:$0xf] %v2660_v28  ;;  %v6691_v28 = vrot.slane %v2465_v43, 7  ;;  %v2673_v43 = vld [vmem:[#allocation2 + $0x9c] sm:$0xf]  ;;  %v6709_v32 = vrot.slane %v7766_v19, 7  ;;  %v6716_v20 = vpack.c.bf16 %v2232_v60, %v2232_v60 }
 0x29e   : > { %7861 = vst [vmem:[#allocation19_spill] sm:$0xff] %v6689_v16  ;;  %v6696_v61 = vrot.slane %v7863_v0, 7  ;;  %v2489_v0 = vrot.slane %v6698_v4, 4  ;;  %v2667_v52 = vsel %vm5183_vm4, %v2462_v21, %v2666_v38  ;;  %v2680_v16 = vld [vmem:[#allocation2 + $0xa8] sm:$0xf]  ;;  %v2204_v35 = vmul.f32 %v2172_v7, %v6356_v6 }
 0x29f   : > { %7862 = vst [vmem:[#allocation21_spill] sm:$0xff] %v6691_v28  ;;  %v2472_v36 = vrot.slane %v6691_v28, 4  ;;  %v2496_v57 = vor.u32 %v2494_v63, %v6709_v32  ;;  %v2752_v38 = vld [vmem:[#allocation2 + $0x18] sm:$0x1]  ;;  %v2791_v21 = vld [vmem:[#allocation2 + $0xb4] sm:$0x1] }
 0x2a0   : > { %2665 = vst [vmem:[#allocation2 + $0x8c] sm:$0x1] %v2664_v27  ;;  %v2479_v27 = vor.u32 %v2477_v12, %v6696_v61  ;;  %v2678_v19 = vsel %vm5196_vm5, %v2489_v0, %v2677_v33  ;;  %v2235_v60 = vmax.f32 %v2203_v50, 0.0  ;;  %v2298_v23 = vshll.u32 %v6374_v58, 16 }
 0x2a1   : > { %v2671_v28 = vsel %vm5196_vm5, %v2472_v36, %v2670_v59  ;;  %2668 = vst [vmem:[#allocation2 + $0x90] sm:$0xf] %v2667_v52  ;;  %v2499_v59 = vshrl.u32 %v6716_v20, 16  ;;  %v2293_v36 = vrot.slane %v6398_v13, 4  ;;  %v2236_v33 = vmax.f32 %v2204_v35, 0.0 }
 0x2a2   : > { %v2674_v12 = vsel %vm5183_vm4, %v2479_v27, %v2673_v43  ;;  %2672 = vst [vmem:[#allocation2 + $0x98] sm:$0x1] %v2671_v28  ;;  %v2681_v43 = vsel %vm5183_vm4, %v2496_v57, %v2680_v16  ;;  %v2684_v27 = vld [vmem:[#allocation2 + $0xb0] sm:$0x1]  ;;  %v2514_v63 = vrot.slane %v6404_v9, 4  ;;  %v2519_v6 = vshll.u32 %v6378_v2, 16 }
 0x2a3   : > { %2675 = vst [vmem:[#allocation2 + $0x9c] sm:$0xf] %v2674_v12  ;;  %v6732_v7 = vrot.slane %v2499_v59, 7  ;;  %v6734_v28 = vpack.c.bf16 %v2235_v60, %v2235_v60  ;;  %v2300_v0 = vor.u32 %v2298_v23, %v6400_v3  ;;  %v7864_v13 = vshrl.u32 %v6372_v30, 16  ;;  %v2848_v52 = vld [vmem:[#allocation2 + $0x20] sm:$0x1] }
 0x2a4   : > { %2679 = vst [vmem:[#allocation2 + $0xa4] sm:$0x1] %v2678_v19  ;;  %v6741_v16 = vpack.c.bf16 %v2236_v33, %v2236_v33  ;;  %v2521_v9 = vor.u32 %v2519_v6, %v6407_v44  ;;  %v7865_v2 = vshrl.u32 %v6376_v49, 16  ;;  %v4567_v50 = vrot.slane %v2298_v23, 11  ;;  %v2887_v12 = vld [vmem:[#allocation2 + $0xbc] sm:$0x1] }
 0x2a5   : > { %v2753_v58 = vsel %vm5196_vm5, %v7864_v13, %v2752_v38  ;;  %2682 = vst [vmem:[#allocation2 + $0xa8] sm:$0xf] %v2681_v43  ;;  %v2506_v3 = vrot.slane %v6732_v7, 4  ;;  %v2525_v30 = vshrl.u32 %v6734_v28, 16  ;;  %v2528_v57 = vshll.u32 %v6734_v28, 16 }
 0x2a6   : > { %v2792_v19 = vsel %vm5196_vm5, %v7865_v2, %v2791_v21  ;;  %v2301_v35 = vsel %vm5491_vm7, %v2293_v36, %v2300_v0  ;;  %2754 = vst [vmem:[#allocation2 + $0x18] sm:$0x1] %v2753_v58  ;;  %v2694_v38 = vld [vmem:[#allocation2 + $0xc0] sm:$0xf]  ;;  %v2533_v44 = vshrl.u32 %v6741_v16, 16  ;;  %v2522_v49 = vsel %vm5491_vm7, %v2514_v63, %v2521_v9 }
 0x2a7   : > { %2599 = vst.msk [vmem:[#allocation2 + $0x1c] sm:$0xf] %vm560_vm1, %v2301_v35  ;;  %v2849_v21 = vsel %vm5504_vm8, %v4567_v50, %v2848_v52  ;;  %v4580_v59 = vrot.slane %v2519_v6, 11  ;;  %v2685_v60 = vsel %vm5196_vm5, %v2506_v3, %v2684_v27  ;;  %v6763_v23 = vrot.slane %v2525_v30, 7  ;;  %v2698_v13 = vld [vmem:[#allocation2 + $0xc8] sm:$0x1] }
 0x2a8   : > { %2690 = vst.msk [vmem:[#allocation2 + $0xb8] sm:$0xf] %vm560_vm1, %v2522_v49  ;;  %v2276_v36 = vrot.slane %v6411_v40, 4  ;;  %v2281_v43 = vshll.u32 %v6382_v14, 16  ;;  %v6768_v33 = vrot.slane %v2533_v44, 7  ;;  %v2310_v6 = vrot.slane %v6424_v34, 4 }
 0x2a9   : > { %2686 = vst [vmem:[#allocation2 + $0xb0] sm:$0x1] %v2685_v60  ;;  %v2888_v63 = vsel %vm5504_vm8, %v4580_v59, %v2887_v12  ;;  %v2315_v27 = vshll.u32 %v6386_v18, 16  ;;  %v2530_v0 = vor.u32 %v2528_v57, %v6763_v23  ;;  %v2327_v58 = vrot.slane %v6500_v11, 4  ;;  %v2860_v28 = vld [vmem:[#allocation2 + $0x50] sm:$0x1] }
 0x2aa   : > { %2793 = vst [vmem:[#allocation2 + $0xb4] sm:$0x1] %v2792_v19  ;;  %v2283_v40 = vor.u32 %v2281_v43, %v6418_v39  ;;  %v2332_v52 = vshll.u32 %v6478_v17, 16  ;;  %v2540_v9 = vrot.slane %v6768_v33, 4  ;;  %v2344_v2 = vrot.slane %v6506_v15, 4 }
 0x2ab   : > { %2850 = vst [vmem:[#allocation2 + $0x20] sm:$0x1] %v2849_v21  ;;  %v2317_v34 = vor.u32 %v2315_v27, %v6439_v56  ;;  %v2349_v50 = vshll.u32 %v6482_v46, 16  ;;  %v2695_v19 = vsel %vm5183_vm4, %v2530_v0, %v2694_v38  ;;  %v2361_v12 = vrot.slane %v6514_v51, 4  ;;  %v7868_v0 = vld [vmem:[#allocation9_spill] sm:$0xff]  ;;  %vm7900_vm4 = vmmov %vm7899_vm3 }
 0x2ac   : > { %2889 = vst [vmem:[#allocation2 + $0xbc] sm:$0x1] %v2888_v63  ;;  %v2284_v39 = vsel %vm5491_vm7, %v2276_v36, %v2283_v40  ;;  %v2334_v11 = vor.u32 %v2332_v52, %v6502_v25  ;;  %v2699_v56 = vsel %vm5196_vm5, %v2540_v9, %v2698_v13  ;;  %v2366_v3 = vshll.u32 %v6508_v41, 16  ;;  %v7866_v36 = vld [vmem:[#allocation10_spill] sm:$0xff] }
 0x2ad   : > { %2696 = vst [vmem:[#allocation2 + $0xc0] sm:$0xf] %v2695_v19  ;;  %v2318_v15 = vsel %vm5491_vm7, %v2310_v6, %v2317_v34  ;;  %v2351_v24 = vor.u32 %v2349_v50, %v6510_v54  ;;  %v2378_v25 = vrot.slane %v6540_v10, 4  ;;  %v2383_v51 = vshll.u32 %v6542_v47, 16  ;;  %v7871_v34 = vld [vmem:[#allocation13_spill] sm:$0xff] }
 0x2ae   : > { %2700 = vst [vmem:[#allocation2 + $0xc8] sm:$0x1] %v2699_v56  ;;  %v2335_v57 = vsel %vm5491_vm7, %v2327_v58, %v2334_v11  ;;  %v2395_v35 = vrot.slane %v6600_v62, 4  ;;  %v2368_v54 = vor.u32 %v2366_v3, %v6532_v45  ;;  %v2400_v44 = vshll.u32 %v6575_v31, 16  ;;  %v7870_v58 = vld [vmem:[#allocation19_spill] sm:$0xff] }
 0x2af   : > { %2592 = vst.msk [vmem:[#allocation2 + $0x10] sm:$0xf] %vm560_vm1, %v2284_v39  ;;  %v2352_v38 = vsel %vm5491_vm7, %v2344_v2, %v2351_v24  ;;  %v2412_v49 = vrot.slane %v6606_v53, 4  ;;  %v2385_v10 = vor.u32 %v2383_v51, %v6571_v26  ;;  %v2417_v62 = vshll.u32 %v6584_v42, 16  ;;  %v7867_v26 = vld [vmem:[#allocation7_spill] sm:$0xff]  ;;  %v7873_v24 = vld [vmem:[#allocation21_spill] sm:$0xff] }
 0x2b0   : > { %2606 = vst.msk [vmem:[#allocation2 + $0x28] sm:$0xf] %vm560_vm1, %v2318_v15  ;;  %v2429_v21 = vrot.slane %v6613_v22, 4  ;;  %v2434_v59 = vshll.u32 %v6622_v1, 16  ;;  %v2369_v45 = vsel %vm5491_vm7, %v2361_v12, %v2368_v54  ;;  %v2402_v53 = vor.u32 %v2400_v44, %v6602_v37  ;;  %v7872_v12 = vld [vmem:[#allocation15_spill] sm:$0xff] }
 0x2b1   : > { %2613 = vst.msk [vmem:[#allocation2 + $0x34] sm:$0xf] %vm560_vm1, %v2335_v57  ;;  %v2446_v60 = vrot.slane %v6654_v8, 4  ;;  %v2451_v63 = vshll.u32 %v7866_v36, 16  ;;  %v2386_v22 = vsel %vm5491_vm7, %v2378_v25, %v2385_v10  ;;  %v2419_v6 = vor.u32 %v2417_v62, %v7867_v26  ;;  %v7869_v8 = vld [vmem:[#allocation11_spill] sm:$0xff] }
 0x2b2   : > { %2620 = vst.msk [vmem:[#allocation2 + $0x40] sm:$0xf] %vm560_vm1, %v2352_v38  ;;  %v2436_v13 = vor.u32 %v2434_v59, %v7868_v0  ;;  %v2403_v37 = vsel %vm5491_vm7, %v2395_v35, %v2402_v53  ;;  %v2463_v9 = vrot.slane %v7870_v58, 4  ;;  %v2468_v2 = vshll.u32 %v7871_v34, 16  ;;  %v2749_v10 = vld [vmem:[#allocation2 + $0xc] sm:$0x1] }
 0x2b3   : > { %2627 = vst.msk [vmem:[#allocation2 + $0x4c] sm:$0xf] %vm560_vm1, %v2369_v45  ;;  %v2453_v40 = vor.u32 %v2451_v63, %v7869_v8  ;;  %v2420_v19 = vsel %vm5491_vm7, %v2412_v49, %v2419_v6  ;;  %v2480_v11 = vrot.slane %v6696_v61, 4  ;;  %v2485_v56 = vshll.u32 %v7872_v12, 16  ;;  %v2758_v53 = vld [vmem:[#allocation2 + $0x30] sm:$0x1] }
 0x2b4   : > { %2634 = vst.msk [vmem:[#allocation2 + $0x58] sm:$0xf] %vm560_vm1, %v2386_v22  ;;  %v2437_v39 = vsel %vm5491_vm7, %v2429_v21, %v2436_v13  ;;  %v2470_v57 = vor.u32 %v2468_v2, %v7873_v24  ;;  %v2497_v25 = vrot.slane %v6709_v32, 4  ;;  %v2502_v35 = vshll.u32 %v6716_v20, 16  ;;  %v2761_v6 = vld [vmem:[#allocation2 + $0x3c] sm:$0x1] }
 0x2b5   : > { %2641 = vst.msk [vmem:[#allocation2 + $0x64] sm:$0xf] %vm560_vm1, %v2403_v37  ;;  %v2454_v15 = vsel %vm5491_vm7, %v2446_v60, %v2453_v40  ;;  %v2487_v61 = vor.u32 %v2485_v56, %v6698_v4  ;;  %v2531_v38 = vrot.slane %v6763_v23, 4  ;;  %v2536_v54 = vshll.u32 %v6741_v16, 16  ;;  %v2755_v23 = vld [vmem:[#allocation2 + $0x24] sm:$0x1] }
 0x2b6   : > { %2648 = vst.msk [vmem:[#allocation2 + $0x70] sm:$0xf] %vm560_vm1, %v2420_v19  ;;  %v2471_v49 = vsel %vm5491_vm7, %v2463_v9, %v2470_v57  ;;  %v2504_v32 = vor.u32 %v2502_v35, %v6732_v7  ;;  %v7874_v60 = vld [vmem:[#allocation16_spill] sm:$0xff]  ;;  %v2764_v37 = vld [vmem:[#allocation2 + $0x48] sm:$0x1]  ;;  %v4569_v14 = vrot.slane %v2332_v52, 11 }
 0x2b7   : > { %2655 = vst.msk [vmem:[#allocation2 + $0x7c] sm:$0xf] %vm560_vm1, %v2437_v39  ;;  %v2488_v21 = vsel %vm5491_vm7, %v2480_v11, %v2487_v61  ;;  %v2538_v4 = vor.u32 %v2536_v54, %v6768_v33  ;;  %v7875_v22 = vshrl.u32 %v7874_v60, 16  ;;  %v7876_v33 = vld [vmem:[#allocation17_spill] sm:$0xff]  ;;  %v7878_v8 = vld [vmem:[#allocation18_spill] sm:$0xff]  ;;  %v7880_v9 = vld [vmem:[#allocation20_spill] sm:$0xff] }
 0x2b8   : > { %2662 = vst.msk [vmem:[#allocation2 + $0x88] sm:$0xf] %vm560_vm1, %v2454_v15  ;;  %v2505_v45 = vsel %vm5491_vm7, %v2497_v25, %v2504_v32  ;;  %v7877_v0 = vshrl.u32 %v7876_v33, 16  ;;  %v7879_v40 = vshrl.u32 %v7878_v8, 16  ;;  %v2767_v58 = vld [vmem:[#allocation2 + $0x54] sm:$0x1] }
 0x2b9   : > { %2669 = vst.msk [vmem:[#allocation2 + $0x94] sm:$0xf] %vm560_vm1, %v2471_v49  ;;  %v2539_v7 = vsel %vm5491_vm7, %v2531_v38, %v2538_v4  ;;  %v2750_v26 = vsel %vm5196_vm5, %v7875_v22, %v2749_v10  ;;  %v7881_v19 = vshrl.u32 %v7880_v9, 16  ;;  %v2770_v11 = vld [vmem:[#allocation2 + $0x60] sm:$0x1]  ;;  %v7882_v15 = vld [vmem:[#allocation22_spill] sm:$0xff] }
 0x2ba   : > { %2676 = vst.msk [vmem:[#allocation2 + $0xa0] sm:$0xf] %vm560_vm1, %v2488_v21  ;;  %v2756_v13 = vsel %vm5196_vm5, %v7877_v0, %v2755_v23  ;;  %v2759_v55 = vsel %vm5196_vm5, %v7879_v40, %v2758_v53  ;;  %v7883_v24 = vshrl.u32 %v7882_v15, 16  ;;  %v2773_v25 = vld [vmem:[#allocation2 + $0x6c] sm:$0x1]  ;;  %v7884_v61 = vld [vmem:[#allocation23_spill] sm:$0xff] }
 0x2bb   : > { %2683 = vst.msk [vmem:[#allocation2 + $0xac] sm:$0xf] %vm560_vm1, %v2505_v45  ;;  %v2762_v39 = vsel %vm5196_vm5, %v7881_v19, %v2761_v6  ;;  %v7885_v38 = vshrl.u32 %v7884_v61, 16  ;;  %v2776_v32 = vld [vmem:[#allocation2 + $0x78] sm:$0x1]  ;;  %v7888_v45 = vld [vmem:[#allocation5_spill] sm:$0xff] }
 0x2bc   : > { %2697 = vst.msk [vmem:[#allocation2 + $0xc4] sm:$0xf] %vm560_vm1, %v2539_v7  ;;  %v2765_v57 = vsel %vm5196_vm5, %v7883_v24, %v2764_v37  ;;  %v7886_v10 = vld [vmem:[#allocation4_spill] sm:$0xff]  ;;  %v2779_v23 = vld [vmem:[#allocation2 + $0x84] sm:$0x1]  ;;  %v7889_v53 = vshrl.u32 %v7888_v45, 16 }
 0x2bd   : > { %2751 = vst [vmem:[#allocation2 + $0xc] sm:$0x1] %v2750_v26  ;;  %v2768_v49 = vsel %vm5196_vm5, %v7885_v38, %v2767_v58  ;;  %v7887_v21 = vshrl.u32 %v7886_v10, 16  ;;  %v2782_v60 = vld [vmem:[#allocation2 + $0x90] sm:$0x1]  ;;  %v7890_v22 = vld [vmem:[#allocation6_spill] sm:$0xff] }
 0x2be   : > { %2757 = vst [vmem:[#allocation2 + $0x24] sm:$0x1] %v2756_v13  ;;  %v2774_v7 = vsel %vm5196_vm5, %v7889_v53, %v2773_v25  ;;  %v7891_v26 = vshrl.u32 %v7890_v22, 16  ;;  %v2785_v33 = vld [vmem:[#allocation2 + $0x9c] sm:$0x1]  ;;  %v4566_v19 = vrot.slane %v2281_v43, 11 }
 0x2bf   : > { %2760 = vst [vmem:[#allocation2 + $0x30] sm:$0x1] %v2759_v55  ;;  %v2771_v4 = vsel %vm5196_vm5, %v7887_v21, %v2770_v11  ;;  %v7892_v0 = vld [vmem:[#allocation8_spill] sm:$0xff]  ;;  %v2788_v8 = vld [vmem:[#allocation2 + $0xa8] sm:$0x1]  ;;  %v7898_v25 = vshrl.u32 %v6683_v5, 16 }
 0x2c0   : > { %2763 = vst [vmem:[#allocation2 + $0x3c] sm:$0x1] %v2762_v39  ;;  %v2777_v6 = vsel %vm5196_vm5, %v7891_v26, %v2776_v32  ;;  %v7893_v13 = vshrl.u32 %v7892_v0, 16  ;;  %v7894_v40 = vld [vmem:[#allocation12_spill] sm:$0xff]  ;;  %v2794_v9 = vld [vmem:[#allocation2 + $0xc0] sm:$0x1] }
 0x2c1   : > { %2766 = vst [vmem:[#allocation2 + $0x48] sm:$0x1] %v2765_v57  ;;  %v7895_v55 = vshrl.u32 %v7894_v40, 16  ;;  %v7896_v39 = vld [vmem:[#allocation14_spill] sm:$0xff]  ;;  %v2845_v24 = vld [vmem:[#allocation2 + $0x14] sm:$0x1]  ;;  %v2789_v61 = vsel %vm5196_vm5, %v7898_v25, %v2788_v8  ;;  %v2795_v43 = vsel %vm5196_vm5, %v2525_v30, %v2794_v9 }
 0x2c2   : > { %2769 = vst [vmem:[#allocation2 + $0x54] sm:$0x1] %v2768_v49  ;;  %v2780_v37 = vsel %vm5196_vm5, %v7893_v13, %v2779_v23  ;;  %v7897_v11 = vshrl.u32 %v7896_v39, 16  ;;  %v4568_v57 = vrot.slane %v2315_v27, 11  ;;  %v2851_v38 = vld [vmem:[#allocation2 + $0x2c] sm:$0x1]  ;;  %v2846_v5 = vsel %vm5504_vm8, %v4566_v19, %v2845_v24 }
 0x2c3   : > { %2772 = vst [vmem:[#allocation2 + $0x60] sm:$0x1] %v2771_v4  ;;  %v2783_v58 = vsel %vm5196_vm5, %v7895_v55, %v2782_v60  ;;  %v2854_v49 = vld [vmem:[#allocation2 + $0x38] sm:$0x1]  ;;  %v4570_v18 = vrot.slane %v2349_v50, 11  ;;  %v4571_v32 = vrot.slane %v2366_v3, 11 }
 0x2c4   : > { %2775 = vst [vmem:[#allocation2 + $0x6c] sm:$0x1] %v2774_v7  ;;  %v2786_v15 = vsel %vm5196_vm5, %v7897_v11, %v2785_v33  ;;  %v2857_v27 = vld [vmem:[#allocation2 + $0x44] sm:$0x1]  ;;  %v2852_v17 = vsel %vm5504_vm8, %v4568_v57, %v2851_v38  ;;  %v4572_v29 = vrot.slane %v2383_v51, 11  ;;  %v2855_v46 = vsel %vm5504_vm8, %v4569_v14, %v2854_v49 }
 0x2c5   : > { %2778 = vst [vmem:[#allocation2 + $0x78] sm:$0x1] %v2777_v6  ;;  %v2863_v30 = vld [vmem:[#allocation2 + $0x5c] sm:$0x1]  ;;  %v4573_v52 = vrot.slane %v2400_v44, 11  ;;  %v2858_v41 = vsel %vm5504_vm8, %v4570_v18, %v2857_v27  ;;  %v4574_v3 = vrot.slane %v2417_v62, 11  ;;  %v2861_v47 = vsel %vm5504_vm8, %v4571_v32, %v2860_v28 }
 0x2c6   : > { %2781 = vst [vmem:[#allocation2 + $0x84] sm:$0x1] %v2780_v37  ;;  %v2866_v50 = vld [vmem:[#allocation2 + $0x68] sm:$0x1]  ;;  %v2869_v51 = vld [vmem:[#allocation2 + $0x74] sm:$0x1]  ;;  %v2864_v31 = vsel %vm5504_vm8, %v4572_v29, %v2863_v30 }
 0x2c7   : > { %2784 = vst [vmem:[#allocation2 + $0x90] sm:$0x1] %v2783_v58  ;;  %v4575_v10 = vrot.slane %v2434_v59, 11  ;;  %v2872_v44 = vld [vmem:[#allocation2 + $0x80] sm:$0x1]  ;;  %v4576_v21 = vrot.slane %v2451_v63, 11  ;;  %v2867_v42 = vsel %vm5504_vm8, %v4573_v52, %v2866_v50  ;;  %v2870_v1 = vsel %vm5504_vm8, %v4574_v3, %v2869_v51 }
 0x2c8   : > { %2787 = vst [vmem:[#allocation2 + $0x9c] sm:$0x1] %v2786_v15  ;;  %v2875_v62 = vld [vmem:[#allocation2 + $0x8c] sm:$0x1]  ;;  %v4577_v4 = vrot.slane %v2468_v2, 11  ;;  %v4578_v23 = vrot.slane %v2485_v56, 11 }
 0x2c9   : > { %2790 = vst [vmem:[#allocation2 + $0xa8] sm:$0x1] %v2789_v61  ;;  %v2878_v59 = vld [vmem:[#allocation2 + $0x98] sm:$0x1]  ;;  %v2873_v36 = vsel %vm5504_vm8, %v4575_v10, %v2872_v44  ;;  %v2881_v63 = vld [vmem:[#allocation2 + $0xa4] sm:$0x1]  ;;  %v2876_v34 = vsel %vm5504_vm8, %v4576_v21, %v2875_v62 }
 0x2ca   : > { %2796 = vst [vmem:[#allocation2 + $0xc0] sm:$0x1] %v2795_v43  ;;  %v4579_v45 = vrot.slane %v2502_v35, 11  ;;  %v2884_v2 = vld [vmem:[#allocation2 + $0xb0] sm:$0x1]  ;;  %v4581_v53 = vrot.slane %v2536_v54, 11  ;;  %v2879_v12 = vsel %vm5504_vm8, %v4577_v4, %v2878_v59  ;;  %v2882_v7 = vsel %vm5504_vm8, %v4578_v23, %v2881_v63 }
 0x2cb   : > { %2847 = vst [vmem:[#allocation2 + $0x14] sm:$0x1] %v2846_v5  ;;  %v2890_v56 = vld [vmem:[#allocation2 + $0xc8] sm:$0x1]  ;;  %v2893_v16 = vld [vmem:[#allocation2 + $0x18] sm:$0xf] }
 0x2cc   : > { %2853 = vst [vmem:[#allocation2 + $0x2c] sm:$0x1] %v2852_v17  ;;  %v2885_v20 = vsel %vm5504_vm8, %v4579_v45, %v2884_v2  ;;  %v2891_v35 = vsel %vm5504_vm8, %v4581_v53, %v2890_v56  ;;  %v2894_v54 = vld [vmem:[#allocation2 + $0x1c] sm:$0xf]  ;;  %v2895_v60 = vld [vmem:[#allocation2 + $0x20] sm:$0x1] }
 0x2cd   : > { %2856 = vst [vmem:[#allocation2 + $0x38] sm:$0x1] %v2855_v46  ;;  %v2899_v22 = vld [vmem:[#allocation2 + $0xb4] sm:$0xf]  ;;  %v2900_v26 = vld [vmem:[#allocation2 + $0xb8] sm:$0xf] }
 0x2ce   : > { %2859 = vst [vmem:[#allocation2 + $0x44] sm:$0x1] %v2858_v41  ;;  %v2901_v6 = vld [vmem:[#allocation2 + $0xbc] sm:$0x1]  ;;  %v7008_v33 = vmov 0.0  }
 0x2cf   : > { %2862 = vst [vmem:[#allocation2 + $0x50] sm:$0x1] %v2861_v47 }
 0x2d0   : > { %2865 = vst [vmem:[#allocation2 + $0x5c] sm:$0x1] %v2864_v31 }
 0x2d1   : > { %2868 = vst [vmem:[#allocation2 + $0x68] sm:$0x1] %v2867_v42 }
 0x2d2   : > { %2871 = vst [vmem:[#allocation2 + $0x74] sm:$0x1] %v2870_v1 }
 0x2d3   : > { %2874 = vst [vmem:[#allocation2 + $0x80] sm:$0x1] %v2873_v36 }
 0x2d4   : > { %2877 = vst [vmem:[#allocation2 + $0x8c] sm:$0x1] %v2876_v34 }
 0x2d5   : > { %2880 = vst [vmem:[#allocation2 + $0x98] sm:$0x1] %v2879_v12 }
 0x2d6   : > { %2883 = vst [vmem:[#allocation2 + $0xa4] sm:$0x1] %v2882_v7 }
 0x2d7   : > { %2886 = vst [vmem:[#allocation2 + $0xb0] sm:$0x1] %v2885_v20 }
 0x2d8   : > { %2892 = vst [vmem:[#allocation2 + $0xc8] sm:$0x1] %v2891_v35 }
 0x2d9   : > { %2896 = vst.msk [vmem:[#allocation2] sm:$0xf] %vm560_vm1, %v2893_v16 }
 0x2da   : > { %2897 = vst.msk [vmem:[#allocation2 + $0x4] sm:$0xf] %vm560_vm1, %v2894_v54 }
 0x2db   : > { %2898 = vst.msk [vmem:[#allocation2 + $0x8] sm:$0x1] %vm7899_vm3, %v2895_v60 }
 0x2dc   : > { %2902 = vst.msk [vmem:[#allocation2 + $0xcc] sm:$0xf] %vm560_vm1, %v2899_v22 }
 0x2dd   : > { %2903 = vst.msk [vmem:[#allocation2 + $0xd0] sm:$0xf] %vm560_vm1, %v2900_v26 }
 0x2de   : > { %2904 = vst.msk [vmem:[#allocation2 + $0xd4] sm:$0x1] %vm7900_vm4, %v2901_v6 }
 0x2df LB: >> { %s4678_s15 = smul.u32 96, %s5093_s14  ;;  %s5103_s18 = smov 24   ;;  %vm7901_vm1 = vcmask 1041408   ;;  %vm7902_vm5 = vcmask 228352   ;;  %vm7903_vm7 = vcmask 261120   ;;  %vm7904_vm8 = vcmask 293888   ;;  %s5093_s14 = sphi %s7010_s14, %s2910_s14   ;;  %v5089_v33 = vphi %v7008_v33, %v7927_v33   ;;  %v5085_v48 = vphi %v7006_v48, %v7926_v48  }
 0x2e0   : >> { %s5104_s19 = smov 12   ;;  %s5105_s21 = smov 8   ;;  %vm7905_vm11 = vmmov %vm7902_vm5 }
 0x2e1   : >> { %s7022_s16 = scalar_lea.vmem [#allocation2], %s4678_s15  ;;  %s5106_s22 = smov 32   ;;  %vm7906_vm6 = vmmov %vm7903_vm7 }
 0x2e2   : >> { %s5107_s23 = smov 4   ;;  %s5108_s24 = smov 20   ;;  %vm7907_vm3 = vmmov %vm7904_vm8 }
 0x2e3   : >> { %s5109_s25 = smov 16   ;;  %s5110_s26 = smov 28   ;;  %vm7908_vm4 = vmmov %vm7902_vm5 }
 0x2e4   : >> { %s4681_s6 = sshll.u32 %s5093_s14, 7  ;;  %s2910_s14 = sadd.s32 1, %s5093_s14  }
 0x2e5   : >> { %v4587_v0 = vld [vmem:[%s7022_s16 + $0xc] sm:$0xff]   ;;  %v4836_v37 = vld [vmem:[%s7022_s16] sm:$0xf0]  ;;  %v2933_v8 = vld [vmem:[%s7022_s16 + $0x8] sm:$0x1]  ;;  %s7428_s7 = scalar_lea.vmem [#allocation3], %s4681_s6 }
 0x2e6   : >> { %v7026_v13 = vld [vmem:[%s7022_s16 + $0xc] sm:$0xf0]  ;;  %v4837_v40 = vld [vmem:[%s7022_s16] sm:$0xe]  ;;  %v3069_v55 = vunpack.c.l.b16 %v2933_v8  ;;  %v4860_v58 = vld [vmem:[%s7022_s16 + $0x18] sm:$0xf0]  ;;  %3303 = vrot.lane.b32.xlu1 %v4587_v0, %s5104_s19 }
 0x2e7   : >> { %v4637_v9 = vld [vmem:[%s7022_s16 + $0x20] sm:$0x1]  ;;  %v4838_v19 = vor.u32 %v4837_v40, %v4836_v37  ;;  %v4861_v39 = vld [vmem:[%s7022_s16 + $0x18] sm:$0xe]  ;;  %v4603_v24 = vld [vmem:[%s7022_s16 + $0x14] sm:$0x1] }
 0x2e8   : >> { %v3583_v11 = vunpack.c.l.b16 %v4637_v9  ;;  %v7035_v15 = vld [vmem:[%s7022_s16] sm:$0xff]   ;;  %v3077_v57 = vpack.c.b16 %v3069_v55, %v3069_v55  ;;  %v4862_v25 = vor.u32 %v4861_v39, %v4860_v58  ;;  %v7040_v38 = vld [vmem:[%s7022_s16 + $0x18] sm:$0xff]   ;;  %v3327_v18 = vunpack.c.l.b16 %v4603_v24  ;;  %v5004_v21 = vld [vmem:[%s7022_s16 + $0xc] sm:$0xe]  ;;  %p2907_p5 = scmp.ge.s32.totalorder %s2910_s14, 2  }
 0x2e9   : >> { %v3087_v61 = vshrl.u32 %v7035_v15, 16  ;;  %v3223_v14 = vrot.slane %v4838_v19, 1  ;;  %v3089_v49 = vshll.u32 %v7035_v15, 16  ;;  %3559 = vrot.lane.b32.xlu2 %v7040_v38, %s5103_s18  ;;  %v3346_v46 = vshll.u32 %v4587_v0, 16  ;;  %v2937_v30 = vld [vmem:[%s7022_s16 + $0x38] sm:$0x1] }
 0x2ea   : >> { %v3591_v43 = vpack.c.b16 %v3583_v11, %v3583_v11  ;;  %v3224_v5 = vrot.slane %v3077_v57, 1  ;;  %v3735_v27 = vrot.slane %v4862_v25, 1  ;;  %v3094_v32 = vshll.u32 %v3077_v57, 16  ;;  %v2935_v47 = vld [vmem:[%s7022_s16 + $0x20] sm:$0x1]  ;;  %v7054_v62 = vld [vmem:[%s7022_s16 + $0x30] sm:$0xff]  }
 0x2eb   : >> { %v3091_v28 = vrot.slane %v3089_v49, 1  ;;  %v3335_v29 = vpack.c.b16 %v3327_v18, %v3327_v18  ;;  %v3602_v3 = vshll.u32 %v7040_v38, 16  ;;  %v3344_v51 = vshrl.u32 %v4587_v0, 16  ;;  %v7058_v59 = vld [vmem:[%s7022_s16 + $0x24] sm:$0xff]   ;;  %v4605_v35 = vld [vmem:[%s7022_s16 + $0x2c] sm:$0x1] }
 0x2ec   : >> { %v3736_v17 = vrot.slane %v3591_v43, 1  ;;  %v3225_v52 = vsel %vm1204_vm9, %v3223_v14, %v3224_v5  ;;  %v3096_v50 = vrot.slane %v3094_v32, 1  ;;  %v3348_v10 = vrot.slane %v3346_v46, 1  ;;  %v7061_v23 = vld [vmem:[%s7022_s16 + $0x24] sm:$0xf0]  ;;  %v4595_v58 = vld [vmem:[%s7022_s16 + $0x3c] sm:$0xff]  }
 0x2ed   : >> { %3247 = vrot.lane.b32.xlu0 %v3225_v52, %s5105_s21  ;;  %v3092_v41 = vor.u32 %v3091_v28, %v3087_v61  ;;  %v3351_v31 = vshll.u32 %v3335_v29, 16  ;;  %v3073_v44 = vunpack.c.l.b16 %v2937_v30  ;;  %v3600_v4 = vshrl.u32 %v7040_v38, 16  ;;  %v4840_v8 = vld [vmem:[%s7022_s16 + $0x18] sm:$0xe]  ;;  %v7082_v9 = vld [vmem:[%s7022_s16 + $0x3c] sm:$0xf0] }
 0x2ee   : >> { %v3737_v42 = vsel %vm1204_vm9, %v3735_v27, %v3736_v17  ;;  %v3071_v1 = vunpack.c.l.b16 %v2935_v47  ;;  %v3604_v63 = vrot.slane %v3602_v3, 1  ;;  %v3607_v45 = vshll.u32 %v3591_v43, 16  ;;  %v4607_v14 = vld [vmem:[%s7022_s16 + $0x44] sm:$0x1]  ;;  %v4842_v28 = vld [vmem:[%s7022_s16 + $0x30] sm:$0xf0] }
 0x2ef   : >> { %v3097_v36 = vsel %vm1067_vm10, %v3092_v41, %v3096_v50  ;;  %3759 = vrot.lane.b32.xlu1 %v3737_v42, %s5106_s22  ;;  %v3349_v34 = vor.u32 %v3348_v10, %v3344_v51  ;;  %v3353_v2 = vrot.slane %v3351_v31, 1  ;;  %v7065_v53 = vpack.c.b16 %v3073_v44, %v3073_v44  ;;  %v5007_v51 = vld [vmem:[%s7022_s16 + $0x24] sm:$0xe]  ;;  %v4639_v10 = vld [vmem:[%s7022_s16 + $0x38] sm:$0x1] }
 0x2f0   : >> { %v3137_v12 = vshll.u32 %v7054_v62, 16  ;;  %v3079_v56 = vpack.c.b16 %v3071_v1, %v3071_v1  ;;  %v5005_v7 = vor.u32 %v5004_v21, %v7026_v13  ;;  %v3480_v20 = vrot.slane %v3335_v29, 1  ;;  %v4839_v13 = vld [vmem:[%s7022_s16 + $0x18] sm:$0xf0]  ;;  %v4843_v29 = vld [vmem:[%s7022_s16 + $0x30] sm:$0xe] }
 0x2f1   : >> { %v3135_v16 = vshrl.u32 %v7054_v62, 16  ;;  %v7072_v22 = vor.u32 %v3604_v63, %v3600_v4  ;;  %v3609_v26 = vrot.slane %v3607_v45, 1  ;;  %v3142_v0 = vshll.u32 %v7065_v53, 16  ;;  %v7108_v63 = vld [vmem:[%s7022_s16 + $0xc] sm:$0xff]  }
 0x2f2   : >> { %v3479_v54 = vrot.slane %v5005_v7, 1  ;;  %v3118_v60 = vshll.u32 %v3079_v56, 16  ;;  %v3139_v6 = vrot.slane %v3137_v12, 1  ;;  %v3354_v37 = vsel %vm1067_vm10, %v3349_v34, %v3353_v2  ;;  %v7111_v45 = vld [vmem:[%s7022_s16 + $0xc] sm:$0xf0] }
 0x2f3   : >> { %v3329_v55 = vunpack.c.l.b16 %v4605_v35  ;;  %v3610_v39 = vsel %vm1067_vm10, %v7072_v22, %v3609_v26  ;;  %v3144_v24 = vrot.slane %v3142_v0, 1  ;;  %v4841_v57 = vor.u32 %v4840_v8, %v4839_v13  ;;  %v5010_v7 = vld [vmem:[%s7022_s16 + $0x3c] sm:$0xe]  ;;  %v4641_v13 = vld [vmem:[%s7022_s16 + $0x50] sm:$0x1] }
 0x2f4   : >> { %v3481_v40 = vsel %vm1204_vm9, %v3479_v54, %v3480_v20  ;;  %v3120_v19 = vrot.slane %v3118_v60, 1  ;;  %v7087_v11 = vor.u32 %v3139_v6, %v3135_v16  ;;  %v3370_v61 = vshll.u32 %v7058_v59, 16  ;;  %v2934_v20 = vld [vmem:[%s7022_s16 + $0x14] sm:$0x1] }
 0x2f5   : >> { %3182 = vrot.lane.b32.xlu0 %v3097_v36, %s5107_s23  ;;  %3503 = vrot.lane.b32.xlu2 %v3481_v40, %s5108_s24  ;;  %v3337_v25 = vpack.c.b16 %v3329_v55, %v3329_v55  ;;  %v3229_v18 = vrot.slane %v4841_v57, 1  ;;  %v3230_v5 = vrot.slane %v3079_v56, 1  ;;  %v3368_v27 = vshrl.u32 %v7058_v59, 16  ;;  %v4864_v57 = vld [vmem:[%s7022_s16 + $0x30] sm:$0xe] }
 0x2f6   : >> { %v3121_v43 = vsel %vm1067_vm10, %v7072_v22, %v3120_v19  ;;  %v3145_v49 = vsel %vm1067_vm10, %v7087_v11, %v3144_v24  ;;  %v3372_v32 = vrot.slane %v3370_v61, 1  ;;  %v3331_v46 = vunpack.c.l.b16 %v4607_v14  ;;  %v4863_v24 = vld [vmem:[%s7022_s16 + $0x30] sm:$0xf0] }
 0x2f7   : >> { %3439 = vrot.lane.b32.xlu1 %v3354_v37, %s5109_s25  ;;  %v3375_v17 = vshll.u32 %v3337_v25, 16  ;;  %v3231_v30 = vsel %vm1204_vm9, %v3229_v18, %v3230_v5  ;;  %v4844_v52 = vor.u32 %v4843_v29, %v4842_v28  ;;  %v3394_v47 = vshll.u32 %v4595_v58, 16  ;;  %v2939_v28 = vld [vmem:[%s7022_s16 + $0x50] sm:$0x1] }
 0x2f8   : >> { %v3373_v41 = vor.u32 %v3372_v32, %v3368_v27  ;;  %v3339_v3 = vpack.c.b16 %v3331_v46, %v3331_v46  ;;  %v3236_v44 = vrot.slane %v7065_v53, 1  ;;  %v3585_v21 = vunpack.c.l.b16 %v4639_v10  ;;  %v5013_v27 = vld [vmem:[%s7022_s16 + $0xc] sm:$0xe] }
 0x2f9   : >> { %v3377_v50 = vrot.slane %v3375_v17, 1  ;;  %v3235_v31 = vrot.slane %v4844_v52, 1  ;;  %v3392_v4 = vshrl.u32 %v4595_v58, 16  ;;  %v3396_v1 = vrot.slane %v3394_v47, 1  ;;  %v4866_v32 = vld [vmem:[%s7022_s16 + $0x48] sm:$0xf0] }
 0x2fa   : >> { %v3399_v36 = vshll.u32 %v3339_v3, 16  ;;  %v5008_v2 = vor.u32 %v5007_v51, %v7061_v23  ;;  %v3593_v56 = vpack.c.b16 %v3585_v21, %v3585_v21  ;;  %v3486_v16 = vrot.slane %v3337_v25, 1  ;;  %v4867_v17 = vld [vmem:[%s7022_s16 + $0x48] sm:$0xe] }
 0x2fb   : >> { %v3378_v42 = vsel %vm1067_vm10, %v3373_v41, %v3377_v50  ;;  %v3237_v34 = vsel %vm1204_vm9, %v3235_v31, %v3236_v44  ;;  %v3397_v53 = vor.u32 %v3396_v1, %v3392_v4  ;;  %v3070_v60 = vunpack.c.l.b16 %v2934_v20  ;;  %v4845_v4 = vld [vmem:[%s7022_s16 + $0x48] sm:$0xf0]  ;;  %v4846_v1 = vld [vmem:[%s7022_s16 + $0x48] sm:$0xe] }
 0x2fc   : >> { %v3401_v12 = vrot.slane %v3399_v36, 1  ;;  %v3485_v35 = vrot.slane %v5008_v2, 1  ;;  %v5011_v26 = vor.u32 %v5010_v7, %v7082_v9  ;;  %v3101_v37 = vshll.u32 %v7108_v63, 16 }
 0x2fd   : >> { %3695 = vrot.lane.b32.xlu0 %v3610_v39, %s5110_s26  ;;  %3186 = vrot.lane.b32.xlu2 %v3121_v43, %s5107_s23  ;;  %v3078_v0 = vpack.c.b16 %v3070_v60, %v3070_v60  ;;  %v3492_v40 = vrot.slane %v3339_v3, 1  ;;  %v3099_v55 = vshrl.u32 %v7108_v63, 16  ;;  %v3587_v25 = vunpack.c.l.b16 %v4641_v13 }
 0x2fe   : >> { %v3402_v54 = vsel %vm1067_vm10, %v3397_v53, %v3401_v12  ;;  %v3487_v23 = vsel %vm1204_vm9, %v3485_v35, %v3486_v16  ;;  %v3491_v8 = vrot.slane %v5011_v26, 1  ;;  %v3103_v9 = vrot.slane %v3101_v37, 1  ;;  %v4599_v35 = vld [vmem:[%s7022_s16 + $0x54] sm:$0xff]   ;;  %v4848_v26 = vld [vmem:[%s7022_s16 + $0x18] sm:$0xf0] }
 0x2ff   : >> { %3190 = vrot.lane.b32.xlu1 %v3145_v49, %s5107_s23  ;;  %v3106_v39 = vshll.u32 %v3078_v0, 16  ;;  %v4865_v43 = vor.u32 %v4864_v57, %v4863_v24  ;;  %v3595_v5 = vpack.c.b16 %v3587_v25, %v3587_v25  ;;  %v3742_v41 = vrot.slane %v3593_v56, 1  ;;  %v5015_v16 = vld [vmem:[%s7022_s16 + $0x54] sm:$0xf0]  ;;  %v4609_v37 = vld [vmem:[%s7022_s16 + $0x5c] sm:$0x1] }
 0x300   : >> { %v3493_v14 = vsel %vm1204_vm9, %v3491_v8, %v3492_v40  ;;  %v3104_v49 = vor.u32 %v3103_v9, %v3099_v55  ;;  %v4868_v3 = vor.u32 %v4867_v17, %v4866_v32  ;;  %v3075_v47 = vunpack.c.l.b16 %v2939_v28  ;;  %v5016_v9 = vld [vmem:[%s7022_s16 + $0x54] sm:$0xe]  ;;  %v5018_v24 = vld [vmem:[%s7022_s16 + $0x24] sm:$0xf0] }
 0x301   : >> { %v3108_v18 = vrot.slane %v3106_v39, 1  ;;  %v3741_v52 = vrot.slane %v4865_v43, 1  ;;  %v5014_v44 = vor.u32 %v5013_v27, %v7111_v45  ;;  %v4847_v45 = vor.u32 %v4846_v1, %v4845_v4  ;;  %v4623_v39 = vld [vmem:[%s7022_s16 + $0x24] sm:$0xff]  }
 0x302   : >> { %v3747_v21 = vrot.slane %v4868_v3, 1  ;;  %v3083_v36 = vpack.c.b16 %v3075_v47, %v3075_v47  ;;  %v3418_v25 = vshll.u32 %v4599_v35, 16  ;;  %v5017_v28 = vor.u32 %v5016_v9, %v5015_v16 }
 0x303   : >> { %v3109_v50 = vsel %vm1067_vm10, %v3104_v49, %v3108_v18  ;;  %v3743_v31 = vsel %vm1204_vm9, %v3741_v52, %v3742_v41  ;;  %v3226_v12 = vrot.slane %v5014_v44, 1  ;;  %v3241_v60 = vrot.slane %v4847_v45, 1  ;;  %v4638_v49 = vld [vmem:[%s7022_s16 + $0x2c] sm:$0x1]  ;;  %v5019_v52 = vld [vmem:[%s7022_s16 + $0x24] sm:$0xe] }
 0x304   : >> { %v3166_v53 = vshll.u32 %v3083_v36, 16  ;;  %v3420_v27 = vrot.slane %v3418_v25, 1  ;;  %v3497_v3 = vrot.slane %v5017_v28, 1  ;;  %v4643_v44 = vld [vmem:[%s7022_s16 + $0x68] sm:$0x1] }
 0x305   : >> { %3251 = vrot.lane.b32.xlu0 %v3231_v30, %s5105_s21  ;;  %3307 = vrot.lane.b32.xlu2 %v7058_v59, %s5104_s19  ;;  %v3631_v59 = vshll.u32 %v3593_v56, 16  ;;  %v3655_v30 = vshll.u32 %v3595_v5, 16  ;;  %v3227_v56 = vrot.slane %v3078_v0, 1 }
 0x307   : >> { %3443 = vrot.lane.b32.xlu1 %v3378_v42, %s5109_s25  ;;  %v3633_v6 = vrot.slane %v3631_v59, 1  ;;  %v3657_v10 = vrot.slane %v3655_v30, 1  ;;  %v3748_v42 = vrot.slane %v3595_v5, 1  ;;  %v3228_v59 = vsel %vm1204_vm9, %v3226_v12, %v3227_v56  ;;  %v7190_v30 = vld [vmem:[%s7022_s16 + $0x24] sm:$0xf0]  ;;  %v7203_v56 = vld [vmem:[%s7022_s16 + $0x60] sm:$0xff]  }
 0x308   : >> { %v3416_v5 = vshrl.u32 %v4599_v35, 16  ;;  %v3589_v12 = vunpack.c.l.b16 %v4643_v44  ;;  %v3672_v25 = vshrl.u32 %v7203_v56, 16 }
 0x309   : >> { %v3634_v19 = vsel %vm1067_vm10, %v7087_v11, %v3633_v6  ;;  %v3749_v7 = vsel %vm1204_vm9, %v3747_v21, %v3748_v42  ;;  %v4849_v6 = vld [vmem:[%s7022_s16 + $0x18] sm:$0xe]  ;;  %v3612_v42 = vshrl.u32 %v4623_v39, 16 }
 0x30a   : >> { %v4850_v40 = vor.u32 %v4849_v6, %v4848_v26  ;;  %v3421_v41 = vor.u32 %v3420_v27, %v3416_v5  ;;  %v7214_v26 = vld [vmem:[%s7022_s16 + $0x3c] sm:$0xf0]  ;;  %v3674_v6 = vshll.u32 %v7203_v56, 16  ;;  %v4869_v27 = vld [vmem:[%s7022_s16 + $0x60] sm:$0xf0] }
 0x30d   : >> { %3255 = vrot.lane.b32.xlu0 %v3237_v34, %s5105_s21  ;;  %3311 = vrot.lane.b32.xlu2 %v4595_v58, %s5104_s19  ;;  %v7131_v58 = vld [vmem:[%s7022_s16 + $0x48] sm:$0xff]   ;;  %v4604_v34 = vld [vmem:[%s7022_s16 + $0x20] sm:$0x1] }
 0x30e   : >> { %v3650_v61 = vshll.u32 %v7131_v58, 16  ;;  %v3648_v29 = vshrl.u32 %v7131_v58, 16  ;;  %v3328_v20 = vunpack.c.l.b16 %v4604_v34  ;;  %v5020_v34 = vor.u32 %v5019_v52, %v5018_v24 }
 0x30f   : >> { %3447 = vrot.lane.b32.xlu1 %v3402_v54, %s5109_s25  ;;  %v3168_v54 = vrot.slane %v3166_v53, 1  ;;  %v5022_v53 = vld [vmem:[%s7022_s16 + $0x24] sm:$0xe] }
 0x310   : >> { %v3652_v46 = vrot.slane %v3650_v61, 1  ;;  %v3336_v0 = vpack.c.b16 %v3328_v20, %v3328_v20  ;;  %v3482_v61 = vrot.slane %v4850_v40, 1  ;;  %v5023_v24 = vor.u32 %v5022_v53, %v7190_v30 }
 0x312   : >> { %v7151_v51 = vor.u32 %v3652_v46, %v3648_v29  ;;  %v3363_v8 = vshll.u32 %v3336_v0, 16  ;;  %v3584_v29 = vunpack.c.l.b16 %v4638_v49  ;;  %v7187_v46 = vld [vmem:[%s7022_s16 + $0x24] sm:$0xff]  }
 0x313   : >> { %v3125_v20 = vshll.u32 %v7187_v46, 16 }
 0x314   : >> { %v3658_v2 = vsel %vm1067_vm10, %v7151_v51, %v3657_v10  ;;  %v3169_v13 = vsel %vm1067_vm10, %v7151_v51, %v3168_v54  ;;  %v3365_v57 = vrot.slane %v3363_v8, 1  ;;  %v3592_v10 = vpack.c.b16 %v3584_v29, %v3584_v29 }
 0x315   : >> { %3507 = vrot.lane.b32.xlu0 %v3487_v23, %s5108_s24  ;;  %3563 = vrot.lane.b32.xlu2 %v7054_v62, %s5103_s18  ;;  %v3242_v23 = vrot.slane %v3083_v36, 1  ;;  %v3738_v54 = vrot.slane %v5020_v34, 1  ;;  %v3123_v8 = vshrl.u32 %v7187_v46, 16  ;;  %v3127_v40 = vrot.slane %v3125_v20, 1 }
 0x316   : >> { %v3366_v18 = vsel %vm1067_vm10, %v7072_v22, %v3365_v57  ;;  %v3614_v22 = vshll.u32 %v4623_v39, 16  ;;  %v3619_v1 = vshll.u32 %v3592_v10, 16  ;;  %v2938_v57 = vld [vmem:[%s7022_s16 + $0x44] sm:$0x1] }
 0x317   : >> { %3699 = vrot.lane.b32.xlu1 %v3634_v19, %s5110_s26  ;;  %v3243_v55 = vsel %vm1204_vm9, %v3241_v60, %v3242_v23  ;;  %v3333_v19 = vunpack.c.l.b16 %v4609_v37  ;;  %v7211_v23 = vld [vmem:[%s7022_s16 + $0x3c] sm:$0xff]   ;;  %v3074_v5 = vunpack.c.l.b16 %v2938_v57 }
 0x318   : >> { %v3616_v4 = vrot.slane %v3614_v22, 1 }
 0x319   : >> { %v3341_v43 = vpack.c.b16 %v3333_v19, %v3333_v19  ;;  %v3082_v22 = vpack.c.b16 %v3074_v5, %v3074_v5 }
 0x31a   : >> { %v3617_v45 = vor.u32 %v3616_v4, %v3612_v42  ;;  %v3147_v4 = vshrl.u32 %v7211_v23, 16 }
 0x31b   : >> { %v3423_v32 = vshll.u32 %v3341_v43, 16  ;;  %v3498_v47 = vrot.slane %v3341_v43, 1  ;;  %v3128_v43 = vor.u32 %v3127_v40, %v3123_v8  ;;  %v7267_v8 = vld [vmem:[%s7022_s16 + $0x3c] sm:$0xf0] }
 0x31d   : >> { %3511 = vrot.lane.b32.xlu0 %v3493_v14, %s5108_s24  ;;  %3567 = vrot.lane.b32.xlu2 %v7131_v58, %s5103_s18  ;;  %v3483_v14 = vrot.slane %v3336_v0, 1  ;;  %v3499_v36 = vsel %vm1204_vm9, %v3497_v3, %v3498_v47  ;;  %v3597_v0 = vpack.c.b16 %v3589_v12, %v3589_v12  ;;  %v3149_v3 = vshll.u32 %v7211_v23, 16  ;;  %v5025_v47 = vld [vmem:[%s7022_s16 + $0x3c] sm:$0xe] }
 0x31e   : >> { %v5026_v12 = vor.u32 %v5025_v47, %v7214_v26  ;;  %v4851_v26 = vld [vmem:[%s7022_s16 + $0x30] sm:$0xf0] }
 0x31f   : >> { %3184 = vrot.lane.b32.xlu1 %v3109_v50, %s5107_s23  ;;  %v3484_v17 = vsel %vm1204_vm9, %v3482_v61, %v3483_v14  ;;  %v3425_v50 = vrot.slane %v3423_v32, 1  ;;  %v3676_v61 = vrot.slane %v3674_v6, 1  ;;  %v3679_v14 = vshll.u32 %v3597_v0, 16  ;;  %v4870_v32 = vld [vmem:[%s7022_s16 + $0x60] sm:$0xe] }
 0x320   : >> { %v3754_v42 = vrot.slane %v3597_v0, 1 }
 0x321   : >> { %v3426_v21 = vsel %vm1067_vm10, %v3421_v41, %v3425_v50  ;;  %v7236_v29 = vor.u32 %v3676_v61, %v3672_v25  ;;  %v3681_v30 = vrot.slane %v3679_v14, 1  ;;  %v4871_v41 = vor.u32 %v4870_v32, %v4869_v27  ;;  %v4679_v50 = vld [vmem:[%s7687_s2] sm:$0xff] }
 0x322   : >> { %v4640_v25 = vld [vmem:[%s7022_s16 + $0x44] sm:$0x1] }
 0x323   : >> { %v3682_v44 = vsel %vm1067_vm10, %v7236_v29, %v3681_v30  ;;  %v3586_v32 = vunpack.c.l.b16 %v4640_v25  ;;  %v5030_v30 = vld [vmem:[%s7022_s16 + $0x54] sm:$0xf0] }
 0x325   : >> { %3763 = vrot.lane.b32.xlu0 %v3743_v31, %s5106_s22  ;;  %3703 = vrot.lane.b32.xlu2 %v3658_v2, %s5110_s26  ;;  %v2936_v31 = vld [vmem:[%s7022_s16 + $0x2c] sm:$0x1] }
 0x326   : >> { %v3072_v2 = vunpack.c.l.b16 %v2936_v31  ;;  %v4606_v31 = vld [vmem:[%s7022_s16 + $0x38] sm:$0x1] }
 0x327   : >> { %3767 = vrot.lane.b32.xlu1 %v3749_v7, %s5106_s22  ;;  %v3621_v7 = vrot.slane %v3619_v1, 1  ;;  %v3151_v1 = vrot.slane %v3149_v3, 1  ;;  %v3594_v3 = vpack.c.b16 %v3586_v32, %v3586_v32  ;;  %v5034_v32 = vld [vmem:[%s7022_s16 + $0x54] sm:$0xe] }
 0x328   : >> { %v3080_v60 = vpack.c.b16 %v3072_v2, %v3072_v2  ;;  %v3330_v2 = vunpack.c.l.b16 %v4606_v31 }
 0x32a   : >> { %v3233_v28 = vrot.slane %v3080_v60, 1  ;;  %v3338_v20 = vpack.c.b16 %v3330_v2, %v3330_v2 }
 0x32c   : >> { %v3489_v14 = vrot.slane %v3338_v20, 1 }
 0x32d   : >> { %3249 = vrot.lane.b32.xlu0 %v3228_v59, %s5105_s21  ;;  %3194 = vrot.lane.b32.xlu2 %v3169_v13, %s5107_s23  ;;  %v3739_v59 = vrot.slane %v3592_v10, 1  ;;  %v3622_v13 = vsel %vm1067_vm10, %v3617_v45, %v3621_v7  ;;  %v3152_v45 = vor.u32 %v3151_v1, %v3147_v4  ;;  %v7294_v4 = vld [vmem:[%s7022_s16 + $0x54] sm:$0xff]  }
 0x32e   : >> { %v7297_v1 = vld [vmem:[%s7022_s16 + $0x54] sm:$0xf0]  ;;  %v3173_v25 = vshll.u32 %v7294_v4, 16 }
 0x32f   : >> { %3259 = vrot.lane.b32.xlu1 %v3243_v55, %s5105_s21  ;;  %v3130_v55 = vshll.u32 %v3080_v60, 16  ;;  %v3740_v9 = vsel %vm1204_vm9, %v3738_v54, %v3739_v59  ;;  %v3239_v54 = vrot.slane %v3082_v22, 1  ;;  %v3387_v60 = vshll.u32 %v3338_v20, 16 }
 0x331   : >> { %v3132_v49 = vrot.slane %v3130_v55, 1 }
 0x333   : >> { %v3133_v52 = vsel %vm1067_vm10, %v3128_v43, %v3132_v49  ;;  %v4854_v43 = vld [vmem:[%s7022_s16 + $0x48] sm:$0xf0]  ;;  %v4855_v49 = vld [vmem:[%s7022_s16 + $0x48] sm:$0xe] }
 0x335   : >> { %3305 = vrot.lane.b32.xlu0 %v7040_v38, %s5104_s19  ;;  %3441 = vrot.lane.b32.xlu2 %v3366_v18, %s5109_s25  ;;  %v4680_v18 = vld [vmem:[%s7687_s2 + $0x8] sm:$0xff] }
 0x337   : >> { %3505 = vrot.lane.b32.xlu1 %v3484_v17, %s5108_s24  ;;  %v3232_v17 = vrot.slane %v5023_v24, 1 }
 0x339   : >> { %v3234_v10 = vsel %vm1204_vm9, %v3232_v17, %v3233_v28  ;;  %v7282_v28 = vld [vmem:[%s7022_s16 + $0x54] sm:$0xff]  }
 0x33d   : >> { %3315 = vrot.lane.b32.xlu0 %v4599_v35, %s5104_s19  ;;  %3451 = vrot.lane.b32.xlu2 %v3426_v21, %s5109_s25  ;;  %v3915_v35 = vld [vmem:[%s7687_s2 + $0x10] sm:$0x3]  ;;  %v3753_v21 = vrot.slane %v4871_v41, 1  ;;  %v4856_v41 = vor.u32 %v4855_v49, %v4854_v43 }
 0x33e   : >> { %v3925_v16 = vunpack.c.l.b16 %v3915_v35  ;;  %v4608_v35 = vld [vmem:[%s7022_s16 + $0x50] sm:$0x1] }
 0x33f   : >> { %3515 = vrot.lane.b32.xlu1 %v3499_v36, %s5108_s24  ;;  %v3154_v36 = vshll.u32 %v3082_v22, 16  ;;  %v3755_v53 = vsel %vm1204_vm9, %v3753_v21, %v3754_v42  ;;  %v3332_v0 = vunpack.c.l.b16 %v4608_v35  ;;  %v5031_v42 = vld [vmem:[%s7022_s16 + $0x54] sm:$0xe] }
 0x340   : >> { %v3928_v37 = vpack.c.b16 %v3925_v16, %v3925_v16  ;;  %v3238_v16 = vrot.slane %v5026_v12, 1 }
 0x341   : >> { %v3156_v7 = vrot.slane %v3154_v36, 1  ;;  %v3340_v24 = vpack.c.b16 %v3332_v0, %v3332_v0  ;;  %v3494_v36 = vrot.slane %v4856_v41, 1 }
 0x342   : >> { %v3950_v19 = vsel %vm7901_vm1, %v3928_v37, 0  ;;  %v4852_v37 = vld [vmem:[%s7022_s16 + $0x30] sm:$0xe]  ;;  %v3240_v55 = vsel %vm1204_vm9, %v3238_v16, %v3239_v54  ;;  %v2940_v54 = vld [vmem:[%s7022_s16 + $0x5c] sm:$0x1]  ;;  %vm7909_vm1 = vmmov %vm7906_vm6 }
 0x343   : >> { %3957 = vmatpush.bf16.msra.mxu0 %v3950_v19  ;;  %4881 = vmatpush.bf16.msra.mxu1 %v3950_v19  ;;  %v3157_v59 = vsel %vm1067_vm10, %v3152_v45, %v3156_v7  ;;  %v3411_v5 = vshll.u32 %v3340_v24, 16 }
 0x344   : >> { %4882 = vmatpush.bf16.msra.mxu2 %v3950_v19  ;;  %4883 = vmatpush.bf16.msra.mxu3 %v3950_v19  ;;  %v4853_v19 = vor.u32 %v4852_v37, %v4851_v26 }
 0x345   : >> { %3561 = vrot.lane.b32.xlu0 %v4623_v39, %s5103_s18  ;;  %v7225_v39 = vpop.permute.xlu2 %3559  ;;  %3697 = vrot.lane.b32.xlu2 %v3622_v13, %s5110_s26  ;;  %v4627_v13 = vld [vmem:[%s7022_s16 + $0x3c] sm:$0xff]   ;;  %v3413_v22 = vrot.slane %v3411_v5, 1 }
 0x346   : >> { %v3488_v61 = vrot.slane %v4853_v19, 1  ;;  %v5032_v19 = vor.u32 %v5031_v42, %v5030_v30 }
 0x347   : >> { %3761 = vrot.lane.b32.xlu1 %v3740_v9, %s5106_s22  ;;  %3958 = vmatpush.bf16.msra.mxu0 %v4680_v18  ;;  %v3389_v9 = vrot.slane %v3387_v60, 1  ;;  %v3414_v12 = vsel %vm1067_vm10, %v7151_v51, %v3413_v22 }
 0x348   : >> { %4884 = vmatpush.bf16.msra.mxu1 %v4680_v18  ;;  %4885 = vmatpush.bf16.msra.mxu2 %v4680_v18 }
 0x349   : >> { %4886 = vmatpush.bf16.msra.mxu3 %v4680_v18  ;;  %v3390_v18 = vsel %vm1067_vm10, %v7087_v11, %v3389_v9  ;;  %v5028_v11 = vld [vmem:[%s7022_s16 + $0x3c] sm:$0xe]  ;;  %v3076_v9 = vunpack.c.l.b16 %v2940_v54 }
 0x34a   : >> { %v5029_v0 = vor.u32 %v5028_v11, %v7267_v8 }
 0x34b   : >> { %3959 = vmatpush.bf16.msra.mxu0 %v4679_v50 }
 0x34c   : >> { %4887 = vmatpush.bf16.msra.mxu1 %v4679_v50  ;;  %4888 = vmatpush.bf16.msra.mxu2 %v4679_v50 }
 0x34d   : >> { %3571 = vrot.lane.b32.xlu0 %v7203_v56, %s5103_s18  ;;  %3188 = vrot.lane.b32.xlu2 %v3133_v52, %s5107_s23  ;;  %v3638_v52 = vshll.u32 %v4627_v13, 16 }
 0x34e   : >> { %4889 = vmatpush.bf16.msra.mxu3 %v4679_v50  ;;  %v3490_v50 = vsel %vm1204_vm9, %v3488_v61, %v3489_v14  ;;  %v3660_v61 = vshrl.u32 %v7282_v28, 16 }
 0x34f   : >> { %3253 = vrot.lane.b32.xlu1 %v3234_v10, %s5105_s21  ;;  %v7251_v34 = vpop.permute.xlu2 %3503  ;;  %v4642_v10 = vld [vmem:[%s7022_s16 + $0x5c] sm:$0x1]  ;;  %v3640_v21 = vrot.slane %v3638_v52, 1  ;;  %v4610_v52 = vld [vmem:[%s7022_s16 + $0x68] sm:$0x1] }
 0x350   : >> { %v3588_v7 = vunpack.c.l.b16 %v4642_v10 }
 0x352   : >> { %v3596_v37 = vpack.c.b16 %v3588_v7, %v3588_v7 }
 0x354   : >> { %v3667_v43 = vshll.u32 %v3596_v37, 16  ;;  %v3751_v5 = vrot.slane %v3596_v37, 1 }
 0x355   : >> { %3707 = vrot.lane.b32.xlu0 %v3682_v44, %s5110_s26  ;;  %3771 = vrot.lane.b32.xlu2 %v3755_v53, %s5106_s22  ;;  %v3636_v44 = vshrl.u32 %v4627_v13, 16  ;;  %v3495_v53 = vrot.slane %v3340_v24, 1 }
 0x356   : >> { %v3669_v11 = vrot.slane %v3667_v43, 1 }
 0x357   : >> { %3309 = vrot.lane.b32.xlu1 %v7054_v62, %s5104_s19  ;;  %v7261_v6 = vpop.permute.xlu2 %3186  ;;  %v3641_v16 = vor.u32 %v3640_v21, %v3636_v44  ;;  %v3496_v60 = vsel %vm1204_vm9, %v3494_v36, %v3495_v53  ;;  %v4635_v44 = vld [vmem:[%s7022_s16 + $0x6c] sm:$0xff]   ;;  %v5035_v53 = vor.u32 %v5034_v32, %v7297_v1 }
 0x358   : >> { %v3304_v40 = vpop.permute.xlu1 %3303  ;;  %v5036_v21 = vld [vmem:[%s7022_s16 + $0x6c] sm:$0xf0]  ;;  %v3686_v37 = vshll.u32 %v4635_v44, 16  ;;  %v3781_v32 = vsel %vm1757_vm12, %v7040_v38, %v7261_v6 }
 0x359   : >> { %v3244_v54 = vrot.slane %v5035_v53, 1 }
 0x35d   : >> { %3192 = vrot.lane.b32.xlu0 %v3157_v59, %s5107_s23  ;;  %3257 = vrot.lane.b32.xlu2 %v3240_v55, %s5105_s21 }
 0x35f   : >> { %v3248_v57 = vpop.permute.xlu0 %3247  ;;  %3313 = vrot.lane.b32.xlu1 %v7131_v58, %s5104_s19  ;;  %v7279_v27 = vpop.permute.xlu2 %3307 }
 0x361   : >> { %v3760_v17 = vpop.permute.xlu1 %3759 }
 0x365   : >> { %3445 = vrot.lane.b32.xlu0 %v3390_v18, %s5109_s25  ;;  %3509 = vrot.lane.b32.xlu2 %v3490_v50, %s5108_s24  ;;  %v3750_v18 = vrot.slane %v5032_v19, 1  ;;  %v3171_v50 = vshrl.u32 %v7294_v4, 16 }
 0x367   : >> { %v3183_v47 = vpop.permute.xlu0 %3182  ;;  %3565 = vrot.lane.b32.xlu1 %v4627_v13, %s5103_s18  ;;  %v7303_v45 = vpop.permute.xlu2 %3311  ;;  %v3662_v13 = vshll.u32 %v7282_v28, 16  ;;  %v3752_v10 = vsel %vm1204_vm9, %v3750_v18, %v3751_v5 }
 0x368   : >> { %v3777_v31 = vsel %vm1757_vm12, %v7035_v15, %v3183_v47  ;;  %v3643_v15 = vshll.u32 %v3594_v3, 16 }
 0x369   : >> { %v3794_v2 = vsel %vm1774_vm13, %v3777_v31, %v3248_v57  ;;  %v3440_v20 = vpop.permute.xlu1 %3439  ;;  %v3744_v57 = vrot.slane %v5029_v0, 1  ;;  %v3664_v14 = vrot.slane %v3662_v13, 1  ;;  %v3334_v31 = vunpack.c.l.b16 %v4610_v52  ;;  %v4857_v0 = vld [vmem:[%s7022_s16 + $0x60] sm:$0xf0] }
 0x36a   : >> { %v3811_v35 = vsel %vm1791_vm14, %v3794_v2, %v3304_v40  ;;  %v3645_v26 = vrot.slane %v3643_v15, 1 }
 0x36b   : >> { %v3828_v59 = vsel %vm1808_vm15, %v3811_v35, %v3440_v20  ;;  %v3342_v15 = vpack.c.b16 %v3334_v31, %v3334_v31  ;;  %v4644_v20 = vld [vmem:[%s7022_s16 + $0x74] sm:$0x1] }
 0x36c   : >> { %v3845_v51 = vsel %vm1825_vm0, %v3828_v59, %v7251_v34  ;;  %v3745_v34 = vrot.slane %v3594_v3, 1  ;;  %v3665_v3 = vor.u32 %v3664_v14, %v3660_v61 }
 0x36d   : >> { %3449 = vrot.lane.b32.xlu0 %v3414_v12, %s5109_s25  ;;  %v3862_v40 = vsel %vm1842_vm2, %v3845_v51, %v7225_v39  ;;  %3513 = vrot.lane.b32.xlu2 %v3496_v60, %s5108_s24  ;;  %v3646_v39 = vsel %vm1067_vm10, %v3641_v16, %v3645_v26  ;;  %v3435_v16 = vshll.u32 %v3342_v15, 16  ;;  %v4858_v51 = vld [vmem:[%s7022_s16 + $0x60] sm:$0xe]  ;;  %v3590_v26 = vunpack.c.l.b16 %v4644_v20 }
 0x36e   : >> { %v3746_v41 = vsel %vm1204_vm9, %v3744_v57, %v3745_v34  ;;  %v3670_v2 = vsel %vm1067_vm10, %v3665_v3, %v3669_v11  ;;  %v3684_v57 = vshrl.u32 %v4635_v44, 16  ;;  %v3688_v34 = vrot.slane %v3686_v37, 1 }
 0x36f   : >> { %v3696_v55 = vpop.permute.xlu0 %3695  ;;  %3569 = vrot.lane.b32.xlu1 %v7282_v28, %s5103_s18  ;;  %v7325_v49 = vpop.permute.xlu2 %3563  ;;  %v3175_v28 = vrot.slane %v3173_v25, 1  ;;  %v3437_v1 = vrot.slane %v3435_v16, 1  ;;  %v3598_v19 = vpack.c.b16 %v3590_v26, %v3590_v26  ;;  %v3501_v61 = vrot.slane %v3342_v15, 1 }
 0x370   : >> { %v3879_v24 = vsel %vm7902_vm5, %v3862_v40, %v3696_v55  ;;  %v4859_v40 = vor.u32 %v4858_v51, %v4857_v0  ;;  %v5037_v55 = vld [vmem:[%s7022_s16 + $0x6c] sm:$0xe]  ;;  %v3689_v43 = vor.u32 %v3688_v34, %v3684_v57  ;;  %vm7910_vm5 = vmmov %vm7907_vm3 }
 0x371   : >> { %v3896_v8 = vsel %vm7903_vm7, %v3879_v24, %v3760_v17  ;;  %v3084_v17 = vpack.c.b16 %v3076_v9, %v3076_v9  ;;  %v7328_v30 = vpop.permute.xlu1 %3190  ;;  %v3176_v42 = vor.u32 %v3175_v28, %v3171_v50  ;;  %v3691_v25 = vshll.u32 %v3598_v19, 16  ;;  %vm7911_vm7 = vmmov %vm7908_vm4 }
 0x372   : >> { %4661 = vmatmul.msk.bf16.vlgmr.msra.gmra.mxu0 %vm7904_vm8, %v3896_v8  ;;  %v3438_v8 = vsel %vm1067_vm10, %v7236_v29, %v3437_v1  ;;  %v5038_v5 = vor.u32 %v5037_v55, %v5036_v21  ;;  %vm7912_vm8 = vmmov %vm7909_vm1 }
 0x373   : >> { %v3178_v22 = vshll.u32 %v3084_v17, 16  ;;  %v3245_v59 = vrot.slane %v3084_v17, 1 }
 0x374   : >> { %v3756_v28 = vrot.slane %v5038_v5, 1 }
 0x375   : >> { %3701 = vrot.lane.b32.xlu0 %v3646_v39, %s5110_s26  ;;  %3765 = vrot.lane.b32.xlu2 %v3746_v41, %s5106_s22  ;;  %v3180_v36 = vrot.slane %v3178_v22, 1  ;;  %v3246_v13 = vsel %vm1204_vm9, %v3244_v54, %v3245_v59  ;;  %v3500_v39 = vrot.slane %v4859_v40, 1  ;;  %v3785_v41 = vsel %vm1757_vm12, %v7054_v62, %v7328_v30 }
 0x376   : >> { %v3757_v22 = vrot.slane %v3598_v19, 1 }
 0x377   : >> { %v3252_v47 = vpop.permute.xlu0 %3251  ;;  %3769 = vrot.lane.b32.xlu1 %v3752_v10, %s5106_s22  ;;  %v7341_v12 = vpop.permute.xlu2 %3567  ;;  %v3181_v35 = vsel %vm1067_vm10, %v3176_v42, %v3180_v36  ;;  %v3502_v18 = vsel %vm1204_vm9, %v3500_v39, %v3501_v61 }
 0x378   : >> { %v3798_v50 = vsel %vm1774_vm13, %v3781_v32, %v3252_v47  ;;  %v3758_v10 = vsel %vm1204_vm9, %v3756_v28, %v3757_v22 }
 0x379   : >> { %v3444_v7 = vpop.permute.xlu1 %3443  ;;  %v3815_v38 = vsel %vm1791_vm14, %v3798_v50, %v7279_v27 }
 0x37a   : >> { %v3832_v11 = vsel %vm1808_vm15, %v3815_v38, %v3444_v7 }
 0x37d   : >> { %3705 = vrot.lane.b32.xlu0 %v3670_v2, %s5110_s26  ;;  %3196 = vrot.lane.b32.xlu2 %v3181_v35, %s5107_s23 }
 0x37f   : >> { %v3256_v60 = vpop.permute.xlu0 %3255  ;;  %3317 = vrot.lane.b32.xlu1 %v7203_v56, %s5104_s19  ;;  %v3704_v24 = vpop.permute.xlu2 %3703  ;;  %v3693_v56 = vrot.slane %v3691_v25, 1 }
 0x380   : >> { %v3802_v6 = vsel %vm1774_vm13, %v3785_v41, %v3256_v60 }
 0x381   : >> { %v3448_v9 = vpop.permute.xlu1 %3447  ;;  %v3694_v52 = vsel %vm1067_vm10, %v3689_v43, %v3693_v56  ;;  %v3819_v62 = vsel %vm1791_vm14, %v3802_v6, %v7303_v45 }
 0x382   : >> { %v3836_v47 = vsel %vm1808_vm15, %v3819_v62, %v3448_v9 }
 0x385   : >> { %3261 = vrot.lane.b32.xlu0 %v3246_v13, %s5105_s21  ;;  %3453 = vrot.lane.b32.xlu2 %v3438_v8, %s5109_s25 }
 0x387   : >> { %v3508_v14 = vpop.permute.xlu0 %3507  ;;  %3573 = vrot.lane.b32.xlu1 %v4635_v44, %s5103_s18  ;;  %v3195_v17 = vpop.permute.xlu2 %3194 }
 0x388   : >> { %v3849_v31 = vsel %vm1825_vm0, %v3832_v11, %v3508_v14 }
 0x389   : >> { %v3700_v29 = vpop.permute.xlu1 %3699  ;;  %v3866_v44 = vsel %vm1842_vm2, %v3849_v31, %v7325_v49 }
 0x38a   : >> { %v3883_v42 = vsel %vm7905_vm11, %v3866_v44, %v3700_v29  ;;  %vm7913_vm11 = vmmov %vm7907_vm3 }
 0x38d   : >> { %3517 = vrot.lane.b32.xlu0 %v3502_v18, %s5108_s24  ;;  %3709 = vrot.lane.b32.xlu2 %v3694_v52, %s5110_s26 }
 0x38f   : >> { %v3512_v3 = vpop.permute.xlu0 %3511  ;;  %v3442_v21 = vpop.permute.xlu2 %3441 }
 0x390   : >> { %v3853_v27 = vsel %vm1825_vm0, %v3836_v47, %v3512_v3 }
 0x391   : >> { %v3185_v30 = vpop.permute.xlu1 %3184  ;;  %v3870_v53 = vsel %vm1842_vm2, %v3853_v27, %v7341_v12 }
 0x392   : >> { %v3887_v45 = vsel %vm7908_vm4, %v3870_v53, %v3704_v24  ;;  %v3779_v0 = vsel %vm1757_vm12, %v7108_v63, %v3185_v30  ;;  %v3789_v63 = vsel %vm1757_vm12, %v7131_v58, %v3195_v17 }
 0x395   : >> { %3773 = vrot.lane.b32.xlu0 %v3758_v10, %s5106_s22 }
 0x397   : >> { %v3764_v36 = vpop.permute.xlu0 %3763  ;;  %v3452_v20 = vpop.permute.xlu2 %3451 }
 0x398   : >> { %v3900_v2 = vsel %vm7906_vm6, %v3883_v42, %v3764_v36  ;;  %vm7914_vm6 = vmmov %vm7908_vm4 }
 0x399   : >> { %4663 = vmatmul.msk.bf16.vlgmr.msra.gmra.mxu1 %vm7907_vm3, %v3900_v2  ;;  %v3768_v15 = vpop.permute.xlu1 %3767  ;;  %vm7915_vm3 = vmmov %vm7909_vm1 }
 0x39a   : >> { %v3904_v7 = vsel %vm7909_vm1, %v3887_v45, %v3768_v15  ;;  %vm7916_vm4 = vmmov %vm7910_vm5 }
 0x39b   : >> { %4665 = vmatmul.msk.bf16.vlgmr.msra.gmra.mxu2 %vm7910_vm5, %v3904_v7  ;;  %vm7917_vm1 = vmmov %vm7914_vm6 }
 0x39c   : >> { %vm7918_vm5 = vmmov %vm7915_vm3 }
 0x39f   : >> { %v3250_v49 = vpop.permute.xlu0 %3249  ;;  %v3698_v54 = vpop.permute.xlu2 %3697 }
 0x3a0   : >> { %v3796_v12 = vsel %vm1774_vm13, %v3779_v0, %v3250_v49 }
 0x3a1   : >> { %v3260_v35 = vpop.permute.xlu1 %3259 }
 0x3a2   : >> { %v3806_v34 = vsel %vm1774_vm13, %v3789_v63, %v3260_v35 }
 0x3a7   : >> { %v3306_v16 = vpop.permute.xlu0 %3305  ;;  %v3189_v1 = vpop.permute.xlu2 %3188 }
 0x3a8   : >> { %v3813_v51 = vsel %vm1791_vm14, %v3796_v12, %v3306_v16  ;;  %v3783_v22 = vsel %vm1757_vm12, %v7187_v46, %v3189_v1 }
 0x3a9   : >> { %v3506_v59 = vpop.permute.xlu1 %3505  ;;  %v3830_v37 = vsel %vm1808_vm15, %v3813_v51, %v3442_v21 }
 0x3aa   : >> { %v3847_v40 = vsel %vm1825_vm0, %v3830_v37, %v3506_v59 }
 0x3af   : >> { %v3316_v60 = vpop.permute.xlu0 %3315  ;;  %v3772_v8 = vpop.permute.xlu2 %3771 }
 0x3b0   : >> { %v3823_v25 = vsel %vm1791_vm14, %v3806_v34, %v3316_v60 }
 0x3b1   : >> { %v3516_v26 = vpop.permute.xlu1 %3515  ;;  %v3840_v61 = vsel %vm1808_vm15, %v3823_v25, %v3452_v20 }
 0x3b2   : >> { %v3857_v14 = vsel %vm1825_vm0, %v3840_v61, %v3516_v26 }
 0x3b7   : >> { %v3562_v13 = vpop.permute.xlu0 %3561  ;;  %v3258_v5 = vpop.permute.xlu2 %3257 }
 0x3b8   : >> { %v3864_v55 = vsel %vm1842_vm2, %v3847_v40, %v3562_v13 }
 0x3b9   : >> { %v3881_v19 = vsel %vm7911_vm7, %v3864_v55, %v3698_v54  ;;  %v3762_v9 = vpop.permute.xlu1 %3761  ;;  %vm7919_vm7 = vmmov %vm7916_vm4 }
 0x3ba   : >> { %v3898_v24 = vsel %vm7912_vm8, %v3881_v19, %v3762_v9  ;;  %vm7920_vm8 = vmmov %vm7917_vm1 }
 0x3bb   : >> { %4662 = vmatmul.msk.bf16.gmra.mxu0 %vm7913_vm11, %v3898_v24  ;;  %vm7921_vm11 = vmmov %vm7915_vm3 }
 0x3bf   : >> { %v3572_v57 = vpop.permute.xlu0 %3571  ;;  %v3510_v17 = vpop.permute.xlu2 %3509 }
 0x3c0   : >> { %v3874_v43 = vsel %vm1842_vm2, %v3857_v14, %v3572_v57 }
 0x3c1   : >> { %v3254_v39 = vpop.permute.xlu1 %3253 }
 0x3c2   : >> { %v3800_v38 = vsel %vm1774_vm13, %v3783_v22, %v3254_v39 }
 0x3c7   : >> { %v3708_v56 = vpop.permute.xlu0 %3707  ;;  %v3514_v28 = vpop.permute.xlu2 %3513 }
 0x3c8   : >> { %v3891_v18 = vsel %vm7914_vm6, %v3874_v43, %v3708_v56  ;;  %vm7922_vm6 = vmmov %vm7916_vm4 }
 0x3c9   : >> { %v3908_v58 = vsel %vm7915_vm3, %v3891_v18, %v3772_v8  ;;  %v3310_v32 = vpop.permute.xlu1 %3309  ;;  %vm7923_vm3 = vmmov %vm7917_vm1 }
 0x3ca   : >> { %4667 = vmatmul.msk.bf16.vlgmr.msra.gmra.mxu3 %vm7916_vm4, %v3908_v58  ;;  %v3817_v6 = vsel %vm1791_vm14, %v3800_v38, %v3310_v32  ;;  %vm7924_vm4 = vmmov %vm7918_vm5 }
 0x3cf   : >> { %v3193_v29 = vpop.permute.xlu0 %3192  ;;  %v3766_v30 = vpop.permute.xlu2 %3765 }
 0x3d0   : >> { %v3787_v31 = vsel %vm1757_vm12, %v7211_v23, %v3193_v29 }
 0x3d1   : >> { %v3314_v52 = vpop.permute.xlu1 %3313  ;;  %v3804_v27 = vsel %vm1774_vm13, %v3787_v31, %v3258_v5 }
 0x3d2   : >> { %v3821_v42 = vsel %vm1791_vm14, %v3804_v27, %v3314_v52 }
 0x3d7   : >> { %v3446_v41 = vpop.permute.xlu0 %3445  ;;  %v3197_v49 = vpop.permute.xlu2 %3196 }
 0x3d8   : >> { %v3834_v11 = vsel %vm1808_vm15, %v3817_v6, %v3446_v41  ;;  %v3791_v16 = vsel %vm1757_vm12, %v7294_v4, %v3197_v49 }
 0x3d9   : >> { %v3566_v50 = vpop.permute.xlu1 %3565  ;;  %v3851_v62 = vsel %vm1825_vm0, %v3834_v11, %v3510_v17 }
 0x3da   : >> { %v3868_v47 = vsel %vm1842_vm2, %v3851_v62, %v3566_v50 }
 0x3df   : >> { %v3450_v3 = vpop.permute.xlu0 %3449  ;;  %v3454_v0 = vpop.permute.xlu2 %3453 }
 0x3e0   : >> { %v3838_v36 = vsel %vm1808_vm15, %v3821_v42, %v3450_v3 }
 0x3e1   : >> { %v3570_v10 = vpop.permute.xlu1 %3569  ;;  %v3855_v2 = vsel %vm1825_vm0, %v3838_v36, %v3514_v28 }
 0x3e2   : >> { %v3872_v53 = vsel %vm1842_vm2, %v3855_v2, %v3570_v10 }
 0x3e7   : >> { %v3702_v44 = vpop.permute.xlu0 %3701  ;;  %v3710_v13 = vpop.permute.xlu2 %3709 }
 0x3e8   : >> { %v3885_v46 = vsel %vm7917_vm1, %v3868_v47, %v3702_v44  ;;  %vm7925_vm1 = vmmov %vm7922_vm6 }
 0x3e9   : >> { %v3902_v21 = vsel %vm7918_vm5, %v3885_v46, %v3766_v30  ;;  %v3770_v23 = vpop.permute.xlu1 %3769 }
 0x3ea   : >> { %4664 = vmatmul.msk.bf16.gmra.mxu1 %vm7919_vm7, %v3902_v21 }
 0x3ef   : >> { %v3961_v45 = vpop.f32.mrf.mxu0  ;;  %v3706_v15 = vpop.permute.xlu0 %3705 }
 0x3f0   : >> { %4003 = vst.msk [vmem:[%s7428_s7] sm:$0xff] %vm1757_vm12, %v3961_v45  ;;  %v3889_v7 = vsel %vm7920_vm8, %v3872_v53, %v3706_v15  ;;  %v4019_v34 = vsel %vm1757_vm12, %v3961_v45, 0.0  ;;  %v4057_v56 = vmul.f32 %v3961_v45, %v3961_v45 }
 0x3f1   : >> { %v3906_v20 = vsel %vm7921_vm11, %v3889_v7, %v3770_v23  ;;  %v3318_v35 = vpop.permute.xlu1 %3317 }
 0x3f2   : >> { %4666 = vmatmul.msk.bf16.gmra.mxu2 %vm7922_vm6, %v3906_v20  ;;  %v4073_v58 = vsel %vm1757_vm12, %v4057_v56, 0.0 }
 0x3f7   : >> { %v3963_v54 = vpop.f32.mrf.mxu0  ;;  %v3262_v59 = vpop.permute.xlu0 %3261 }
 0x3f8   : >> { %4004 = vst.msk [vmem:[%s7428_s7 + $0x8] sm:$0xff] %vm1757_vm12, %v3963_v54  ;;  %v3808_v60 = vsel %vm1774_vm13, %v3791_v16, %v3262_v59  ;;  %v4020_v57 = vsel %vm1757_vm12, %v3963_v54, 0.0  ;;  %v4058_v61 = vmul.f32 %v3963_v54, %v3963_v54 }
 0x3f9   : >> { %v3825_v12 = vsel %vm1791_vm14, %v3808_v60, %v3318_v35  ;;  %v3574_v37 = vpop.permute.xlu1 %3573  ;;  %v4021_v25 = vadd.f32 %v4020_v57, %v4019_v34 }
 0x3fa   : >> { %v3842_v26 = vsel %vm1808_vm15, %v3825_v12, %v3454_v0  ;;  %v4074_v5 = vsel %vm1757_vm12, %v4058_v61, 0.0 }
 0x3fb   : >> { %v4075_v29 = vadd.f32 %v4074_v5, %v4073_v58 }
 0x3ff   : >> { %v3518_v51 = vpop.permute.xlu0 %3517 }
 0x400   : >> { %v3859_v1 = vsel %vm1825_vm0, %v3842_v26, %v3518_v51 }
 0x401   : >> { %v3876_v4 = vsel %vm1842_vm2, %v3859_v1, %v3574_v37 }
 0x402   : >> { %v3893_v40 = vsel %vm7923_vm3, %v3876_v4, %v3710_v13 }
 0x407   : >> { %v3774_v55 = vpop.permute.xlu0 %3773 }
 0x408   : >> { %v3910_v19 = vsel %vm7924_vm4, %v3893_v40, %v3774_v55 }
 0x409   : >> { %4668 = vmatmul.msk.bf16.gmra.mxu3 %vm7925_vm1, %v3910_v19 }
 0x416   : >> { %v3971_v9 = vpop.f32.mrf.mxu1 }
 0x417   : >> { %4007 = vst.msk [vmem:[%s7428_s7 + $0x20] sm:$0xff] %vm1757_vm12, %v3971_v9  ;;  %v4061_v52 = vmul.f32 %v3971_v9, %v3971_v9  ;;  %v4026_v3 = vsel %vm1757_vm12, %v3971_v9, 0.0 }
 0x419   : >> { %v4080_v10 = vsel %vm1757_vm12, %v4061_v52, 0.0 }
 0x41e   : >> { %v3973_v24 = vpop.f32.mrf.mxu1  ;;  %v3981_v63 = vpop.f32.mrf.mxu2 }
 0x41f   : >> { %4008 = vst.msk [vmem:[%s7428_s7 + $0x28] sm:$0xff] %vm1757_vm12, %v3973_v24  ;;  %v4062_v44 = vmul.f32 %v3973_v24, %v3973_v24  ;;  %v4028_v27 = vsel %vm1757_vm12, %v3973_v24, 0.0  ;;  %v4065_v15 = vmul.f32 %v3981_v63, %v3981_v63  ;;  %v4034_v16 = vsel %vm1757_vm12, %v3981_v63, 0.0 }
 0x420   : >> { %4011 = vst.msk [vmem:[%s7428_s7 + $0x40] sm:$0xff] %vm1757_vm12, %v3981_v63 }
 0x421   : >> { %v4082_v36 = vsel %vm1757_vm12, %v4062_v44, 0.0  ;;  %v4088_v0 = vsel %vm1757_vm12, %v4065_v15, 0.0 }
 0x426   : >> { %v3983_v8 = vpop.f32.mrf.mxu2 }
 0x427   : >> { %4012 = vst.msk [vmem:[%s7428_s7 + $0x48] sm:$0xff] %vm1757_vm12, %v3983_v8  ;;  %v4066_v26 = vmul.f32 %v3983_v8, %v3983_v8  ;;  %v4036_v1 = vsel %vm1757_vm12, %v3983_v8, 0.0 }
 0x429   : >> { %v4090_v13 = vsel %vm1757_vm12, %v4066_v26, 0.0 }
 0x438   : >> { %v3966_v39 = vpop.f32.mrf.mxu0 }
 0x439   : >> { %4005 = vst.msk [vmem:[%s7428_s7 + $0x10] sm:$0xff] %vm1757_vm12, %v3966_v39  ;;  %v4022_v14 = vsel %vm1757_vm12, %v3966_v39, 0.0  ;;  %v4059_v18 = vmul.f32 %v3966_v39, %v3966_v39 }
 0x43a   : >> { %v4023_v43 = vadd.f32 %v4022_v14, %v4021_v25 }
 0x43b   : >> { %v4076_v32 = vsel %vm1757_vm12, %v4059_v18, 0.0 }
 0x43c   : >> { %v4077_v28 = vadd.f32 %v4076_v32, %v4075_v29 }
 0x440   : >> { %v3968_v17 = vpop.f32.mrf.mxu0 }
 0x441   : >> { %4006 = vst.msk [vmem:[%s7428_s7 + $0x18] sm:$0xff] %vm1757_vm12, %v3968_v17  ;;  %v4024_v41 = vsel %vm1757_vm12, %v3968_v17, 0.0  ;;  %v4060_v50 = vmul.f32 %v3968_v17, %v3968_v17 }
 0x442   : >> { %v4025_v22 = vadd.f32 %v4024_v41, %v4023_v43 }
 0x443   : >> { %v4078_v38 = vsel %vm1757_vm12, %v4060_v50, 0.0 }
 0x444   : >> { %v4027_v6 = vadd.f32 %v4026_v3, %v4025_v22  ;;  %v4079_v11 = vadd.f32 %v4078_v38, %v4077_v28 }
 0x446   : >> { %v4081_v31 = vadd.f32 %v4080_v10, %v4079_v11  ;;  %v4029_v42 = vadd.f32 %v4028_v27, %v4027_v6 }
 0x448   : >> { %v4083_v53 = vadd.f32 %v4082_v36, %v4081_v31 }
 0x44d   : >> { %v3991_v62 = vpop.f32.mrf.mxu3 }
 0x44e   : >> { %4015 = vst.msk [vmem:[%s7428_s7 + $0x60] sm:$0xff] %vm1757_vm12, %v3991_v62  ;;  %v4069_v63 = vmul.f32 %v3991_v62, %v3991_v62  ;;  %v4042_v39 = vsel %vm1757_vm12, %v3991_v62, 0.0 }
 0x450   : >> { %v4096_v56 = vsel %vm1757_vm12, %v4069_v63, 0.0 }
 0x455   : >> { %v3993_v30 = vpop.f32.mrf.mxu3 }
 0x456   : >> { %4016 = vst.msk [vmem:[%s7428_s7 + $0x68] sm:$0xff] %vm1757_vm12, %v3993_v30  ;;  %v4070_v58 = vmul.f32 %v3993_v30, %v3993_v30  ;;  %v4044_v29 = vsel %vm1757_vm12, %v3993_v30, 0.0 }
 0x458   : >> { %v4098_v41 = vsel %vm1757_vm12, %v4070_v58, 0.0 }
 0x467   : >> { %v3976_v47 = vpop.f32.mrf.mxu1 }
 0x468   : >> { %4009 = vst.msk [vmem:[%s7428_s7 + $0x30] sm:$0xff] %vm1757_vm12, %v3976_v47  ;;  %v4063_v46 = vmul.f32 %v3976_v47, %v3976_v47  ;;  %v4030_v21 = vsel %vm1757_vm12, %v3976_v47, 0.0 }
 0x469   : >> { %v4031_v2 = vadd.f32 %v4030_v21, %v4029_v42 }
 0x46a   : >> { %v4084_v23 = vsel %vm1757_vm12, %v4063_v46, 0.0 }
 0x46b   : >> { %v4085_v20 = vadd.f32 %v4084_v23, %v4083_v53 }
 0x46f   : >> { %v3978_v45 = vpop.f32.mrf.mxu1 }
 0x470   : >> { %4010 = vst.msk [vmem:[%s7428_s7 + $0x38] sm:$0xff] %vm1757_vm12, %v3978_v45  ;;  %v4032_v7 = vsel %vm1757_vm12, %v3978_v45, 0.0  ;;  %v4064_v49 = vmul.f32 %v3978_v45, %v3978_v45 }
 0x471   : >> { %v4033_v35 = vadd.f32 %v4032_v7, %v4031_v2 }
 0x472   : >> { %v4086_v54 = vsel %vm1757_vm12, %v4064_v49, 0.0 }
 0x473   : >> { %v4035_v59 = vadd.f32 %v4034_v16, %v4033_v35  ;;  %v4087_v60 = vadd.f32 %v4086_v54, %v4085_v20 }
 0x475   : >> { %v4089_v12 = vadd.f32 %v4088_v0, %v4087_v60  ;;  %v3986_v51 = vpop.f32.mrf.mxu2  ;;  %v4037_v4 = vadd.f32 %v4036_v1, %v4035_v59 }
 0x476   : >> { %4013 = vst.msk [vmem:[%s7428_s7 + $0x50] sm:$0xff] %vm1757_vm12, %v3986_v51  ;;  %v4067_v37 = vmul.f32 %v3986_v51, %v3986_v51  ;;  %v4038_v40 = vsel %vm1757_vm12, %v3986_v51, 0.0 }
 0x477   : >> { %v4091_v55 = vadd.f32 %v4090_v13, %v4089_v12  ;;  %v4039_v9 = vadd.f32 %v4038_v40, %v4037_v4 }
 0x478   : >> { %v4092_v19 = vsel %vm1757_vm12, %v4067_v37, 0.0 }
 0x479   : >> { %v4093_v25 = vadd.f32 %v4092_v19, %v4091_v55 }
 0x47d   : >> { %v3988_v24 = vpop.f32.mrf.mxu2 }
 0x47e   : >> { %4014 = vst.msk [vmem:[%s7428_s7 + $0x58] sm:$0xff] %vm1757_vm12, %v3988_v24  ;;  %v4040_v57 = vsel %vm1757_vm12, %v3988_v24, 0.0  ;;  %v4068_v34 = vmul.f32 %v3988_v24, %v3988_v24 }
 0x47f   : >> { %v4041_v8 = vadd.f32 %v4040_v57, %v4039_v9 }
 0x480   : >> { %v4094_v61 = vsel %vm1757_vm12, %v4068_v34, 0.0 }
 0x481   : >> { %v4043_v14 = vadd.f32 %v4042_v39, %v4041_v8  ;;  %v4095_v43 = vadd.f32 %v4094_v61, %v4093_v25 }
 0x483   : >> { %v4097_v18 = vadd.f32 %v4096_v56, %v4095_v43  ;;  %v4045_v52 = vadd.f32 %v4044_v29, %v4043_v14  ;;  %v4223_v56 = vld [vmem:[%s5142_s17] sm:$0xff] (%p2907_p5) }
 0x485   : >> { %v4099_v22 = vadd.f32 %v4098_v41, %v4097_v18  ;;  %v4224_v18 = vld [vmem:[%s5142_s17 + $0x8] sm:$0xff] (%p2907_p5) }
 0x48c   : >> { %v3996_v5 = vpop.f32.mrf.mxu3 }
 0x48d   : >> { %4017 = vst.msk [vmem:[%s7428_s7 + $0x70] sm:$0xff] %vm1757_vm12, %v3996_v5  ;;  %v4071_v32 = vmul.f32 %v3996_v5, %v3996_v5  ;;  %v4046_v17 = vsel %vm1757_vm12, %v3996_v5, 0.0  ;;  %v4225_v5 = vld [vmem:[%s5142_s17 + $0x10] sm:$0xff] (%p2907_p5) }
 0x48e   : >> { %v4047_v28 = vadd.f32 %v4046_v17, %v4045_v52 }
 0x48f   : >> { %v4100_v50 = vsel %vm1757_vm12, %v4071_v32, 0.0 }
 0x490   : >> { %v4101_v11 = vadd.f32 %v4100_v50, %v4099_v22  ;;  %v4226_v50 = vld [vmem:[%s5142_s17 + $0x18] sm:$0xff] (%p2907_p5) }
 0x494   : >> { %v3998_v3 = vpop.f32.mrf.mxu3 }
 0x495   : >> { %4018 = vst.msk [vmem:[%s7428_s7 + $0x78] sm:$0xff] %vm1757_vm12, %v3998_v3  ;;  %v4048_v38 = vsel %vm1757_vm12, %v3998_v3, 0.0  ;;  %v4072_v6 = vmul.f32 %v3998_v3, %v3998_v3  ;;  %v4227_v3 = vld [vmem:[%s5142_s17 + $0x20] sm:$0xff] (%p2907_p5) }
 0x496   : >> { %v4049_v10 = vadd.f32 %v4048_v38, %v4047_v28 }
 0x497   : >> { %v4102_v31 = vsel %vm1757_vm12, %v4072_v6, 0.0 }
 0x498   : >> { %v4050_v62 = vrot.slane %v4049_v10, 4  ;;  %v4103_v30 = vadd.f32 %v4102_v31, %v4101_v11 }
 0x49a   : >> { %v4051_v47 = vadd.f32 %v4050_v62, %v4049_v10  ;;  %v4104_v44 = vrot.slane %v4103_v30, 4 }
 0x49c   : >> { %v4052_v46 = vrot.slane %v4051_v47, 2  ;;  %v4105_v27 = vadd.f32 %v4104_v44, %v4103_v30  ;;  %v4127_v12 = vld [vmem:[#allocation3] sm:$0xff] (%p2907_p5)  ;;  %v4128_v26 = vld [vmem:[#allocation3 + $0x8] sm:$0xff] (%p2907_p5)  ;;  %v4129_v1 = vld [vmem:[#allocation3 + $0x10] sm:$0xff] (%p2907_p5) }
 0x49d   : > { %v4130_v37 = vld [vmem:[#allocation3 + $0x18] sm:$0xff] (%p2907_p5)  ;;  %v4132_v4 = vld [vmem:[#allocation3 + $0x28] sm:$0xff] (%p2907_p5)  ;;  %v4133_v40 = vld [vmem:[#allocation3 + $0x30] sm:$0xff] (%p2907_p5) }
 0x49e   : >> { %v4053_v21 = vadd.f32 %v4052_v46, %v4051_v47  ;;  %v4106_v42 = vrot.slane %v4105_v27, 2  ;;  %v4134_v63 = vld [vmem:[#allocation3 + $0x38] sm:$0xff] (%p2907_p5)  ;;  %v4135_v57 = vld [vmem:[#allocation3 + $0x40] sm:$0xff] (%p2907_p5)  ;;  %v4136_v61 = vld [vmem:[#allocation3 + $0x48] sm:$0xff] (%p2907_p5) }
 0x49f   : > { %v4137_v14 = vld [vmem:[#allocation3 + $0x50] sm:$0xff] (%p2907_p5)  ;;  %v4138_v28 = vld [vmem:[#allocation3 + $0x58] sm:$0xff] (%p2907_p5)  ;;  %v4139_v10 = vld [vmem:[#allocation3 + $0x60] sm:$0xff] (%p2907_p5) }
 0x4a0   : >> { %v4054_v36 = vrot.slane %v4053_v21, 1  ;;  %v4107_v23 = vadd.f32 %v4106_v42, %v4105_v27  ;;  %v4228_v47 = vld [vmem:[%s5142_s17 + $0x28] sm:$0xff] (%p2907_p5)  ;;  %v4140_v46 = vld [vmem:[#allocation3 + $0x68] sm:$0xff] (%p2907_p5) }
 0x4a2   : >> { %v4055_v2 = vadd.f32 %v4054_v36, %v4053_v21  ;;  %v4108_v53 = vrot.slane %v4107_v23, 1  ;;  %v4229_v21 = vld [vmem:[%s5142_s17 + $0x30] sm:$0xff] (%p2907_p5) }
 0x4a4   : >> { %v4056_v45 = vadd.f32 %v5089_v33, %v4055_v2   ;;  %v4109_v15 = vadd.f32 %v4108_v53, %v4107_v23  ;;  %2909 = sbr.rel (!%p2907_p5) target bundleno = 735 (0x2df), region = 99  ;;  %v4141_v23 = vld [vmem:[#allocation3 + $0x70] sm:$0xff] (%p2907_p5)  ;;  %v4230_v53 = vld [vmem:[%s5142_s17 + $0x38] sm:$0xff] (%p2907_p5) }
 0x4a6   : >> { %v4110_v7 = vadd.f32 %v5085_v48, %v4109_v15   ;;  %v7927_v33 = vmov %v4056_v45  ;;  %v7516_v49 = vmul.f32 (%p2907_p5), 0.00390625, %v4056_v45 }
 0x4a8   : >> { %v7926_v48 = vmov %v4110_v7  ;;  %v4112_v20 = vmul.f32 (%p2907_p5), 0.00390625, %v4110_v7  ;;  %v4113_v35 = vmul.f32 (%p2907_p5), %v7516_v49, %v7516_v49  ;;  %v4159_v55 = vsub.f32 (%p2907_p5), %v4127_v12, %v7516_v49  ;;  %v4142_v7 = vld [vmem:[#allocation3 + $0x78] sm:$0xff] (%p2907_p5) }
 0x4a9   : > { %v4131_v48 = vld [vmem:[#allocation3 + $0x20] sm:$0xff]  ;;  %v4160_v19 = vsub.f32 %v4128_v26, %v7516_v49  ;;  %v4161_v9 = vsub.f32 %v4129_v1, %v7516_v49  ;;  %v4162_v24 = vsub.f32 %v4130_v37, %v7516_v49  ;;  %v4164_v8 = vsub.f32 %v4132_v4, %v7516_v49  ;;  %v4233_v1 = vld [vmem:[%s5142_s17 + $0x50] sm:$0xff]  ;;  %v4145_v4 = vld [vmem:[#allocation3 + $0x90] sm:$0xff] }
 0x4aa   : > { %v4114_v33 = vsub.f32 %v4112_v20, %v4113_v35  ;;  %v4163_v25 = vsub.f32 %v4131_v48, %v7516_v49  ;;  %v4165_v39 = vsub.f32 %v4133_v40, %v7516_v49  ;;  %v4166_v58 = vsub.f32 %v4134_v63, %v7516_v49  ;;  %v4231_v35 = vld [vmem:[%s5142_s17 + $0x40] sm:$0xff]  ;;  %v4234_v40 = vld [vmem:[%s5142_s17 + $0x58] sm:$0xff] }
 0x4ab   : > { %v4167_v32 = vsub.f32 %v4135_v57, %v7516_v49  ;;  %v4168_v6 = vsub.f32 %v4136_v61, %v7516_v49  ;;  %v4169_v11 = vsub.f32 %v4137_v14, %v7516_v49  ;;  %v4170_v36 = vsub.f32 %v4138_v28, %v7516_v49  ;;  %v4235_v63 = vld [vmem:[%s5142_s17 + $0x60] sm:$0xff]  ;;  %v4150_v28 = vld [vmem:[#allocation3 + $0xb8] sm:$0xff] }
 0x4ac   : > { %v4115_v16 = vmax.f32 %v4114_v33, 0.0  ;;  %v4171_v15 = vsub.f32 %v4139_v10, %v7516_v49  ;;  %v4173_v12 = vsub.f32 %v4141_v23, %v7516_v49  ;;  %v4174_v48 = vsub.f32 %v4142_v7, %v7516_v49  ;;  %v4242_v23 = vld [vmem:[%s5142_s17 + $0x98] sm:$0xff]  ;;  %v4243_v7 = vld [vmem:[%s5142_s17 + $0xa0] sm:$0xff] }
 0x4ad   : > { %v4177_v14 = vsub.f32 %v4145_v4, %v7516_v49  ;;  %v4246_v4 = vld [vmem:[%s5142_s17 + $0xb8] sm:$0xff] }
 0x4ae   : > { %v4116_v54 = vadd.f32 1e-05, %v4115_v16  ;;  %v4172_v16 = vsub.f32 %v4140_v46, %v7516_v49  ;;  %v4241_v46 = vld [vmem:[%s5142_s17 + $0x90] sm:$0xff] }
 0x4b0   : > { %4965 = vrsqrt.f32 %v4116_v54  ;;  %vm4123_vm5 = vweird.f32 %v4116_v54 }
 0x4b6   : > { %v4966_v59 = vpop.eup %4965 }
 0x4b7   : > { %v4118_v60 = vmul.f32 %v4966_v59, %v4116_v54  ;;  %vm4124_vm7 = vweird.f32 %v4966_v59  ;;  %v4143_v54 = vld [vmem:[#allocation3 + $0x80] sm:$0xff] }
 0x4b8   : > { %vm4125_vm9 = vmor %vm4123_vm5, %vm4124_vm7 }
 0x4b9   : > { %v4119_v0 = vmul.f32 %v4966_v59, %v4118_v60  ;;  %v4232_v60 = vld [vmem:[%s5142_s17 + $0x48] sm:$0xff] }
 0x4bb   : > { %v4120_v51 = vmul.f32 0.5, %v4119_v0 }
 0x4bd   : > { %v4121_v13 = vsub.f32 1.5, %v4120_v51  ;;  %v4144_v51 = vld [vmem:[#allocation3 + $0x88] sm:$0xff] }
 0x4bf   : > { %v4122_v34 = vmul.f32 %v4966_v59, %v4121_v13 }
 0x4c1   : > { %v7527_v43 = vsel %vm4125_vm9, %v4966_v59, %v4122_v34  ;;  %v4176_v34 = vsub.f32 %v4144_v51, %v7516_v49  ;;  %v4245_v51 = vld [vmem:[%s5142_s17 + $0xb0] sm:$0xff] }
 0x4c2   : > { %v4191_v29 = vmul.f32 %v4159_v55, %v7527_v43  ;;  %v4192_v17 = vmul.f32 %v4160_v19, %v7527_v43  ;;  %v4193_v52 = vmul.f32 %v4161_v9, %v7527_v43  ;;  %v4194_v41 = vmul.f32 %v4162_v24, %v7527_v43  ;;  %v4146_v9 = vld [vmem:[#allocation3 + $0x98] sm:$0xff] }
 0x4c3   : > { %v4195_v22 = vmul.f32 %v4163_v25, %v7527_v43  ;;  %v4196_v38 = vmul.f32 %v4164_v8, %v7527_v43  ;;  %v4197_v44 = vmul.f32 %v4165_v39, %v7527_v43  ;;  %v4198_v42 = vmul.f32 %v4166_v58, %v7527_v43  ;;  %v4147_v25 = vld [vmem:[#allocation3 + $0xa0] sm:$0xff]  ;;  %v4236_v39 = vld [vmem:[%s5142_s17 + $0x68] sm:$0xff] }
 0x4c4   : > { %v4255_v31 = vadd.f32 %v4223_v56, %v4191_v29  ;;  %v4256_v62 = vadd.f32 %v4224_v18, %v4192_v17  ;;  %v4257_v30 = vadd.f32 %v4225_v5, %v4193_v52  ;;  %v4258_v27 = vadd.f32 %v4226_v50, %v4194_v41  ;;  %v4148_v56 = vld [vmem:[#allocation3 + $0xa8] sm:$0xff]  ;;  %v4237_v5 = vld [vmem:[%s5142_s17 + $0x70] sm:$0xff]  ;;  %v4149_v29 = vld [vmem:[#allocation3 + $0xb0] sm:$0xff] }
 0x4c5   : > { %v4259_v2 = vadd.f32 %v4227_v3, %v4195_v22  ;;  %v4199_v45 = vmul.f32 %v4167_v32, %v7527_v43  ;;  %v4260_v20 = vadd.f32 %v4228_v47, %v4196_v38  ;;  %v4200_v33 = vmul.f32 %v4168_v6, %v7527_v43  ;;  %v4238_v52 = vld [vmem:[%s5142_s17 + $0x78] sm:$0xff]  ;;  %v4239_v3 = vld [vmem:[%s5142_s17 + $0x80] sm:$0xff] }
 0x4c6   : > { %4288 = vst.msk [vmem:[%s5147_s20] sm:$0xff] %vm1757_vm12, %v4255_v31  ;;  %v4261_v59 = vadd.f32 %v4229_v21, %v4197_v44  ;;  %v4201_v0 = vmul.f32 %v4169_v11, %v7527_v43  ;;  %v4262_v26 = vadd.f32 %v4230_v53, %v4198_v42  ;;  %v4202_v37 = vmul.f32 %v4170_v36, %v7527_v43  ;;  %v4151_v11 = vld [vmem:[#allocation3 + $0xc0] sm:$0xff]  ;;  %v4240_v31 = vld [vmem:[%s5142_s17 + $0x88] sm:$0xff]  ;;  %v4152_v47 = vld [vmem:[#allocation3 + $0xc8] sm:$0xff] }
 0x4c7   : > { %4289 = vst.msk [vmem:[%s5147_s20 + $0x8] sm:$0xff] %vm1757_vm12, %v4256_v62  ;;  %v4263_v13 = vadd.f32 %v4231_v35, %v4199_v45  ;;  %v4203_v55 = vmul.f32 %v4171_v15, %v7527_v43  ;;  %v4175_v19 = vsub.f32 %v4143_v54, %v7516_v49  ;;  %v4264_v24 = vadd.f32 %v4232_v60, %v4200_v33  ;;  %v4153_v42 = vld [vmem:[#allocation3 + $0xd0] sm:$0xff]  ;;  %v4154_v45 = vld [vmem:[#allocation3 + $0xd8] sm:$0xff]  ;;  %v4155_v33 = vld [vmem:[#allocation3 + $0xe0] sm:$0xff] }
 0x4c8   : > { %4290 = vst.msk [vmem:[%s5147_s20 + $0x10] sm:$0xff] %vm1757_vm12, %v4257_v30  ;;  %v4204_v57 = vmul.f32 %v4172_v16, %v7527_v43  ;;  %v4265_v8 = vadd.f32 %v4233_v1, %v4201_v0  ;;  %v4205_v61 = vmul.f32 %v4173_v12, %v7527_v43  ;;  %v4266_v18 = vadd.f32 %v4234_v40, %v4202_v37  ;;  %v4244_v54 = vld [vmem:[%s5142_s17 + $0xa8] sm:$0xff]  ;;  %v4156_v0 = vld [vmem:[#allocation3 + $0xe8] sm:$0xff] }
 0x4c9   : > { %4291 = vst.msk [vmem:[%s5147_s20 + $0x18] sm:$0xff] %vm1757_vm12, %v4258_v27  ;;  %v4206_v58 = vmul.f32 %v4174_v48, %v7527_v43  ;;  %v4178_v32 = vsub.f32 %v4146_v9, %v7516_v49  ;;  %v4267_v17 = vadd.f32 %v4235_v63, %v4203_v55  ;;  %v4207_v41 = vmul.f32 %v4175_v19, %v7527_v43  ;;  %v4157_v37 = vld [vmem:[#allocation3 + $0xf0] sm:$0xff]  ;;  %v4158_v55 = vld [vmem:[#allocation3 + $0xf8] sm:$0xff]  ;;  %v4247_v9 = vld [vmem:[%s5142_s17 + $0xc0] sm:$0xff] }
 0x4ca   : > { %4292 = vst.msk [vmem:[%s5147_s20 + $0x20] sm:$0xff] %vm1757_vm12, %v4259_v2  ;;  %v4179_v50 = vsub.f32 %v4147_v25, %v7516_v49  ;;  %v4268_v22 = vadd.f32 %v4236_v39, %v4204_v57  ;;  %v4208_v38 = vmul.f32 %v4176_v34, %v7527_v43  ;;  %v4180_v6 = vsub.f32 %v4148_v56, %v7516_v49  ;;  %v4248_v34 = vld [vmem:[%s5142_s17 + $0xc8] sm:$0xff] }
 0x4cb   : > { %4293 = vst.msk [vmem:[%s5147_s20 + $0x28] sm:$0xff] %vm1757_vm12, %v4260_v20  ;;  %v4269_v10 = vadd.f32 %v4237_v5, %v4205_v61  ;;  %v4209_v62 = vmul.f32 %v4177_v14, %v7527_v43  ;;  %v4181_v30 = vsub.f32 %v4149_v29, %v7516_v49  ;;  %v4270_v44 = vadd.f32 %v4238_v52, %v4206_v58  ;;  %v4249_v61 = vld [vmem:[%s5142_s17 + $0xd0] sm:$0xff]  ;;  %v4250_v5 = vld [vmem:[%s5142_s17 + $0xd8] sm:$0xff]  ;;  %v4251_v29 = vld [vmem:[%s5142_s17 + $0xe0] sm:$0xff] }
 0x4cc   : > { %4294 = vst.msk [vmem:[%s5147_s20 + $0x30] sm:$0xff] %vm1757_vm12, %v4261_v59  ;;  %v4210_v27 = vmul.f32 %v4178_v32, %v7527_v43  ;;  %v4182_v21 = vsub.f32 %v4150_v28, %v7516_v49  ;;  %v4271_v36 = vadd.f32 %v4239_v3, %v4207_v41  ;;  %v4211_v2 = vmul.f32 %v4179_v50, %v7527_v43  ;;  %v4252_v52 = vld [vmem:[%s5142_s17 + $0xe8] sm:$0xff]  ;;  %v4253_v28 = vld [vmem:[%s5142_s17 + $0xf0] sm:$0xff] }
 0x4cd   : > { %4295 = vst.msk [vmem:[%s5147_s20 + $0x38] sm:$0xff] %vm1757_vm12, %v4262_v26  ;;  %v4183_v53 = vsub.f32 %v4151_v11, %v7516_v49  ;;  %v4272_v15 = vadd.f32 %v4240_v31, %v4208_v38  ;;  %v4212_v20 = vmul.f32 %v4180_v6, %v7527_v43  ;;  %v4184_v35 = vsub.f32 %v4152_v47, %v7516_v49  ;;  %v4254_v38 = vld [vmem:[%s5142_s17 + $0xf8] sm:$0xff] }
 0x4ce   : > { %4296 = vst.msk [vmem:[%s5147_s20 + $0x40] sm:$0xff] %vm1757_vm12, %v4263_v13  ;;  %v4273_v16 = vadd.f32 %v4241_v46, %v4209_v62  ;;  %v4213_v59 = vmul.f32 %v4181_v30, %v7527_v43  ;;  %v4185_v60 = vsub.f32 %v4153_v42, %v7516_v49  ;;  %v4274_v12 = vadd.f32 %v4242_v23, %v4210_v27 }
 0x4cf   : > { %4297 = vst.msk [vmem:[%s5147_s20 + $0x48] sm:$0xff] %vm1757_vm12, %v4264_v24  ;;  %v4214_v26 = vmul.f32 %v4182_v21, %v7527_v43  ;;  %v4186_v1 = vsub.f32 %v4154_v45, %v7516_v49  ;;  %v4275_v48 = vadd.f32 %v4243_v7, %v4211_v2  ;;  %v4215_v13 = vmul.f32 %v4183_v53, %v7527_v43 }
 0x4d0   : > { %4298 = vst.msk [vmem:[%s5147_s20 + $0x50] sm:$0xff] %vm1757_vm12, %v4265_v8  ;;  %v4187_v40 = vsub.f32 %v4155_v33, %v7516_v49  ;;  %v4276_v19 = vadd.f32 %v4244_v54, %v4212_v20  ;;  %v4216_v24 = vmul.f32 %v4184_v35, %v7527_v43  ;;  %v4188_v63 = vsub.f32 %v4156_v0, %v7516_v49 }
 0x4d1   : > { %4299 = vst.msk [vmem:[%s5147_s20 + $0x58] sm:$0xff] %vm1757_vm12, %v4266_v18  ;;  %v4277_v57 = vadd.f32 %v4245_v51, %v4213_v59  ;;  %v4217_v25 = vmul.f32 %v4185_v60, %v7527_v43  ;;  %v4189_v8 = vsub.f32 %v4157_v37, %v7516_v49  ;;  %v4278_v39 = vadd.f32 %v4246_v4, %v4214_v26 }
 0x4d2   : > { %4300 = vst.msk [vmem:[%s5147_s20 + $0x60] sm:$0xff] %vm1757_vm12, %v4267_v17  ;;  %v4218_v14 = vmul.f32 %v4186_v1, %v7527_v43  ;;  %v4190_v56 = vsub.f32 %v4158_v55, %v7516_v49  ;;  %v4279_v18 = vadd.f32 %v4247_v9, %v4215_v13  ;;  %v4219_v58 = vmul.f32 %v4187_v40, %v7527_v43 }
 0x4d3   : > { %4301 = vst.msk [vmem:[%s5147_s20 + $0x68] sm:$0xff] %vm1757_vm12, %v4268_v22  ;;  %v4280_v32 = vadd.f32 %v4248_v34, %v4216_v24  ;;  %v4220_v17 = vmul.f32 %v4188_v63, %v7527_v43  ;;  %v4281_v49 = vadd.f32 %v4249_v61, %v4217_v25  ;;  %v4221_v41 = vmul.f32 %v4189_v8, %v7527_v43 }
 0x4d4   : > { %4302 = vst.msk [vmem:[%s5147_s20 + $0x70] sm:$0xff] %vm1757_vm12, %v4269_v10  ;;  %v4282_v50 = vadd.f32 %v4250_v5, %v4218_v14  ;;  %v4222_v22 = vmul.f32 %v4190_v56, %v7527_v43  ;;  %v4283_v3 = vadd.f32 %v4251_v29, %v4219_v58 }
 0x4d5   : > { %4303 = vst.msk [vmem:[%s5147_s20 + $0x78] sm:$0xff] %vm1757_vm12, %v4270_v44  ;;  %v4284_v6 = vadd.f32 %v4252_v52, %v4220_v17  ;;  %v4285_v11 = vadd.f32 %v4253_v28, %v4221_v41 }
 0x4d6   : > { %4304 = vst.msk [vmem:[%s5147_s20 + $0x80] sm:$0xff] %vm1757_vm12, %v4271_v36  ;;  %v4286_v10 = vadd.f32 %v4254_v38, %v4222_v22 }
 0x4d7   : > { %4305 = vst.msk [vmem:[%s5147_s20 + $0x88] sm:$0xff] %vm1757_vm12, %v4272_v15 }
 0x4d8   : > { %4306 = vst.msk [vmem:[%s5147_s20 + $0x90] sm:$0xff] %vm1757_vm12, %v4273_v16 }
 0x4d9   : > { %4307 = vst.msk [vmem:[%s5147_s20 + $0x98] sm:$0xff] %vm1757_vm12, %v4274_v12 }
 0x4da   : > { %4308 = vst.msk [vmem:[%s5147_s20 + $0xa0] sm:$0xff] %vm1757_vm12, %v4275_v48 }
 0x4db   : > { %4309 = vst.msk [vmem:[%s5147_s20 + $0xa8] sm:$0xff] %vm1757_vm12, %v4276_v19 }
 0x4dc   : > { %4310 = vst.msk [vmem:[%s5147_s20 + $0xb0] sm:$0xff] %vm1757_vm12, %v4277_v57 }
 0x4dd   : > { %4311 = vst.msk [vmem:[%s5147_s20 + $0xb8] sm:$0xff] %vm1757_vm12, %v4278_v39 }
 0x4de   : > { %4312 = vst.msk [vmem:[%s5147_s20 + $0xc0] sm:$0xff] %vm1757_vm12, %v4279_v18 }
 0x4df   : > { %4313 = vst.msk [vmem:[%s5147_s20 + $0xc8] sm:$0xff] %vm1757_vm12, %v4280_v32 }
 0x4e0   : > { %4314 = vst.msk [vmem:[%s5147_s20 + $0xd0] sm:$0xff] %vm1757_vm12, %v4281_v49 }
 0x4e1   : > { %4315 = vst.msk [vmem:[%s5147_s20 + $0xd8] sm:$0xff] %vm1757_vm12, %v4282_v50 }
 0x4e2   : > { %4316 = vst.msk [vmem:[%s5147_s20 + $0xe0] sm:$0xff] %vm1757_vm12, %v4283_v3 }
 0x4e3   : > { %4317 = vst.msk [vmem:[%s5147_s20 + $0xe8] sm:$0xff] %vm1757_vm12, %v4284_v6 }
 0x4e4   : > { %4318 = vst.msk [vmem:[%s5147_s20 + $0xf0] sm:$0xff] %vm1757_vm12, %v4285_v11 }
 0x4e5   : > { %4319 = vst.msk [vmem:[%s5147_s20 + $0xf8] sm:$0xff] %vm1757_vm12, %v4286_v10 }
 0x4e6 PF: > { %s13_s12 = sadd.s32 1, %s5069_s12  }
 0x4e7   : > { %p10_p6 = scmp.ge.s32.totalorder %s13_s12, 4  }
 0x4e9   :  { %12 = sbr.rel (!%p10_p6) target bundleno = 1 (0x1), region = 110 }

</bundles_post_ra>
